<compile_context>
chip_gen: v5e
topology: v5e:2x2
jax: 0.10.0
libtpu: 0.0.40
codegen_flags: <defaults>
</compile_context>

<pallas_src>
import numpy as np
import jax
import jax.numpy as jnp
from jax.experimental import pallas as pl
from jax.experimental.pallas import tpu as pltpu


def make_round_kernel(patch_size):
    """Deterministic disc-shaped 0/1 kernel, exactly as RoundConv.__init__."""
    x_, y_ = np.mgrid[-patch_size:patch_size + 1, -patch_size:patch_size + 1]
    kernel = np.exp(-(x_ ** 2 + y_ ** 2) / (2 * 5 ** 2))
    threshold = kernel[0, patch_size]
    return np.where(kernel >= threshold, 1.0, 0.0).astype(np.float32)


def round_conv(x, *, patch_size, in_channels, out_channels, block_planes=8):
    """Equivalent of F.conv2d(x, disc_weight, padding=patch_size, groups=in_channels).

    x: (N, C_in, H, W) float32  ->  (N, C_out, H, W) float32
    """
    N, C_in, H, W = x.shape
    assert C_in == in_channels
    assert out_channels % in_channels == 0, "out_channels must be a multiple of in_channels"
    opg = out_channels // in_channels          # identical out-planes per group
    K = 2 * patch_size + 1
    p = patch_size

    # Static 0/1 disc taps, baked into the kernel at trace time (skip zeros).
    w_np = make_round_kernel(patch_size)
    taps = [(di, dj) for di in range(K) for dj in range(K) if w_np[di, dj] != 0.0]

    NP = N * C_in                              # number of *distinct* output planes
    B = max(1, min(block_planes, NP))
    # Keep >= 2 grid steps when possible so the "parallel" axis has work for
    # both v7x TensorCores.
    if NP > 1 and pl.cdiv(NP, B) < 2:
        B = pl.cdiv(NP, 2)
    n_blocks = pl.cdiv(NP, B)
    NPp = n_blocks * B

    W_out = pl.cdiv(W, 128) * 128              # lane-dense output width
    Hp = H + 2 * p                             # halo'd scratch height
    W_scr = W_out + 2 * p                      # halo'd scratch width

    x_planes = x.reshape(NP, H, W)
    if NPp != NP:
        x_planes = jnp.pad(x_planes, ((0, NPp - NP), (0, 0), (0, 0)))

    def conv_kernel(x_ref, o_ref, xpad_ref):
        # x_ref   : (B, H, W)      unpadded input planes (VMEM)
        # o_ref   : (B, H, W_out)  lane-dense output planes (VMEM)
        # xpad_ref: (B, Hp, W_scr) zero-halo scratch (VMEM)
        #
        # Fused zero-padding: zero the scratch then drop the block into the
        # interior. Zeroing every step is cheap at these sizes and stays
        # correct when the parallel grid axis is sharded across cores.
        xpad_ref[...] = jnp.zeros_like(xpad_ref)
        xpad_ref[:, p:p + H, p:p + W] = x_ref[...]

        # Static shift-and-accumulate over the baked 0/1 disc: adds only.
        di0, dj0 = taps[0]
        acc = xpad_ref[:, di0:di0 + H, dj0:dj0 + W_out]
        for di, dj in taps[1:]:
            acc = acc + xpad_ref[:, di:di + H, dj:dj + W_out]
        o_ref[...] = acc.astype(o_ref.dtype)

    out_padded = pl.pallas_call(
        conv_kernel,
        out_shape=jax.ShapeDtypeStruct((NPp, H, W_out), x.dtype),
        grid_spec=pltpu.PrefetchScalarGridSpec(
            num_scalar_prefetch=0,
            grid=(n_blocks,),
            in_specs=[pl.BlockSpec((B, H, W), lambda i: (i, 0, 0))],
            out_specs=pl.BlockSpec((B, H, W_out), lambda i: (i, 0, 0)),
            scratch_shapes=[pltpu.VMEM((B, Hp, W_scr), jnp.float32)],
        ),
        compiler_params=pltpu.CompilerParams(dimension_semantics=("parallel",)),
    )(x_planes)

    # Slice off lane / plane padding, then broadcast each group's single
    # distinct plane to its opg identical out-channels (grouped-conv dedup).
    out_planes = out_padded[:NP, :, :W].reshape(N, C_in, 1, H, W)
    out = jnp.broadcast_to(out_planes, (N, C_in, opg, H, W))
    return out.reshape(N, out_channels, H, W)


if __name__ == "__main__":
    patch_size = 3
    in_channels = 4
    out_channels = 8           # opg = 2: exercises the grouped-conv dedup/broadcast
    N, H, W = 2, 16, 16
    K = 2 * patch_size + 1

    key = jax.random.PRNGKey(0)
    x = jax.random.normal(key, (N, in_channels, H, W), dtype=jnp.float32)

    out = round_conv(
        x,
        patch_size=patch_size,
        in_channels=in_channels,
        out_channels=out_channels,
    )
    out = jax.block_until_ready(out)

    # Reference: XLA grouped conv with the same frozen disc weight (full f32).
    weight = jnp.asarray(make_round_kernel(patch_size))     # (K, K)
    w4 = jnp.broadcast_to(weight, (out_channels, 1, K, K))
    ref = jax.lax.conv_general_dilated(
        x, w4,
        window_strides=(1, 1),
        padding=((patch_size, patch_size), (patch_size, patch_size)),
        dimension_numbers=("NCHW", "OIHW", "NCHW"),
        feature_group_count=in_channels,
        precision=jax.lax.Precision.HIGHEST,
    )
    assert out.shape == (N, out_channels, H, W)
    assert np.allclose(np.asarray(out), np.asarray(ref), atol=1e-4, rtol=1e-4)

    print("KERNEL_OK")
</pallas_src>

<mosaic_0001>
module attributes {stable_mosaic.version = 11 : i64} {
  func.func @conv_kernel(%arg0: i32, %arg1: memref<4x16x16xf32, #tpu.memory_space<vmem>>, %arg2: memref<4x16x128xf32, #tpu.memory_space<vmem>>, %arg3: memref<4x22x134xf32, #tpu.memory_space<vmem>>) attributes {dimension_semantics = [#tpu.dimension_semantics<parallel>], iteration_bounds = array<i64: 2>, scalar_prefetch = 0 : i64, scratch_operands = 1 : i64, tpu.core_type = #tpu.core_type<tc>, window_params = [{transform_indices = @transform_0, window_bounds = array<i64: 4, 16, 16>}, {transform_indices = @transform_1, window_bounds = array<i64: 4, 16, 128>}]} {
    %cst = arith.constant 0.000000e+00 : f32
    %0 = vector.broadcast %cst : f32 to vector<4x22x134xf32>
    %c0 = arith.constant 0 : index
    %c0_0 = arith.constant 0 : index
    %c0_1 = arith.constant 0 : index
    %1 = vector.load %arg3[%c0, %c0_0, %c0_1] : memref<4x22x134xf32, #tpu.memory_space<vmem>>, vector<4x22x134xf32>
    tpu.vector_store %arg3[%c0, %c0_0, %c0_1], %0 {strides = array<i32>} : memref<4x22x134xf32, #tpu.memory_space<vmem>>, vector<4x22x134xf32>,
    %c0_2 = arith.constant 0 : index
    %c0_3 = arith.constant 0 : index
    %c0_4 = arith.constant 0 : index
    %2 = vector.load %arg1[%c0_2, %c0_3, %c0_4] : memref<4x16x16xf32, #tpu.memory_space<vmem>>, vector<4x16x16xf32>
    %c0_5 = arith.constant 0 : index
    %c3 = arith.constant 3 : index
    %c3_6 = arith.constant 3 : index
    %3 = vector.load %arg3[%c0_5, %c3, %c3_6] : memref<4x22x134xf32, #tpu.memory_space<vmem>>, vector<4x16x16xf32>
    tpu.vector_store %arg3[%c0_5, %c3, %c3_6], %2 {strides = array<i32>} : memref<4x22x134xf32, #tpu.memory_space<vmem>>, vector<4x16x16xf32>,
    %c0_7 = arith.constant 0 : index
    %c0_8 = arith.constant 0 : index
    %c3_9 = arith.constant 3 : index
    %4 = vector.load %arg3[%c0_7, %c0_8, %c3_9] : memref<4x22x134xf32, #tpu.memory_space<vmem>>, vector<4x16x128xf32>
    %c0_10 = arith.constant 0 : index
    %c1 = arith.constant 1 : index
    %c1_11 = arith.constant 1 : index
    %5 = vector.load %arg3[%c0_10, %c1, %c1_11] : memref<4x22x134xf32, #tpu.memory_space<vmem>>, vector<4x16x128xf32>
    %6 = arith.addf %4, %5 : vector<4x16x128xf32>
    %c0_12 = arith.constant 0 : index
    %c1_13 = arith.constant 1 : index
    %c2 = arith.constant 2 : index
    %7 = vector.load %arg3[%c0_12, %c1_13, %c2] : memref<4x22x134xf32, #tpu.memory_space<vmem>>, vector<4x16x128xf32>
    %8 = arith.addf %6, %7 : vector<4x16x128xf32>
    %c0_14 = arith.constant 0 : index
    %c1_15 = arith.constant 1 : index
    %c3_16 = arith.constant 3 : index
    %9 = vector.load %arg3[%c0_14, %c1_15, %c3_16] : memref<4x22x134xf32, #tpu.memory_space<vmem>>, vector<4x16x128xf32>
    %10 = arith.addf %8, %9 : vector<4x16x128xf32>
    %c0_17 = arith.constant 0 : index
    %c1_18 = arith.constant 1 : index
    %c4 = arith.constant 4 : index
    %11 = vector.load %arg3[%c0_17, %c1_18, %c4] : memref<4x22x134xf32, #tpu.memory_space<vmem>>, vector<4x16x128xf32>
    %12 = arith.addf %10, %11 : vector<4x16x128xf32>
    %c0_19 = arith.constant 0 : index
    %c1_20 = arith.constant 1 : index
    %c5 = arith.constant 5 : index
    %13 = vector.load %arg3[%c0_19, %c1_20, %c5] : memref<4x22x134xf32, #tpu.memory_space<vmem>>, vector<4x16x128xf32>
    %14 = arith.addf %12, %13 : vector<4x16x128xf32>
    %c0_21 = arith.constant 0 : index
    %c2_22 = arith.constant 2 : index
    %c1_23 = arith.constant 1 : index
    %15 = vector.load %arg3[%c0_21, %c2_22, %c1_23] : memref<4x22x134xf32, #tpu.memory_space<vmem>>, vector<4x16x128xf32>
    %16 = arith.addf %14, %15 : vector<4x16x128xf32>
    %c0_24 = arith.constant 0 : index
    %c2_25 = arith.constant 2 : index
    %c2_26 = arith.constant 2 : index
    %17 = vector.load %arg3[%c0_24, %c2_25, %c2_26] : memref<4x22x134xf32, #tpu.memory_space<vmem>>, vector<4x16x128xf32>
    %18 = arith.addf %16, %17 : vector<4x16x128xf32>
    %c0_27 = arith.constant 0 : index
    %c2_28 = arith.constant 2 : index
    %c3_29 = arith.constant 3 : index
    %19 = vector.load %arg3[%c0_27, %c2_28, %c3_29] : memref<4x22x134xf32, #tpu.memory_space<vmem>>, vector<4x16x128xf32>
    %20 = arith.addf %18, %19 : vector<4x16x128xf32>
    %c0_30 = arith.constant 0 : index
    %c2_31 = arith.constant 2 : index
    %c4_32 = arith.constant 4 : index
    %21 = vector.load %arg3[%c0_30, %c2_31, %c4_32] : memref<4x22x134xf32, #tpu.memory_space<vmem>>, vector<4x16x128xf32>
    %22 = arith.addf %20, %21 : vector<4x16x128xf32>
    %c0_33 = arith.constant 0 : index
    %c2_34 = arith.constant 2 : index
    %c5_35 = arith.constant 5 : index
    %23 = vector.load %arg3[%c0_33, %c2_34, %c5_35] : memref<4x22x134xf32, #tpu.memory_space<vmem>>, vector<4x16x128xf32>
    %24 = arith.addf %22, %23 : vector<4x16x128xf32>
    %c0_36 = arith.constant 0 : index
    %c3_37 = arith.constant 3 : index
    %c0_38 = arith.constant 0 : index
    %25 = vector.load %arg3[%c0_36, %c3_37, %c0_38] : memref<4x22x134xf32, #tpu.memory_space<vmem>>, vector<4x16x128xf32>
    %26 = arith.addf %24, %25 : vector<4x16x128xf32>
    %c0_39 = arith.constant 0 : index
    %c3_40 = arith.constant 3 : index
    %c1_41 = arith.constant 1 : index
    %27 = vector.load %arg3[%c0_39, %c3_40, %c1_41] : memref<4x22x134xf32, #tpu.memory_space<vmem>>, vector<4x16x128xf32>
    %28 = arith.addf %26, %27 : vector<4x16x128xf32>
    %c0_42 = arith.constant 0 : index
    %c3_43 = arith.constant 3 : index
    %c2_44 = arith.constant 2 : index
    %29 = vector.load %arg3[%c0_42, %c3_43, %c2_44] : memref<4x22x134xf32, #tpu.memory_space<vmem>>, vector<4x16x128xf32>
    %30 = arith.addf %28, %29 : vector<4x16x128xf32>
    %c0_45 = arith.constant 0 : index
    %c3_46 = arith.constant 3 : index
    %c3_47 = arith.constant 3 : index
    %31 = vector.load %arg3[%c0_45, %c3_46, %c3_47] : memref<4x22x134xf32, #tpu.memory_space<vmem>>, vector<4x16x128xf32>
    %32 = arith.addf %30, %31 : vector<4x16x128xf32>
    %c0_48 = arith.constant 0 : index
    %c3_49 = arith.constant 3 : index
    %c4_50 = arith.constant 4 : index
    %33 = vector.load %arg3[%c0_48, %c3_49, %c4_50] : memref<4x22x134xf32, #tpu.memory_space<vmem>>, vector<4x16x128xf32>
    %34 = arith.addf %32, %33 : vector<4x16x128xf32>
    %c0_51 = arith.constant 0 : index
    %c3_52 = arith.constant 3 : index
    %c5_53 = arith.constant 5 : index
    %35 = vector.load %arg3[%c0_51, %c3_52, %c5_53] : memref<4x22x134xf32, #tpu.memory_space<vmem>>, vector<4x16x128xf32>
    %36 = arith.addf %34, %35 : vector<4x16x128xf32>
    %c0_54 = arith.constant 0 : index
    %c3_55 = arith.constant 3 : index
    %c6 = arith.constant 6 : index
    %37 = vector.load %arg3[%c0_54, %c3_55, %c6] : memref<4x22x134xf32, #tpu.memory_space<vmem>>, vector<4x16x128xf32>
    %38 = arith.addf %36, %37 : vector<4x16x128xf32>
    %c0_56 = arith.constant 0 : index
    %c4_57 = arith.constant 4 : index
    %c1_58 = arith.constant 1 : index
    %39 = vector.load %arg3[%c0_56, %c4_57, %c1_58] : memref<4x22x134xf32, #tpu.memory_space<vmem>>, vector<4x16x128xf32>
    %40 = arith.addf %38, %39 : vector<4x16x128xf32>
    %c0_59 = arith.constant 0 : index
    %c4_60 = arith.constant 4 : index
    %c2_61 = arith.constant 2 : index
    %41 = vector.load %arg3[%c0_59, %c4_60, %c2_61] : memref<4x22x134xf32, #tpu.memory_space<vmem>>, vector<4x16x128xf32>
    %42 = arith.addf %40, %41 : vector<4x16x128xf32>
    %c0_62 = arith.constant 0 : index
    %c4_63 = arith.constant 4 : index
    %c3_64 = arith.constant 3 : index
    %43 = vector.load %arg3[%c0_62, %c4_63, %c3_64] : memref<4x22x134xf32, #tpu.memory_space<vmem>>, vector<4x16x128xf32>
    %44 = arith.addf %42, %43 : vector<4x16x128xf32>
    %c0_65 = arith.constant 0 : index
    %c4_66 = arith.constant 4 : index
    %c4_67 = arith.constant 4 : index
    %45 = vector.load %arg3[%c0_65, %c4_66, %c4_67] : memref<4x22x134xf32, #tpu.memory_space<vmem>>, vector<4x16x128xf32>
    %46 = arith.addf %44, %45 : vector<4x16x128xf32>
    %c0_68 = arith.constant 0 : index
    %c4_69 = arith.constant 4 : index
    %c5_70 = arith.constant 5 : index
    %47 = vector.load %arg3[%c0_68, %c4_69, %c5_70] : memref<4x22x134xf32, #tpu.memory_space<vmem>>, vector<4x16x128xf32>
    %48 = arith.addf %46, %47 : vector<4x16x128xf32>
    %c0_71 = arith.constant 0 : index
    %c5_72 = arith.constant 5 : index
    %c1_73 = arith.constant 1 : index
    %49 = vector.load %arg3[%c0_71, %c5_72, %c1_73] : memref<4x22x134xf32, #tpu.memory_space<vmem>>, vector<4x16x128xf32>
    %50 = arith.addf %48, %49 : vector<4x16x128xf32>
    %c0_74 = arith.constant 0 : index
    %c5_75 = arith.constant 5 : index
    %c2_76 = arith.constant 2 : index
    %51 = vector.load %arg3[%c0_74, %c5_75, %c2_76] : memref<4x22x134xf32, #tpu.memory_space<vmem>>, vector<4x16x128xf32>
    %52 = arith.addf %50, %51 : vector<4x16x128xf32>
    %c0_77 = arith.constant 0 : index
    %c5_78 = arith.constant 5 : index
    %c3_79 = arith.constant 3 : index
    %53 = vector.load %arg3[%c0_77, %c5_78, %c3_79] : memref<4x22x134xf32, #tpu.memory_space<vmem>>, vector<4x16x128xf32>
    %54 = arith.addf %52, %53 : vector<4x16x128xf32>
    %c0_80 = arith.constant 0 : index
    %c5_81 = arith.constant 5 : index
    %c4_82 = arith.constant 4 : index
    %55 = vector.load %arg3[%c0_80, %c5_81, %c4_82] : memref<4x22x134xf32, #tpu.memory_space<vmem>>, vector<4x16x128xf32>
    %56 = arith.addf %54, %55 : vector<4x16x128xf32>
    %c0_83 = arith.constant 0 : index
    %c5_84 = arith.constant 5 : index
    %c5_85 = arith.constant 5 : index
    %57 = vector.load %arg3[%c0_83, %c5_84, %c5_85] : memref<4x22x134xf32, #tpu.memory_space<vmem>>, vector<4x16x128xf32>
    %58 = arith.addf %56, %57 : vector<4x16x128xf32>
    %c0_86 = arith.constant 0 : index
    %c6_87 = arith.constant 6 : index
    %c3_88 = arith.constant 3 : index
    %59 = vector.load %arg3[%c0_86, %c6_87, %c3_88] : memref<4x22x134xf32, #tpu.memory_space<vmem>>, vector<4x16x128xf32>
    %60 = arith.addf %58, %59 : vector<4x16x128xf32>
    %c0_89 = arith.constant 0 : index
    %c0_90 = arith.constant 0 : index
    %c0_91 = arith.constant 0 : index
    %61 = vector.load %arg2[%c0_89, %c0_90, %c0_91] : memref<4x16x128xf32, #tpu.memory_space<vmem>>, vector<4x16x128xf32>
    tpu.vector_store %arg2[%c0_89, %c0_90, %c0_91], %60 {strides = array<i32>} : memref<4x16x128xf32, #tpu.memory_space<vmem>>, vector<4x16x128xf32>,
    return
  }
  func.func @transform_0(%arg0: i32) -> (i32, i32, i32) {
    %c0_i32 = arith.constant 0 : i32
    %c0_i32_0 = arith.constant 0 : i32
    %c0_i32_1 = arith.constant 0 : i32
    return %arg0, %c0_i32, %c0_i32_0 : i32, i32, i32
  }
  func.func @transform_1(%arg0: i32) -> (i32, i32, i32) {
    %c0_i32 = arith.constant 0 : i32
    %c0_i32_0 = arith.constant 0 : i32
    %c0_i32_1 = arith.constant 0 : i32
    return %arg0, %c0_i32, %c0_i32_0 : i32, i32, i32
  }
}

</mosaic_0001>

<bundles_post_ra>
// kernel: tpu_custom_call.1
= control target key start
LH: loop header
LB: loop body
LE: loop exit
PB: predicated region body
PF: predicated region fallthrough
CT: control target
= control target key end

     0   :  { %6 = vsyncpa [#allocation4], 0  ;;  %s5358_s0 = inlined_call_operand.hbm [shape: f32[8,16,16], index: 0, kind: input, shape index: {}]   ;;  %s5359_s1 = inlined_call_operand.hbm [shape: f32[8,16,128], index: 1, kind: output, shape index: {}]  }
   0x1   :  { %8 = vsyncpa [#allocation4 + $0x1], 0 }
   0x2   :  { %9 = vsyncpa [#allocation5], 0 }
   0x3   :  { %11 = vsyncpa [#allocation5 + $0x1], 0  ;;  %s2830_s6 = smov 0   ;;  %s2832_s7 = smov 0  }
   0x4   :  { %s2834_s8 = smov 0   ;;  %s2836_s9 = smov 0  }
   0x5 LB: > { %s2851_s10 = sadd.s32 4294967295, %s2807_s9   ;;  %s2618_s11 = sadd.s32 4294967294, %s2807_s9   ;;  %s2807_s9 = sphi %s2836_s9, %s6041_s9   ;;  %s2803_s8 = sphi %s2834_s8, %s6040_s8   ;;  %s2799_s7 = sphi %s2832_s7, %s6039_s7   ;;  %s2795_s6 = sphi %s2830_s6, %s6038_s6  }
   0x6   : > { %s2855_s12 = sadd.s32 1, %s2807_s9   ;;  %s24_s13 = sadd.s32 1, %s2803_s8 }
   0x7   : > { %s21_s14 = ssub.s32 %s2807_s9, %s2855_s12  ;;  %p31_p0 = scmp.ne.s32.totalorder %s2803_s8, %s2799_s7 }
   0x8   : > { %p22_p1 = scmp.eq.s32.totalorder %s21_s14, 0  ;;  %p32_p2 = scmp.eq.s32.totalorder %s2807_s9, 0 }
   0x9   : > { %p37_p3 = scmp.ne.s32.totalorder %s2799_s7, %s2795_s6  ;;  %p38_p4 = scmp.eq.s32.totalorder %s2851_s10, 0 }
   0xa   : > { %s2867_s15 = scalar_select %p22_p1, %s2803_s8, %s24_s13  }
   0xb   : > { %p2869_p5 = por %p32_p2, %p31_p0  ;;  %p2873_p6 = por %p38_p4, %p37_p3 }
   0xc   : > { %p61_p7 = scmp.eq.s32.totalorder %s2851_s10, 1  ;;  %p67_p8 = scmp.eq.s32.totalorder %s2618_s11, 1 }
   0xd   : > { %p2650_p10 = scmp.lt.s32.totalorder %s2807_s9, 2  ;;  %s87_s20 = sand.u32 1, %s2803_s8  }
   0xe   : > { %p2880_p11 = por %p61_p7, %p31_p0  ;;  %p2884_p12 = por %p67_p8, %p37_p3 }
   0xf   : > { %s2635_s21 = sshll.u32 %s2807_s9, 6  ;;  %s2621_s22 = sshll.u32 %s87_s20, 6 }
  0x10   : > { %s97_s25 = scalar_lea.hbm %s5358_s0, %s2635_s21  ;;  %s91_s27 = scalar_lea.vmem [#allocation3], %s2621_s22 }
  0x11   : > { %s98_s26 = sshll.u32 %s97_s25, 4  ;;  %s100_s28 = sshll.u32 %s91_s27, 4  ;;  %s99_s26 = int_to_ptr.hbm [resolvable:$true] %s98_s26  ;;  %s101_s28 = int_to_ptr.vmem [resolvable:$true] %s100_s28 }
  0x12   : > { %p2895_p13 = pnand %p2650_p10, %p2869_p5  ;;  %p2625_p0 = scmp.ge.s32.totalorder %s2807_s9, 1 }
  0x13   : > { %p108_p1 = scmp.lt.s32.totalorder %s2807_s9, 3  ;;  %s88_s30 = scalar_lea.sflag [#allocation4], %s87_s20 }
  0x14   : > { %s2711_s2 = sshra.s32 %s99_s26, 4  ;;  %p2715_p3 = pneg %p2895_p13  ;;  %s2712_s2 = int_to_ptr.hbm [resolvable:$true] %s2711_s2 }
  0x15   : > { %s2713_s3 = scalar_lea.hbm %s2712_s2, 64  ;;  %s2718_s11 = scalar_lea.hbm %s5358_s0, 128 }
  0x16   : > { %p2714_p2 = scmp.ne.s32.totalorder %s2712_s2, %s2713_s3  ;;  %p2719_p5 = scmp.lt.s32.totalorder %s2712_s2, %s5358_s0 }
  0x17   : > { %p2720_p8 = scmp.lt.s32.totalorder %s2718_s11, %s2713_s3 }
  0x18   : > { %p2716_p4 = pnand %p2715_p3, %p2714_p2 }
  0x19   : > { %p2721_p10 = por %p2720_p8, %p2719_p5 }
  0x1a   : > { %p2717_p7 = pneg %p2716_p4 }
  0x1c   : > { %p2722_p9 = pnand %p2721_p10, %p2717_p7 }
  0x1e   : > { %2725 = shalt.err (!%p2722_p9)
}
  0x1f   : > { %s2809_s16 = smov 128   ;;  %s2810_s20 = smov 8  }
  0x20   : > { %2645 = dma.hbm_to_vmem [thread:$0]  (!%p2895_p13), %s99_s26, 1024, %s101_s28, %s88_s30, %s2809_s16, %s2809_s16, %s2810_s20  }
  0x21   : > { %p109_p2 = pnand %p2625_p0, %p108_p1 }
  0x23   : > { %112 = sbr.rel (%p109_p2) target bundleno = 1280 (0x500), region = 24 }
  0x28   : > { %s2916_s21 = sand.u32 1, %s2799_s7  }
  0x29   : > { %s2626_s22 = sshll.u32 %s2916_s21, 6  ;;  %s115_s23 = scalar_lea.sflag [#allocation4], %s2916_s21 }
  0x2a   : > { %s2922_s24 = scalar_lea.vmem [#allocation3], %s2626_s22 }
  0x2b   : > { %2786 = dma.done.wait (%p2873_p6), %s115_s23, 1024  }
  0x2c   : > { %2788 = vsyncadd (%p2873_p6), %s115_s23, 4294966272  ;;  %vm141_vm0 = vcmask 48128   ;;  %v2811_v0 = vmov 0.0   ;;  %v167_v1 = vld [vmem:[%s2922_s24 + $0x8] sm:$0xff]  ;;  %v166_v2 = vld [vmem:[%s2922_s24] sm:$0xff]  ;;  %s2812_s17 = smov 3  }
  0x2d   : > { %149 = vst.msk [vmem:[#allocation2 + $0x38] sm:$0xff] %vm141_vm0, %v2811_v0  ;;  %v184_v3 = vrot.slane %v167_v1, 5  ;;  %v183_v4 = vrot.slane %v166_v2, 5  ;;  %v169_v5 = vld [vmem:[%s2922_s24 + $0x18] sm:$0xff]  ;;  %v168_v7 = vld [vmem:[%s2922_s24 + $0x10] sm:$0xff]  ;;  %vm182_vm1 = vcmask 1042432  }
  0x2e   : > { %151 = vst.msk [vmem:[#allocation2 + $0x48] sm:$0xff] %vm141_vm0, %v2811_v0  ;;  %v187_v6 = vrot.slane %v169_v5, 5  ;;  %v186_v8 = vrot.slane %v168_v7, 5  ;;  %v170_v10 = vld [vmem:[%s2922_s24 + $0x20] sm:$0xff]  ;;  %v171_v11 = vld [vmem:[%s2922_s24 + $0x28] sm:$0xff]  ;;  %vm146_vm2 = vcmask 46080  }
  0x2f   : > { %140 = vst [vmem:[#allocation2] sm:$0xff] %v2811_v0  ;;  %199 = vrot.lane.b32.xlu1 %v184_v3, %s2812_s17  ;;  %195 = vrot.lane.b32.xlu0 %v183_v4, %s2812_s17  ;;  %v185_v9 = vsel %vm182_vm1, %v183_v4, %v184_v3  ;;  %v189_v13 = vrot.slane %v170_v10, 5  ;;  %v190_v14 = vrot.slane %v171_v11, 5  ;;  %v172_v16 = vld [vmem:[%s2922_s24 + $0x30] sm:$0xff]  ;;  %v173_v17 = vld [vmem:[%s2922_s24 + $0x38] sm:$0xff]  ;;  %vm302_vm3 = vcmask 1046528  }
  0x30   : > { %142 = vst.msk [vmem:[#allocation2 + $0x8] sm:$0xff] %vm141_vm0, %v2811_v0  ;;  %205 = vrot.lane.b32.xlu2 %v187_v6, %s2812_s17  ;;  %v188_v12 = vsel %vm182_vm1, %v186_v8, %v187_v6  ;;  %v192_v18 = vrot.slane %v172_v16, 5  ;;  %v193_v19 = vrot.slane %v173_v17, 5  ;;  %s2813_s25 = smov 2   ;;  %s2814_s26 = smov 1   ;;  %vm235_vm4 = vcmask 149528  }
  0x31   : > { %143 = vst [vmem:[#allocation2 + $0x10] sm:$0xff] %v2811_v0  ;;  %v191_v15 = vsel %vm182_vm1, %v189_v13, %v190_v14  ;;  %s2815_s27 = smov 127   ;;  %vm233_vm5 = vcmask 154648   ;;  %vm231_vm6 = vcmask 154651   ;;  %s2816_s28 = smov 126   ;;  %vm699_vm7 = vcmask 1045504  }
  0x32   : > { %144 = vst.msk [vmem:[#allocation2 + $0x18] sm:$0xff] %vm141_vm0, %v2811_v0  ;;  %v194_v20 = vsel %vm182_vm1, %v192_v18, %v193_v19  ;;  %vm1076_vm8 = vcmask 1044480   ;;  %s2817_s29 = smov 125   ;;  %vm1598_vm9 = vcmask 1043456   ;;  %vm375_vm10 = vcmask 15360   ;;  %s5307_s30 = scalar_lea.vmem [#allocation6], %s2626_s22 }
  0x33   : > { %145 = vst [vmem:[#allocation2 + $0x20] sm:$0x3f] %v2811_v0  ;;  %vm448_vm11 = vcmask 7168   ;;  %vm553_vm12 = vcmask 1039360   ;;  %vm626_vm13 = vcmask 1031168   ;;  %vm1525_vm14 = vcmask 1022976  }
  0x34   : > { %148 = vst [vmem:[#allocation2 + $0x30] sm:$0xff] %v2811_v0  ;;  %v267_v25 = vld [vmem:[#allocation2 + $0x38] sm:$0xfe]  ;;  %vm2383_vm15 = vcmask 1041408   ;;  %s2637_s2 = sshll.u32 %s2851_s10, 6  ;;  %s2542_s11 = sshll.u32 %s5307_s30, 4  ;;  %s2543_s11 = int_to_ptr.vmem [resolvable:$true] %s2542_s11 }
  0x35   : > { %150 = vst [vmem:[#allocation2 + $0x40] sm:$0xff] %v2811_v0  ;;  %v2959_v24 = vld [vmem:[#allocation2 + $0x48] sm:$0xff]  ;;  %v316_v29 = vrot.slane %v267_v25, 1  ;;  %s2541_s5 = scalar_lea.hbm %s5359_s1, %s2637_s2  ;;  %s2529_s10 = scalar_lea.sflag [#allocation5], %s2916_s21 }
  0x36   : > { %152 = vst [vmem:[#allocation2 + $0x50] sm:$0x3f] %v2811_v0  ;;  %v317_v30 = vrot.slane %v2959_v24, 1  ;;  %s2544_s13 = sshll.u32 %s2541_s5, 4  ;;  %s2761_s23 = scalar_lea.hbm %s5359_s1, 128  ;;  %s2545_s13 = int_to_ptr.hbm [resolvable:$true] %s2544_s13 }
  0x37   : > { %154 = vst [vmem:[#allocation2 + $0x60] sm:$0xff] %v2811_v0  ;;  %201 = vrot.lane.b32.xlu1 %v186_v8, %s2812_s17  ;;  %197 = vrot.lane.b32.xlu0 %v185_v9, %s2812_s17  ;;  %v263_v23 = vld [vmem:[#allocation2 + $0x8] sm:$0xfe]  ;;  %s2755_s14 = sshra.s32 %s2545_s13, 4  ;;  %s2756_s14 = int_to_ptr.hbm [resolvable:$true] %s2755_s14 }
  0x38   : > { %155 = vst.msk [vmem:[#allocation2 + $0x68] sm:$0xff] %vm141_vm0, %v2811_v0  ;;  %203 = vrot.lane.b32.xlu2 %v188_v12, %s2812_s17  ;;  %v306_v28 = vrot.slane %v263_v23, 1  ;;  %v2973_v33 = vsel %vm302_vm3, %v316_v29, %v317_v30  ;;  %s2757_s16 = scalar_lea.hbm %s2756_s14, 64  ;;  %p2762_p0 = scmp.lt.s32.totalorder %s2756_s14, %s5359_s1 }
  0x39   : > { %156 = vst [vmem:[#allocation2 + $0x70] sm:$0xff] %v2811_v0  ;;  %v2957_v21 = vld [vmem:[#allocation2 + $0x18] sm:$0xff]  ;;  %p2758_p6 = scmp.ne.s32.totalorder %s2756_s14, %s2757_s16  ;;  %p2763_p1 = scmp.lt.s32.totalorder %s2761_s23, %s2757_s16 }
  0x3a   : > { %157 = vst.msk [vmem:[#allocation2 + $0x78] sm:$0xff] %vm141_vm0, %v2811_v0  ;;  %v307_v26 = vrot.slane %v2957_v21, 1 }
  0x3b   : > { %158 = vst [vmem:[#allocation2 + $0x80] sm:$0x3f] %v2811_v0  ;;  %p2759_p9 = pnand %p2758_p6, %p2880_p11  ;;  %p2764_p3 = por %p2763_p1, %p2762_p0 }
  0x3c   : > { %160 = vst [vmem:[#allocation2 + $0x90] sm:$0xff] %v2811_v0  ;;  %v2970_v32 = vsel %vm302_vm3, %v306_v28, %v307_v26 }
  0x3d   : > { %161 = vst.msk [vmem:[#allocation2 + $0x98] sm:$0xff] %vm141_vm0, %v2811_v0  ;;  %p2760_p13 = pneg %p2759_p9 }
  0x3e   : > { %162 = vst [vmem:[#allocation2 + $0xa0] sm:$0xff] %v2811_v0 }
  0x3f   : > { %163 = vst.msk [vmem:[#allocation2 + $0xa8] sm:$0xff] %vm141_vm0, %v2811_v0  ;;  %209 = vrot.lane.b32.xlu1 %v191_v15, %s2812_s17  ;;  %207 = vrot.lane.b32.xlu0 %v189_v13, %s2812_s17  ;;  %v271_v35 = vld [vmem:[#allocation2 + $0x68] sm:$0xfe]  ;;  %p2765_p4 = pnand %p2764_p3, %p2760_p13 }
  0x40   : > { %164 = vst [vmem:[#allocation2 + $0xb0] sm:$0x3f] %v2811_v0  ;;  %211 = vrot.lane.b32.xlu2 %v190_v14, %s2812_s17  ;;  %v326_v39 = vrot.slane %v271_v35, 1 }
  0x41   : > { %147 = vst.msk [vmem:[#allocation2 + $0x28] sm:$0x3f] %vm146_vm2, %v2811_v0  ;;  %v2975_v34 = vld [vmem:[#allocation2 + $0x78] sm:$0xff] }
  0x42   : > { %153 = vst.msk [vmem:[#allocation2 + $0x58] sm:$0x3f] %vm146_vm2, %v2811_v0  ;;  %v327_v38 = vrot.slane %v2975_v34, 1 }
  0x43   : > { %159 = vst.msk [vmem:[#allocation2 + $0x88] sm:$0x3f] %vm146_vm2, %v2811_v0 }
  0x44   : > { %165 = vst.msk [vmem:[#allocation2 + $0xb8] sm:$0x3f] %vm146_vm2, %v2811_v0  ;;  %v2985_v42 = vsel %vm302_vm3, %v326_v39, %v327_v38  ;;  %v275_v47 = vld [vmem:[#allocation2 + $0x98] sm:$0xfe] }
  0x45   : > { %5532 = vst [vmem:[#allocation10_spill] sm:$0xff] %v2970_v32  ;;  %v336_v50 = vrot.slane %v275_v47, 1 }
  0x46   : > { %5533 = vst [vmem:[#allocation11_spill] sm:$0xff] %v2985_v42  ;;  %v2993_v45 = vld [vmem:[#allocation2 + $0xa8] sm:$0xff] }
  0x47   : > { %215 = vrot.lane.b32.xlu1 %v194_v20, %s2812_s17  ;;  %213 = vrot.lane.b32.xlu0 %v192_v18, %s2812_s17  ;;  %v337_v48 = vrot.slane %v2993_v45, 1 }
  0x48   : > { %v265_v22 = vld [vmem:[#allocation2 + $0x28] sm:$0x1]  ;;  %217 = vrot.lane.b32.xlu2 %v193_v19, %s2812_s17 }
  0x49   : > { %v311_v27 = vrot.slane %v265_v22, 1  ;;  %v269_v36 = vld [vmem:[#allocation2 + $0x58] sm:$0x1]  ;;  %v3006_v52 = vsel %vm302_vm3, %v336_v50, %v337_v48 }
  0x4a   : > { %v273_v37 = vld [vmem:[#allocation2 + $0x88] sm:$0x1]  ;;  %v321_v40 = vrot.slane %v269_v36, 1  ;;  %5537 = vst [vmem:[#allocation15_spill] sm:$0xff] %v3006_v52 }
  0x4b   : > { %v2967_v31 = vsel %vm302_vm3, %v307_v26, %v311_v27  ;;  %v331_v41 = vrot.slane %v273_v37, 1  ;;  %v277_v46 = vld [vmem:[#allocation2 + $0xb8] sm:$0x1] }
  0x4c   : > { %5531 = vst [vmem:[#allocation9_spill] sm:$0xff] %v2967_v31  ;;  %v2988_v43 = vsel %vm302_vm3, %v317_v30, %v321_v40  ;;  %v341_v49 = vrot.slane %v277_v46, 1 }
  0x4d   : > { %5534 = vst [vmem:[#allocation12_spill] sm:$0xff] %v2988_v43  ;;  %v2991_v44 = vsel %vm302_vm3, %v327_v38, %v331_v41 }
  0x4e   : > { %5535 = vst [vmem:[#allocation13_spill] sm:$0xff] %v2991_v44  ;;  %v3003_v51 = vsel %vm302_vm3, %v337_v48, %v341_v49 }
  0x4f   : > { %349 = vrot.lane.b32.xlu0 %v2967_v31, %s2813_s25  ;;  %345 = vrot.lane.b32.xlu1 %v2970_v32, %s2813_s25  ;;  %5536 = vst [vmem:[#allocation14_spill] sm:$0xff] %v3003_v51 }
  0x50   : > { %353 = vrot.lane.b32.xlu2 %v2973_v33, %s2813_s25 }
  0x57   : > { %361 = vrot.lane.b32.xlu0 %v2985_v42, %s2813_s25  ;;  %357 = vrot.lane.b32.xlu1 %v2988_v43, %s2813_s25 }
  0x58   : > { %365 = vrot.lane.b32.xlu2 %v2991_v44, %s2813_s25 }
  0x5f   : > { %373 = vrot.lane.b32.xlu0 %v3003_v51, %s2813_s25  ;;  %369 = vrot.lane.b32.xlu1 %v3006_v52, %s2813_s25 }
  0x60   : > { %418 = vrot.lane.b32.xlu2 %v2970_v32, %s2814_s26 }
  0x67   : > { %426 = vrot.lane.b32.xlu0 %v2973_v33, %s2814_s26  ;;  %422 = vrot.lane.b32.xlu1 %v2967_v31, %s2814_s26 }
  0x68   : > { %430 = vrot.lane.b32.xlu2 %v2988_v43, %s2814_s26 }
  0x6f   : > { %438 = vrot.lane.b32.xlu0 %v2991_v44, %s2814_s26  ;;  %434 = vrot.lane.b32.xlu1 %v2985_v42, %s2814_s26 }
  0x70   : > { %442 = vrot.lane.b32.xlu2 %v3006_v52, %s2814_s26 }
  0x77   : > { %523 = vrot.lane.b32.xlu0 %v2970_v32, %s2815_s27  ;;  %446 = vrot.lane.b32.xlu1 %v3003_v51, %s2814_s26 }
  0x78   : > { %527 = vrot.lane.b32.xlu2 %v2967_v31, %s2815_s27 }
  0x7f   : > { %535 = vrot.lane.b32.xlu0 %v2988_v43, %s2815_s27  ;;  %531 = vrot.lane.b32.xlu1 %v2973_v33, %s2815_s27 }
  0x80   : > { %539 = vrot.lane.b32.xlu2 %v2985_v42, %s2815_s27 }
  0x8a   : > { %v206_v53 = vpop.permute.xlu2 %205 }
  0x8b   : > { %239 = vst.msk [vmem:[#allocation2 + $0x50] sm:$0x7] %vm235_vm4, %v206_v53 }
  0x92   : > { %v204_v54 = vpop.permute.xlu2 %203  ;;  %v268_v13 = vld [vmem:[#allocation2 + $0x50] sm:$0x1] }
  0x93   : > { %238 = vst.msk [vmem:[#allocation2 + $0x40] sm:$0xff] %vm233_vm5, %v204_v54  ;;  %v319_v18 = vrot.slane %v268_v13, 1 }
  0x9a   : > { %v212_v55 = vpop.permute.xlu2 %211  ;;  %v3042_v61 = vld [vmem:[#allocation2 + $0x40] sm:$0xff] }
  0x9b   : > { %242 = vst.msk [vmem:[#allocation2 + $0x80] sm:$0x7] %vm235_vm4, %v212_v55  ;;  %v314_v5 = vrot.slane %v3042_v61, 1 }
  0x9d   : > { %v3079_v26 = vsel %vm302_vm3, %v314_v5, %v319_v18  ;;  %v670_v18 = vld [vmem:[#allocation2 + $0x28] sm:$0x3] }
  0x9e   : > { %5542 = vst [vmem:[#allocation20_spill] sm:$0xff] %v3079_v26 }
  0xa1   : > { %v200_v56 = vpop.permute.xlu1 %199  ;;  %v196_v57 = vpop.permute.xlu0 %195 }
  0xa2   : > { %236 = vst.msk [vmem:[#allocation2 + $0x20] sm:$0x7] %vm235_vm4, %v200_v56  ;;  %v218_v58 = vpop.permute.xlu2 %217  ;;  %v272_v12 = vld [vmem:[#allocation2 + $0x80] sm:$0x1] }
  0xa3   : > { %232 = vst.msk [vmem:[#allocation2] sm:$0xf8] %vm231_vm6, %v196_v57  ;;  %v329_v14 = vrot.slane %v272_v12, 1 }
  0xa4   : > { %245 = vst.msk [vmem:[#allocation2 + $0xb0] sm:$0x7] %vm235_vm4, %v218_v58 }
  0xa9   : > { %v202_v59 = vpop.permute.xlu1 %201  ;;  %v198_v60 = vpop.permute.xlu0 %197  ;;  %v264_v62 = vld [vmem:[#allocation2 + $0x20] sm:$0x1] }
  0xaa   : > { %237 = vst.msk [vmem:[#allocation2 + $0x30] sm:$0xf8] %vm231_vm6, %v202_v59  ;;  %v262_v63 = vld [vmem:[#allocation2] sm:$0xfe]  ;;  %v309_v7 = vrot.slane %v264_v62, 1  ;;  %v3100_v39 = vpop.permute.xlu2 %353 }
  0xab   : > { %234 = vst.msk [vmem:[#allocation2 + $0x10] sm:$0xff] %vm233_vm5, %v198_v60  ;;  %v303_v8 = vrot.slane %v262_v63, 1  ;;  %v276_v27 = vld [vmem:[#allocation2 + $0xb0] sm:$0x1]  ;;  %v667_v12 = vld [vmem:[#allocation2] sm:$0xfc] }
  0xac   : > { %v339_v28 = vrot.slane %v276_v27, 1 }
  0xb1   : > { %v210_v0 = vpop.permute.xlu1 %209  ;;  %v208_v1 = vpop.permute.xlu0 %207  ;;  %v266_v2 = vld [vmem:[#allocation2 + $0x30] sm:$0xfe] }
  0xb2   : > { %241 = vst.msk [vmem:[#allocation2 + $0x70] sm:$0xff] %vm233_vm5, %v210_v0  ;;  %v3045_v3 = vld [vmem:[#allocation2 + $0x10] sm:$0xff]  ;;  %v313_v4 = vrot.slane %v266_v2, 1  ;;  %v3108_v40 = vpop.permute.xlu2 %365 }
  0xb3   : > { %240 = vst.msk [vmem:[#allocation2 + $0x60] sm:$0xf8] %vm231_vm6, %v208_v1  ;;  %v304_v6 = vrot.slane %v3045_v3, 1 }
  0xb4   : > { %v3051_v9 = vsel %vm302_vm3, %v313_v4, %v314_v5  ;;  %v668_v4 = vld [vmem:[#allocation2 + $0x8] sm:$0xfc] }
  0xb5   : > { %v3054_v10 = vsel %vm302_vm3, %v304_v6, %v309_v7  ;;  %351 = vrot.lane.b32.xlu1 %v3051_v9, %s2813_s25  ;;  %v3059_v11 = vsel %vm302_vm3, %v303_v8, %v304_v6  ;;  %v703_v7 = vrot.slane %v668_v4, 2  ;;  %v704_v8 = vrot.slane %v2957_v21, 2 }
  0xb6   : > { %5538 = vst [vmem:[#allocation16_spill] sm:$0xff] %v3054_v10  ;;  %347 = vrot.lane.b32.xlu2 %v3054_v10, %s2813_s25  ;;  %343 = vrot.lane.b32.xlu0 %v3059_v11, %s2813_s25 }
  0xb7   : > { %5539 = vst [vmem:[#allocation17_spill] sm:$0xff] %v3059_v11 }
  0xb9   : > { %v216_v15 = vpop.permute.xlu1 %215  ;;  %v214_v16 = vpop.permute.xlu0 %213  ;;  %v3065_v17 = vld [vmem:[#allocation2 + $0x70] sm:$0xff] }
  0xba   : > { %244 = vst.msk [vmem:[#allocation2 + $0xa0] sm:$0xff] %vm233_vm5, %v216_v15  ;;  %v270_v19 = vld [vmem:[#allocation2 + $0x60] sm:$0xfe]  ;;  %v324_v20 = vrot.slane %v3065_v17, 1  ;;  %v3122_v41 = vpop.permute.xlu2 %418  ;;  %v700_v15 = vrot.slane %v667_v12, 2 }
  0xbb   : > { %243 = vst.msk [vmem:[#allocation2 + $0x90] sm:$0xf8] %vm231_vm6, %v214_v16  ;;  %v323_v22 = vrot.slane %v270_v19, 1  ;;  %v3217_v16 = vsel %vm699_vm7, %v703_v7, %v704_v8  ;;  %v711_v7 = vrot.slane %v3042_v61, 2 }
  0xbc   : > { %v3071_v23 = vsel %vm302_vm3, %v324_v20, %v329_v14  ;;  %v701_v14 = vrot.slane %v3045_v3, 2  ;;  %5551 = vst [vmem:[#allocation29_spill] sm:$0xff] %v3217_v16 }
  0xbd   : > { %5540 = vst [vmem:[#allocation18_spill] sm:$0xff] %v3071_v23  ;;  %v3074_v25 = vsel %vm302_vm3, %v323_v22, %v324_v20  ;;  %363 = vrot.lane.b32.xlu1 %v3071_v23, %s2813_s25  ;;  %v671_v20 = vld [vmem:[#allocation2 + $0x30] sm:$0xfc]  ;;  %v708_v22 = vrot.slane %v670_v18, 2 }
  0xbe   : > { %5541 = vst [vmem:[#allocation19_spill] sm:$0xff] %v3074_v25  ;;  %359 = vrot.lane.b32.xlu2 %v3074_v25, %s2813_s25  ;;  %355 = vrot.lane.b32.xlu0 %v3079_v26, %s2813_s25  ;;  %v3220_v19 = vsel %vm699_vm7, %v700_v15, %v701_v14  ;;  %v674_v15 = vld [vmem:[#allocation2 + $0x58] sm:$0x3] }
  0xbf   : > { %5552 = vst [vmem:[#allocation30_spill] sm:$0xff] %v3220_v19  ;;  %v3235_v4 = vsel %vm699_vm7, %v704_v8, %v708_v22  ;;  %v718_v22 = vrot.slane %v674_v15, 2  ;;  %v724_v15 = vrot.slane %v2975_v34, 2 }
  0xc0   : > { %5553 = vst [vmem:[#allocation31_spill] sm:$0xff] %v3235_v4 }
  0xc1   : > { %v3085_v29 = vld [vmem:[#allocation2 + $0xa0] sm:$0xff]  ;;  %v3124_v46 = vpop.permute.xlu1 %345  ;;  %v3126_v47 = vpop.permute.xlu0 %349 }
  0xc2   : > { %v334_v30 = vrot.slane %v3085_v29, 1  ;;  %v274_v35 = vld [vmem:[#allocation2 + $0x90] sm:$0xfe]  ;;  %v3134_v48 = vpop.permute.xlu2 %430 }
  0xc3   : > { %v333_v36 = vrot.slane %v274_v35, 1  ;;  %v669_v35 = vld [vmem:[#allocation2 + $0x20] sm:$0x3] }
  0xc4   : > { %v3089_v37 = vsel %vm302_vm3, %v334_v30, %v339_v28  ;;  %v706_v12 = vrot.slane %v669_v35, 2 }
  0xc5   : > { %5543 = vst [vmem:[#allocation21_spill] sm:$0xff] %v3089_v37  ;;  %416 = vrot.lane.b32.xlu1 %v3059_v11, %s2814_s26  ;;  %v3094_v38 = vsel %vm302_vm3, %v333_v36, %v334_v30  ;;  %v710_v36 = vrot.slane %v671_v20, 2  ;;  %v714_v20 = vrot.slane %v2959_v24, 2 }
  0xc6   : > { %5544 = vst [vmem:[#allocation22_spill] sm:$0xff] %v3094_v38  ;;  %371 = vrot.lane.b32.xlu2 %v3089_v37, %s2813_s25  ;;  %367 = vrot.lane.b32.xlu0 %v3094_v38, %s2813_s25  ;;  %v3244_v18 = vsel %vm699_vm7, %v701_v14, %v706_v12 }
  0xc7   : > { %5555 = vst [vmem:[#allocation33_spill] sm:$0xff] %v3244_v18  ;;  %v3258_v14 = vsel %vm699_vm7, %v714_v20, %v718_v22  ;;  %v675_v22 = vld [vmem:[#allocation2 + $0x60] sm:$0xfc] }
  0xc8   : > { %5556 = vst [vmem:[#allocation34_spill] sm:$0xff] %v3258_v14 }
  0xc9   : > { %v3136_v49 = vpop.permute.xlu1 %357  ;;  %v3138_v50 = vpop.permute.xlu0 %361 }
  0xca   : > { %v3146_v53 = vpop.permute.xlu2 %442 }
  0xcb   : > { %5545 = vst [vmem:[#allocation23_spill] sm:$0xff] %v3146_v53 }
  0xcd   : > { %428 = vrot.lane.b32.xlu1 %v3079_v26, %s2814_s26 }
  0xce   : > { %424 = vrot.lane.b32.xlu2 %v3051_v9, %s2814_s26  ;;  %420 = vrot.lane.b32.xlu0 %v3054_v10, %s2814_s26 }
  0xd1   : > { %v3150_v54 = vpop.permute.xlu1 %369  ;;  %v3156_v55 = vpop.permute.xlu0 %373 }
  0xd2   : > { %v3158_v56 = vpop.permute.xlu2 %527 }
  0xd3   : > { %5546 = vst [vmem:[#allocation24_spill] sm:$0xff] %v3158_v56 }
  0xd5   : > { %440 = vrot.lane.b32.xlu1 %v3094_v38, %s2814_s26 }
  0xd6   : > { %436 = vrot.lane.b32.xlu2 %v3071_v23, %s2814_s26  ;;  %432 = vrot.lane.b32.xlu0 %v3074_v25, %s2814_s26 }
  0xd9   : > { %v3166_v57 = vpop.permute.xlu1 %422  ;;  %v3168_v58 = vpop.permute.xlu0 %426 }
  0xda   : > { %v3176_v59 = vpop.permute.xlu2 %539 }
  0xdb   : > { %5547 = vst [vmem:[#allocation25_spill] sm:$0xff] %v3176_v59 }
  0xdd   : > { %525 = vrot.lane.b32.xlu1 %v3054_v10, %s2815_s27 }
  0xde   : > { %521 = vrot.lane.b32.xlu2 %v3059_v11, %s2815_s27  ;;  %444 = vrot.lane.b32.xlu0 %v3089_v37, %s2814_s26 }
  0xe1   : > { %v3178_v60 = vpop.permute.xlu1 %434  ;;  %v3180_v62 = vpop.permute.xlu0 %438 }
  0xe5   : > { %537 = vrot.lane.b32.xlu1 %v3074_v25, %s2815_s27 }
  0xe6   : > { %533 = vrot.lane.b32.xlu2 %v3079_v26, %s2815_s27  ;;  %529 = vrot.lane.b32.xlu0 %v3051_v9, %s2815_s27 }
  0xe9   : > { %v3190_v0 = vpop.permute.xlu1 %446  ;;  %v3192_v1 = vpop.permute.xlu0 %523 }
  0xea   : > { %5548 = vst [vmem:[#allocation26_spill] sm:$0xff] %v3192_v1  ;;  %v680_v1 = vld [vmem:[#allocation2 + $0x98] sm:$0xfc] }
  0xed   : > { %543 = vrot.lane.b32.xlu1 %v2991_v44, %s2815_s27 }
  0xee   : > { %545 = vrot.lane.b32.xlu2 %v3094_v38, %s2815_s27  ;;  %541 = vrot.lane.b32.xlu0 %v3071_v23, %s2815_s27 }
  0xf1   : > { %v3204_v5 = vpop.permute.xlu1 %531  ;;  %v3210_v6 = vpop.permute.xlu0 %535 }
  0xf2   : > { %5549 = vst [vmem:[#allocation27_spill] sm:$0xff] %v3204_v5 }
  0xf3   : > { %5550 = vst [vmem:[#allocation28_spill] sm:$0xff] %v3210_v6  ;;  %v720_v6 = vrot.slane %v675_v22, 2  ;;  %v734_v22 = vrot.slane %v2993_v45, 2 }
  0xf5   : > { %549 = vrot.lane.b32.xlu1 %v3089_v37, %s2815_s27 }
  0xf6   : > { %551 = vrot.lane.b32.xlu2 %v3003_v51, %s2815_s27  ;;  %547 = vrot.lane.b32.xlu0 %v3006_v52, %s2815_s27 }
  0xfd   : > { %596 = vrot.lane.b32.xlu1 %v2970_v32, %s2816_s28 }
  0xfe   : > { %598 = vrot.lane.b32.xlu2 %v3054_v10, %s2816_s28  ;;  %594 = vrot.lane.b32.xlu0 %v3059_v11, %s2816_s28  ;;  %v682_v11 = vld [vmem:[#allocation2 + $0xb8] sm:$0x3] }
 0x105   : > { %602 = vrot.lane.b32.xlu1 %v3051_v9, %s2816_s28 }
 0x106   : > { %604 = vrot.lane.b32.xlu2 %v2973_v33, %s2816_s28  ;;  %600 = vrot.lane.b32.xlu0 %v2967_v31, %s2816_s28  ;;  %v678_v31 = vld [vmem:[#allocation2 + $0x88] sm:$0x3] }
 0x10d   : > { %608 = vrot.lane.b32.xlu1 %v2988_v43, %s2816_s28 }
 0x10e   : > { %610 = vrot.lane.b32.xlu2 %v3074_v25, %s2816_s28  ;;  %606 = vrot.lane.b32.xlu0 %v3079_v26, %s2816_s28  ;;  %v673_v25 = vld [vmem:[#allocation2 + $0x50] sm:$0x3] }
 0x110   : > { %v3188_v63 = vpop.permute.xlu2 %347 }
 0x115   : > { %614 = vrot.lane.b32.xlu1 %v3071_v23, %s2816_s28 }
 0x116   : > { %616 = vrot.lane.b32.xlu2 %v2991_v44, %s2816_s28  ;;  %612 = vrot.lane.b32.xlu0 %v2985_v42, %s2816_s28 }
 0x118   : > { %v3200_v2 = vpop.permute.xlu2 %359 }
 0x11d   : > { %620 = vrot.lane.b32.xlu1 %v3006_v52, %s2816_s28  ;;  %v3239_v52 = vsel %vm699_vm7, %v710_v36, %v711_v7 }
 0x11e   : > { %622 = vrot.lane.b32.xlu2 %v3089_v37, %s2816_s28  ;;  %618 = vrot.lane.b32.xlu0 %v3094_v38, %s2816_s28  ;;  %v672_v37 = vld [vmem:[#allocation2 + $0x38] sm:$0xfc]  ;;  %5554 = vst [vmem:[#allocation32_spill] sm:$0xff] %v3239_v52  ;;  %v716_v38 = vrot.slane %v673_v25, 2  ;;  %v677_v25 = vld [vmem:[#allocation2 + $0x80] sm:$0x3] }
 0x11f   : > { %v713_v35 = vrot.slane %v672_v37, 2  ;;  %v726_v10 = vrot.slane %v677_v25, 2 }
 0x120   : > { %v3213_v13 = vpop.permute.xlu2 %371  ;;  %v3264_v56 = vsel %vm699_vm7, %v711_v7, %v716_v38  ;;  %v721_v7 = vrot.slane %v3065_v17, 2 }
 0x121   : > { %v3261_v12 = vsel %vm699_vm7, %v713_v35, %v714_v20  ;;  %5558 = vst [vmem:[#allocation36_spill] sm:$0xff] %v3264_v56 }
 0x122   : > { %5557 = vst [vmem:[#allocation35_spill] sm:$0xff] %v3261_v12  ;;  %v3289_v43 = vsel %vm699_vm7, %v720_v6, %v721_v7  ;;  %v731_v6 = vrot.slane %v3085_v29, 2 }
 0x123   : > { %5562 = vst [vmem:[#allocation40_spill] sm:$0xff] %v3289_v43 }
 0x125   : > { %740 = vrot.lane.b32.xlu1 %v3220_v19, %s2813_s25 }
 0x126   : > { %742 = vrot.lane.b32.xlu2 %v3217_v16, %s2813_s25  ;;  %624 = vrot.lane.b32.xlu0 %v3003_v51, %s2816_s28  ;;  %v676_v51 = vld [vmem:[#allocation2 + $0x68] sm:$0xfc] }
 0x127   : > { %v3228_v27 = vpop.permute.xlu1 %351  ;;  %v723_v37 = vrot.slane %v676_v51, 2  ;;  %v3284_v51 = vsel %vm699_vm7, %v721_v7, %v726_v10  ;;  %v728_v10 = vrot.slane %v678_v31, 2  ;;  %v738_v31 = vrot.slane %v682_v11, 2 }
 0x128   : > { %v3230_v28 = vpop.permute.xlu2 %424  ;;  %v3232_v30 = vpop.permute.xlu0 %343  ;;  %5561 = vst [vmem:[#allocation39_spill] sm:$0xff] %v3284_v51 }
 0x129   : > { %v3281_v42 = vsel %vm699_vm7, %v723_v37, %v724_v15  ;;  %v733_v37 = vrot.slane %v680_v1, 2  ;;  %v3307_v32 = vsel %vm699_vm7, %v724_v15, %v728_v10  ;;  %v681_v1 = vld [vmem:[#allocation2 + $0xb0] sm:$0x3] }
 0x12a   : > { %5560 = vst [vmem:[#allocation38_spill] sm:$0xff] %v3281_v42  ;;  %v736_v10 = vrot.slane %v681_v1, 2 }
 0x12b   : > { %v3304_v7 = vsel %vm699_vm7, %v733_v37, %v734_v22  ;;  %5565 = vst [vmem:[#allocation43_spill] sm:$0xff] %v3307_v32 }
 0x12c   : > { %5564 = vst [vmem:[#allocation42_spill] sm:$0xff] %v3304_v7 }
 0x12d   : > { %746 = vrot.lane.b32.xlu1 %v3235_v4, %s2813_s25 }
 0x12e   : > { %748 = vrot.lane.b32.xlu2 %v3239_v52, %s2813_s25  ;;  %744 = vrot.lane.b32.xlu0 %v3244_v18, %s2813_s25 }
 0x12f   : > { %v3250_v8 = vpop.permute.xlu1 %363 }
 0x130   : > { %v3253_v36 = vpop.permute.xlu2 %436  ;;  %v3255_v59 = vpop.permute.xlu0 %355 }
 0x135   : > { %752 = vrot.lane.b32.xlu1 %v3264_v56, %s2813_s25 }
 0x136   : > { %754 = vrot.lane.b32.xlu2 %v3258_v14, %s2813_s25  ;;  %750 = vrot.lane.b32.xlu0 %v3261_v12, %s2813_s25 }
 0x137   : > { %v3273_v20 = vpop.permute.xlu1 %416 }
 0x138   : > { %v3275_v35 = vpop.permute.xlu2 %521  ;;  %v3277_v38 = vpop.permute.xlu0 %367 }
 0x139   : > { %5559 = vst [vmem:[#allocation37_spill] sm:$0xff] %v3275_v35  ;;  %v679_v35 = vld [vmem:[#allocation2 + $0x90] sm:$0xfc] }
 0x13a   : > { %v730_v53 = vrot.slane %v679_v35, 2 }
 0x13c   : > { %v3310_v23 = vsel %vm699_vm7, %v730_v53, %v731_v6  ;;  %v3325_v53 = vsel %vm699_vm7, %v734_v22, %v738_v31 }
 0x13d   : > { %758 = vrot.lane.b32.xlu1 %v3281_v42, %s2813_s25  ;;  %5566 = vst [vmem:[#allocation44_spill] sm:$0xff] %v3310_v23 }
 0x13e   : > { %760 = vrot.lane.b32.xlu2 %v3284_v51, %s2813_s25  ;;  %756 = vrot.lane.b32.xlu0 %v3289_v43, %s2813_s25  ;;  %5569 = vst [vmem:[#allocation47_spill] sm:$0xff] %v3325_v53 }
 0x13f   : > { %v3295_v25 = vpop.permute.xlu1 %428 }
 0x140   : > { %v3298_v44 = vpop.permute.xlu2 %533  ;;  %v3300_v26 = vpop.permute.xlu0 %420 }
 0x141   : > { %5563 = vst [vmem:[#allocation41_spill] sm:$0xff] %v3298_v44  ;;  %v3330_v44 = vsel %vm699_vm7, %v731_v6, %v736_v10 }
 0x142   : > { %5570 = vst [vmem:[#allocation48_spill] sm:$0xff] %v3330_v44 }
 0x145   : > { %764 = vrot.lane.b32.xlu1 %v3310_v23, %s2813_s25 }
 0x146   : > { %766 = vrot.lane.b32.xlu2 %v3304_v7, %s2813_s25  ;;  %762 = vrot.lane.b32.xlu0 %v3307_v32, %s2813_s25 }
 0x147   : > { %v3318_v35 = vpop.permute.xlu1 %440 }
 0x148   : > { %5567 = vst [vmem:[#allocation45_spill] sm:$0xff] %v3318_v35  ;;  %v3320_v37 = vpop.permute.xlu2 %545  ;;  %v3322_v15 = vpop.permute.xlu0 %432 }
 0x149   : > { %5568 = vst [vmem:[#allocation46_spill] sm:$0xff] %v3320_v37 }
 0x14d   : > { %770 = vrot.lane.b32.xlu1 %v3325_v53, %s2813_s25 }
 0x14e   : > { %812 = vrot.lane.b32.xlu2 %v3220_v19, %s2814_s26  ;;  %768 = vrot.lane.b32.xlu0 %v3330_v44, %s2813_s25 }
 0x14f   : > { %v3336_v11 = vpop.permute.xlu1 %525 }
 0x150   : > { %5571 = vst [vmem:[#allocation49_spill] sm:$0xff] %v3336_v11  ;;  %v3338_v37 = vpop.permute.xlu2 %551  ;;  %v3340_v1 = vpop.permute.xlu0 %444 }
 0x151   : > { %5572 = vst [vmem:[#allocation50_spill] sm:$0xff] %v3338_v37 }
 0x152   : > { %5573 = vst [vmem:[#allocation51_spill] sm:$0xff] %v3340_v1 }
 0x155   : > { %816 = vrot.lane.b32.xlu1 %v3244_v18, %s2814_s26 }
 0x156   : > { %818 = vrot.lane.b32.xlu2 %v3235_v4, %s2814_s26  ;;  %814 = vrot.lane.b32.xlu0 %v3217_v16, %s2814_s26 }
 0x157   : > { %v3348_v22 = vpop.permute.xlu1 %537 }
 0x158   : > { %5574 = vst [vmem:[#allocation52_spill] sm:$0xff] %v3348_v22  ;;  %v3350_v6 = vpop.permute.xlu2 %598  ;;  %v3352_v31 = vpop.permute.xlu0 %529 }
 0x159   : > { %5575 = vst [vmem:[#allocation53_spill] sm:$0xff] %v3350_v6 }
 0x15a   : > { %5576 = vst [vmem:[#allocation54_spill] sm:$0xff] %v3352_v31 }
 0x15d   : > { %822 = vrot.lane.b32.xlu1 %v3261_v12, %s2814_s26 }
 0x15e   : > { %824 = vrot.lane.b32.xlu2 %v3264_v56, %s2814_s26  ;;  %820 = vrot.lane.b32.xlu0 %v3239_v52, %s2814_s26 }
 0x15f   : > { %v3360_v10 = vpop.permute.xlu1 %543 }
 0x160   : > { %5577 = vst [vmem:[#allocation55_spill] sm:$0xff] %v3360_v10  ;;  %v3362_v37 = vpop.permute.xlu2 %604  ;;  %v3364_v11 = vpop.permute.xlu0 %541 }
 0x161   : > { %5578 = vst [vmem:[#allocation56_spill] sm:$0xff] %v3362_v37 }
 0x162   : > { %5579 = vst [vmem:[#allocation57_spill] sm:$0xff] %v3364_v11 }
 0x165   : > { %828 = vrot.lane.b32.xlu1 %v3289_v43, %s2814_s26 }
 0x166   : > { %830 = vrot.lane.b32.xlu2 %v3281_v42, %s2814_s26  ;;  %826 = vrot.lane.b32.xlu0 %v3258_v14, %s2814_s26 }
 0x167   : > { %v3372_v6 = vpop.permute.xlu1 %549 }
 0x168   : > { %5580 = vst [vmem:[#allocation58_spill] sm:$0xff] %v3372_v6  ;;  %v3374_v31 = vpop.permute.xlu2 %610  ;;  %v3376_v22 = vpop.permute.xlu0 %547 }
 0x169   : > { %5581 = vst [vmem:[#allocation59_spill] sm:$0xff] %v3374_v31 }
 0x16a   : > { %5582 = vst [vmem:[#allocation60_spill] sm:$0xff] %v3376_v22 }
 0x16d   : > { %834 = vrot.lane.b32.xlu1 %v3307_v32, %s2814_s26 }
 0x16e   : > { %836 = vrot.lane.b32.xlu2 %v3310_v23, %s2814_s26  ;;  %832 = vrot.lane.b32.xlu0 %v3284_v51, %s2814_s26 }
 0x16f   : > { %v3384_v37 = vpop.permute.xlu1 %596 }
 0x170   : > { %5583 = vst [vmem:[#allocation61_spill] sm:$0xff] %v3384_v37  ;;  %v3386_v11 = vpop.permute.xlu2 %616  ;;  %v3388_v10 = vpop.permute.xlu0 %594 }
 0x171   : > { %5584 = vst [vmem:[#allocation62_spill] sm:$0xff] %v3386_v11 }
 0x172   : > { %5585 = vst [vmem:[#allocation63_spill] sm:$0xff] %v3388_v10 }
 0x175   : > { %840 = vrot.lane.b32.xlu1 %v3330_v44, %s2814_s26 }
 0x176   : > { %842 = vrot.lane.b32.xlu2 %v3325_v53, %s2814_s26  ;;  %838 = vrot.lane.b32.xlu0 %v3304_v7, %s2814_s26 }
 0x177   : > { %v3396_v31 = vpop.permute.xlu1 %602 }
 0x178   : > { %5586 = vst [vmem:[#allocation64_spill] sm:$0xff] %v3396_v31  ;;  %v3398_v22 = vpop.permute.xlu2 %622  ;;  %v3400_v6 = vpop.permute.xlu0 %600 }
 0x179   : > { %5587 = vst [vmem:[#allocation65_spill] sm:$0xff] %v3398_v22 }
 0x17a   : > { %5588 = vst [vmem:[#allocation66_spill] sm:$0xff] %v3400_v6 }
 0x17d   : > { %918 = vrot.lane.b32.xlu1 %v3217_v16, %s2815_s27 }
 0x17e   : > { %920 = vrot.lane.b32.xlu2 %v3244_v18, %s2815_s27  ;;  %916 = vrot.lane.b32.xlu0 %v3220_v19, %s2815_s27 }
 0x17f   : > { %v3408_v11 = vpop.permute.xlu1 %608 }
 0x180   : > { %5589 = vst [vmem:[#allocation67_spill] sm:$0xff] %v3408_v11  ;;  %v3410_v10 = vpop.permute.xlu2 %742  ;;  %v3412_v37 = vpop.permute.xlu0 %606 }
 0x181   : > { %5590 = vst [vmem:[#allocation68_spill] sm:$0xff] %v3410_v10 }
 0x182   : > { %5591 = vst [vmem:[#allocation69_spill] sm:$0xff] %v3412_v37 }
 0x185   : > { %924 = vrot.lane.b32.xlu1 %v3239_v52, %s2815_s27 }
 0x186   : > { %926 = vrot.lane.b32.xlu2 %v3261_v12, %s2815_s27  ;;  %922 = vrot.lane.b32.xlu0 %v3235_v4, %s2815_s27 }
 0x187   : > { %v3420_v22 = vpop.permute.xlu1 %614 }
 0x188   : > { %5592 = vst [vmem:[#allocation70_spill] sm:$0xff] %v3420_v22  ;;  %v3422_v6 = vpop.permute.xlu2 %748  ;;  %v3424_v31 = vpop.permute.xlu0 %612 }
 0x189   : > { %5593 = vst [vmem:[#allocation71_spill] sm:$0xff] %v3422_v6 }
 0x18a   : > { %5594 = vst [vmem:[#allocation72_spill] sm:$0xff] %v3424_v31 }
 0x18d   : > { %930 = vrot.lane.b32.xlu1 %v3258_v14, %s2815_s27 }
 0x18e   : > { %932 = vrot.lane.b32.xlu2 %v3289_v43, %s2815_s27  ;;  %928 = vrot.lane.b32.xlu0 %v3264_v56, %s2815_s27 }
 0x18f   : > { %v3432_v10 = vpop.permute.xlu1 %620 }
 0x190   : > { %5595 = vst [vmem:[#allocation73_spill] sm:$0xff] %v3432_v10  ;;  %v3434_v37 = vpop.permute.xlu2 %754  ;;  %v3436_v11 = vpop.permute.xlu0 %618 }
 0x191   : > { %5596 = vst [vmem:[#allocation74_spill] sm:$0xff] %v3434_v37 }
 0x192   : > { %5597 = vst [vmem:[#allocation75_spill] sm:$0xff] %v3436_v11 }
 0x195   : > { %936 = vrot.lane.b32.xlu1 %v3284_v51, %s2815_s27 }
 0x196   : > { %938 = vrot.lane.b32.xlu2 %v3307_v32, %s2815_s27  ;;  %934 = vrot.lane.b32.xlu0 %v3281_v42, %s2815_s27 }
 0x197   : > { %v3444_v6 = vpop.permute.xlu1 %740 }
 0x198   : > { %5598 = vst [vmem:[#allocation76_spill] sm:$0xff] %v3444_v6  ;;  %v3446_v31 = vpop.permute.xlu2 %760  ;;  %v3448_v22 = vpop.permute.xlu0 %624 }
 0x199   : > { %5599 = vst [vmem:[#allocation77_spill] sm:$0xff] %v3446_v31 }
 0x19a   : > { %5600 = vst [vmem:[#allocation78_spill] sm:$0xff] %v3448_v22 }
 0x19d   : > { %942 = vrot.lane.b32.xlu1 %v3304_v7, %s2815_s27 }
 0x19e   : > { %944 = vrot.lane.b32.xlu2 %v3330_v44, %s2815_s27  ;;  %940 = vrot.lane.b32.xlu0 %v3310_v23, %s2815_s27 }
 0x19f   : > { %v3456_v37 = vpop.permute.xlu1 %746 }
 0x1a0   : > { %5601 = vst [vmem:[#allocation79_spill] sm:$0xff] %v3456_v37  ;;  %v3458_v11 = vpop.permute.xlu2 %766  ;;  %v3460_v10 = vpop.permute.xlu0 %744  ;;  %v1579_v37 = vld [vmem:[#allocation2 + $0x98] sm:$0xf0] }
 0x1a1   : > { %5602 = vst [vmem:[#allocation80_spill] sm:$0xff] %v3458_v11 }
 0x1a2   : > { %5603 = vst [vmem:[#allocation81_spill] sm:$0xff] %v3460_v10 }
 0x1a5   : > { %988 = vrot.lane.b32.xlu1 %v3220_v19, %s2816_s28 }
 0x1a6   : > { %990 = vrot.lane.b32.xlu2 %v3217_v16, %s2816_s28  ;;  %946 = vrot.lane.b32.xlu0 %v3325_v53, %s2815_s27 }
 0x1a7   : > { %v3468_v31 = vpop.permute.xlu1 %752 }
 0x1a8   : > { %5604 = vst [vmem:[#allocation82_spill] sm:$0xff] %v3468_v31  ;;  %v3470_v6 = vpop.permute.xlu2 %812  ;;  %v3472_v22 = vpop.permute.xlu0 %750  ;;  %v1144_v31 = vld [vmem:[#allocation2 + $0xb8] sm:$0x7] }
 0x1a9   : > { %5605 = vst [vmem:[#allocation83_spill] sm:$0xff] %v3470_v6 }
 0x1aa   : > { %5606 = vst [vmem:[#allocation84_spill] sm:$0xff] %v3472_v22  ;;  %v1141_v22 = vld [vmem:[#allocation2 + $0x68] sm:$0xf8] }
 0x1ad   : > { %994 = vrot.lane.b32.xlu1 %v3235_v4, %s2816_s28 }
 0x1ae   : > { %996 = vrot.lane.b32.xlu2 %v3239_v52, %s2816_s28  ;;  %992 = vrot.lane.b32.xlu0 %v3244_v18, %s2816_s28 }
 0x1af   : > { %v3480_v19 = vpop.permute.xlu1 %758 }
 0x1b0   : > { %5607 = vst [vmem:[#allocation85_spill] sm:$0xff] %v3480_v19  ;;  %v3482_v16 = vpop.permute.xlu2 %818  ;;  %v3484_v11 = vpop.permute.xlu0 %756 }
 0x1b1   : > { %5608 = vst [vmem:[#allocation86_spill] sm:$0xff] %v3482_v16 }
 0x1b2   : > { %5609 = vst [vmem:[#allocation87_spill] sm:$0xff] %v3484_v11  ;;  %v1137_v11 = vld [vmem:[#allocation2 + $0x8] sm:$0xf8] }
 0x1b5   : > { %1000 = vrot.lane.b32.xlu1 %v3264_v56, %s2816_s28 }
 0x1b6   : > { %1002 = vrot.lane.b32.xlu2 %v3258_v14, %s2816_s28  ;;  %998 = vrot.lane.b32.xlu0 %v3261_v12, %s2816_s28 }
 0x1b7   : > { %v3492_v4 = vpop.permute.xlu1 %764 }
 0x1b8   : > { %5610 = vst [vmem:[#allocation88_spill] sm:$0xff] %v3492_v4  ;;  %v3494_v52 = vpop.permute.xlu2 %824  ;;  %v3496_v18 = vpop.permute.xlu0 %762 }
 0x1b9   : > { %5611 = vst [vmem:[#allocation89_spill] sm:$0xff] %v3494_v52 }
 0x1ba   : > { %5612 = vst [vmem:[#allocation90_spill] sm:$0xff] %v3496_v18 }
 0x1bd   : > { %1006 = vrot.lane.b32.xlu1 %v3281_v42, %s2816_s28 }
 0x1be   : > { %1008 = vrot.lane.b32.xlu2 %v3284_v51, %s2816_s28  ;;  %1004 = vrot.lane.b32.xlu0 %v3289_v43, %s2816_s28 }
 0x1bf   : > { %v3504_v56 = vpop.permute.xlu1 %770 }
 0x1c0   : > { %5613 = vst [vmem:[#allocation91_spill] sm:$0xff] %v3504_v56  ;;  %v3506_v14 = vpop.permute.xlu2 %830  ;;  %v3508_v12 = vpop.permute.xlu0 %768  ;;  %v1060_v56 = vld [vmem:[#allocation2] sm:$0xf8] }
 0x1c1   : > { %5614 = vst [vmem:[#allocation92_spill] sm:$0xff] %v3506_v14  ;;  %v1078_v14 = vrot.slane %v3045_v3, 3  ;;  %v1077_v16 = vrot.slane %v1060_v56, 3 }
 0x1c2   : > { %5615 = vst [vmem:[#allocation93_spill] sm:$0xff] %v3508_v12 }
 0x1c3   : > { %v3524_v18 = vsel %vm1076_vm8, %v1077_v16, %v1078_v14  ;;  %v1061_v16 = vld [vmem:[#allocation2 + $0x20] sm:$0x7] }
 0x1c4   : > { %5619 = vst [vmem:[#allocation97_spill] sm:$0xff] %v3524_v18 }
 0x1c5   : > { %1012 = vrot.lane.b32.xlu1 %v3310_v23, %s2816_s28 }
 0x1c6   : > { %1014 = vrot.lane.b32.xlu2 %v3304_v7, %s2816_s28  ;;  %1010 = vrot.lane.b32.xlu0 %v3307_v32, %s2816_s28  ;;  %v1062_v7 = vld [vmem:[#allocation2 + $0x30] sm:$0xf8]  ;;  %v1063_v32 = vld [vmem:[#allocation2 + $0x50] sm:$0x7] }
 0x1c7   : > { %v3516_v42 = vpop.permute.xlu1 %816  ;;  %v1082_v56 = vrot.slane %v1062_v7, 3 }
 0x1c8   : > { %5616 = vst [vmem:[#allocation94_spill] sm:$0xff] %v3516_v42  ;;  %v3518_v51 = vpop.permute.xlu2 %836  ;;  %v3520_v43 = vpop.permute.xlu0 %814  ;;  %v1085_v42 = vrot.slane %v1063_v32, 3  ;;  %v1066_v32 = vld [vmem:[#allocation2 + $0x90] sm:$0xf8] }
 0x1c9   : > { %5617 = vst [vmem:[#allocation95_spill] sm:$0xff] %v3518_v51 }
 0x1ca   : > { %5618 = vst [vmem:[#allocation96_spill] sm:$0xff] %v3520_v43  ;;  %v1083_v43 = vrot.slane %v3042_v61, 3  ;;  %v1064_v61 = vld [vmem:[#allocation2 + $0x60] sm:$0xf8] }
 0x1cc   : > { %v3540_v4 = vsel %vm1076_vm8, %v1082_v56, %v1083_v43  ;;  %v3543_v52 = vsel %vm1076_vm8, %v1083_v43, %v1085_v42  ;;  %v1088_v43 = vrot.slane %v3065_v17, 3  ;;  %v1067_v17 = vld [vmem:[#allocation2 + $0xb0] sm:$0x7] }
 0x1cd   : > { %1018 = vrot.lane.b32.xlu1 %v3325_v53, %s2816_s28  ;;  %v1080_v53 = vrot.slane %v1061_v16, 3  ;;  %5623 = vst [vmem:[#allocation101_spill] sm:$0xff] %v3540_v4 }
 0x1ce   : > { %1097 = vrot.lane.b32.xlu2 %v3524_v18, %s2812_s17  ;;  %1016 = vrot.lane.b32.xlu0 %v3330_v44, %s2816_s28  ;;  %5624 = vst [vmem:[#allocation102_spill] sm:$0xff] %v3543_v52 }
 0x1cf   : > { %v3532_v23 = vpop.permute.xlu1 %822 }
 0x1d0   : > { %5620 = vst [vmem:[#allocation98_spill] sm:$0xff] %v3532_v23  ;;  %v3534_v51 = vpop.permute.xlu2 %842  ;;  %v3536_v3 = vpop.permute.xlu0 %820  ;;  %v3548_v23 = vsel %vm1076_vm8, %v1078_v14, %v1080_v53  ;;  %v1092_v14 = vrot.slane %v1066_v32, 3  ;;  %v1093_v53 = vrot.slane %v3085_v29, 3  ;;  %v1154_v32 = vrot.slane %v2957_v21, 3 }
 0x1d1   : > { %5621 = vst [vmem:[#allocation99_spill] sm:$0xff] %v3534_v51  ;;  %v1065_v51 = vld [vmem:[#allocation2 + $0x80] sm:$0x7] }
 0x1d2   : > { %5622 = vst [vmem:[#allocation100_spill] sm:$0xff] %v3536_v3  ;;  %v1090_v16 = vrot.slane %v1065_v51, 3  ;;  %v1087_v3 = vrot.slane %v1064_v61, 3  ;;  %v3566_v19 = vsel %vm1076_vm8, %v1092_v14, %v1093_v53  ;;  %v1153_v51 = vrot.slane %v1137_v11, 3 }
 0x1d3   : > { %5625 = vst [vmem:[#allocation103_spill] sm:$0xff] %v3548_v23  ;;  %v1095_v14 = vrot.slane %v1067_v17, 3 }
 0x1d4   : > { %v3563_v44 = vsel %vm1076_vm8, %v1088_v43, %v1090_v16  ;;  %5630 = vst [vmem:[#allocation108_spill] sm:$0xff] %v3566_v19 }
 0x1d5   : > { %1101 = vrot.lane.b32.xlu1 %v3540_v4, %s2812_s17  ;;  %5629 = vst [vmem:[#allocation107_spill] sm:$0xff] %v3563_v44 }
 0x1d6   : > { %1103 = vrot.lane.b32.xlu2 %v3543_v52, %s2812_s17  ;;  %1099 = vrot.lane.b32.xlu0 %v3548_v23, %s2812_s17 }
 0x1d7   : > { %v3554_v7 = vpop.permute.xlu1 %828 }
 0x1d8   : > { %5626 = vst [vmem:[#allocation104_spill] sm:$0xff] %v3554_v7  ;;  %v3556_v56 = vpop.permute.xlu2 %920  ;;  %v3558_v42 = vpop.permute.xlu0 %826 }
 0x1d9   : > { %5627 = vst [vmem:[#allocation105_spill] sm:$0xff] %v3556_v56  ;;  %v3571_v56 = vsel %vm1076_vm8, %v1087_v3, %v1088_v43  ;;  %v3585_v3 = vsel %vm1076_vm8, %v1153_v51, %v1154_v32  ;;  %v1138_v43 = vld [vmem:[#allocation2 + $0x28] sm:$0x7] }
 0x1da   : > { %5628 = vst [vmem:[#allocation106_spill] sm:$0xff] %v3558_v42  ;;  %v3590_v42 = vsel %vm1076_vm8, %v1093_v53, %v1095_v14  ;;  %v1156_v21 = vrot.slane %v1138_v43, 3  ;;  %v1159_v14 = vrot.slane %v2959_v24, 3  ;;  %v1163_v24 = vrot.slane %v1141_v22, 3 }
 0x1db   : > { %5631 = vst [vmem:[#allocation109_spill] sm:$0xff] %v3571_v56 }
 0x1dc   : > { %5635 = vst [vmem:[#allocation113_spill] sm:$0xff] %v3585_v3 }
 0x1dd   : > { %1107 = vrot.lane.b32.xlu1 %v3563_v44, %s2812_s17  ;;  %5636 = vst [vmem:[#allocation114_spill] sm:$0xff] %v3590_v42 }
 0x1de   : > { %1109 = vrot.lane.b32.xlu2 %v3566_v19, %s2812_s17  ;;  %1105 = vrot.lane.b32.xlu0 %v3571_v56, %s2812_s17 }
 0x1df   : > { %v3577_v29 = vpop.permute.xlu1 %834 }
 0x1e0   : > { %5632 = vst [vmem:[#allocation110_spill] sm:$0xff] %v3577_v29  ;;  %v3580_v61 = vpop.permute.xlu2 %926  ;;  %v3582_v16 = vpop.permute.xlu0 %832  ;;  %v1139_v29 = vld [vmem:[#allocation2 + $0x38] sm:$0xf8] }
 0x1e1   : > { %5633 = vst [vmem:[#allocation111_spill] sm:$0xff] %v3580_v61  ;;  %v3603_v61 = vsel %vm1076_vm8, %v1154_v32, %v1156_v21 }
 0x1e2   : > { %5634 = vst [vmem:[#allocation112_spill] sm:$0xff] %v3582_v16  ;;  %v1140_v16 = vld [vmem:[#allocation2 + $0x58] sm:$0x7] }
 0x1e3   : > { %5640 = vst [vmem:[#allocation118_spill] sm:$0xff] %v3603_v61  ;;  %v1161_v43 = vrot.slane %v1140_v16, 3 }
 0x1e5   : > { %1173 = vrot.lane.b32.xlu1 %v3524_v18, %s2813_s25  ;;  %v3619_v21 = vsel %vm1076_vm8, %v1159_v14, %v1161_v43 }
 0x1e6   : > { %1175 = vrot.lane.b32.xlu2 %v3585_v3, %s2813_s25  ;;  %1111 = vrot.lane.b32.xlu0 %v3590_v42, %s2812_s17  ;;  %5644 = vst [vmem:[#allocation122_spill] sm:$0xff] %v3619_v21 }
 0x1e7   : > { %v3596_v11 = vpop.permute.xlu1 %840 }
 0x1e8   : > { %5637 = vst [vmem:[#allocation115_spill] sm:$0xff] %v3596_v11  ;;  %v3598_v17 = vpop.permute.xlu2 %932  ;;  %v3600_v51 = vpop.permute.xlu0 %838 }
 0x1e9   : > { %5638 = vst [vmem:[#allocation116_spill] sm:$0xff] %v3598_v17  ;;  %v1158_v17 = vrot.slane %v1139_v29, 3  ;;  %v1164_v29 = vrot.slane %v2975_v34, 3 }
 0x1ea   : > { %5639 = vst [vmem:[#allocation117_spill] sm:$0xff] %v3600_v51 }
 0x1eb   : > { %v3622_v7 = vsel %vm1076_vm8, %v1158_v17, %v1159_v14  ;;  %v3638_v17 = vsel %vm1076_vm8, %v1163_v24, %v1164_v29  ;;  %v1143_v14 = vld [vmem:[#allocation2 + $0x98] sm:$0xf8] }
 0x1ec   : > { %5645 = vst [vmem:[#allocation123_spill] sm:$0xff] %v3622_v7  ;;  %v1168_v22 = vrot.slane %v1143_v14, 3 }
 0x1ed   : > { %1179 = vrot.lane.b32.xlu1 %v3603_v61, %s2813_s25  ;;  %5649 = vst [vmem:[#allocation127_spill] sm:$0xff] %v3638_v17 }
 0x1ee   : > { %1181 = vrot.lane.b32.xlu2 %v3540_v4, %s2813_s25  ;;  %1177 = vrot.lane.b32.xlu0 %v3548_v23, %s2813_s25 }
 0x1ef   : > { %v3611_v53 = vpop.permute.xlu1 %918 }
 0x1f0   : > { %5641 = vst [vmem:[#allocation119_spill] sm:$0xff] %v3611_v53  ;;  %v3614_v51 = vpop.permute.xlu2 %938  ;;  %v3616_v32 = vpop.permute.xlu0 %916  ;;  %v1169_v53 = vrot.slane %v2993_v45, 3  ;;  %v1171_v45 = vrot.slane %v1144_v31, 3 }
 0x1f1   : > { %5642 = vst [vmem:[#allocation120_spill] sm:$0xff] %v3614_v51 }
 0x1f2   : > { %5643 = vst [vmem:[#allocation121_spill] sm:$0xff] %v3616_v32  ;;  %v1142_v32 = vld [vmem:[#allocation2 + $0x88] sm:$0x7] }
 0x1f5   : > { %1185 = vrot.lane.b32.xlu1 %v3543_v52, %s2813_s25 }
 0x1f6   : > { %1187 = vrot.lane.b32.xlu2 %v3619_v21, %s2813_s25  ;;  %1183 = vrot.lane.b32.xlu0 %v3622_v7, %s2813_s25 }
 0x1f7   : > { %v3631_v16 = vpop.permute.xlu1 %924 }
 0x1f8   : > { %5646 = vst [vmem:[#allocation124_spill] sm:$0xff] %v3631_v16  ;;  %v3633_v43 = vpop.permute.xlu2 %944  ;;  %v3635_v51 = vpop.permute.xlu0 %922 }
 0x1f9   : > { %5647 = vst [vmem:[#allocation125_spill] sm:$0xff] %v3633_v43  ;;  %v3654_v43 = vsel %vm1076_vm8, %v1168_v22, %v1169_v53 }
 0x1fa   : > { %5648 = vst [vmem:[#allocation126_spill] sm:$0xff] %v3635_v51  ;;  %v1166_v51 = vrot.slane %v1142_v32, 3 }
 0x1fb   : > { %5653 = vst [vmem:[#allocation131_spill] sm:$0xff] %v3654_v43 }
 0x1fc   : > { %v3657_v11 = vsel %vm1076_vm8, %v1164_v29, %v1166_v51  ;;  %v3672_v51 = vsel %vm1076_vm8, %v1169_v53, %v1171_v45 }
 0x1fd   : > { %1191 = vrot.lane.b32.xlu1 %v3638_v17, %s2813_s25  ;;  %5654 = vst [vmem:[#allocation132_spill] sm:$0xff] %v3657_v11 }
 0x1fe   : > { %1193 = vrot.lane.b32.xlu2 %v3563_v44, %s2813_s25  ;;  %1189 = vrot.lane.b32.xlu0 %v3571_v56, %s2813_s25  ;;  %5658 = vst [vmem:[#allocation136_spill] sm:$0xff] %v3672_v51 }
 0x1ff   : > { %v3646_v34 = vpop.permute.xlu1 %930 }
 0x200   : > { %5650 = vst [vmem:[#allocation128_spill] sm:$0xff] %v3646_v34  ;;  %v3649_v16 = vpop.permute.xlu2 %990  ;;  %v3651_v24 = vpop.permute.xlu0 %928 }
 0x201   : > { %5651 = vst [vmem:[#allocation129_spill] sm:$0xff] %v3649_v16 }
 0x202   : > { %5652 = vst [vmem:[#allocation130_spill] sm:$0xff] %v3651_v24 }
 0x205   : > { %1197 = vrot.lane.b32.xlu1 %v3566_v19, %s2813_s25 }
 0x206   : > { %1199 = vrot.lane.b32.xlu2 %v3654_v43, %s2813_s25  ;;  %1195 = vrot.lane.b32.xlu0 %v3657_v11, %s2813_s25 }
 0x207   : > { %v3665_v32 = vpop.permute.xlu1 %936 }
 0x208   : > { %5655 = vst [vmem:[#allocation133_spill] sm:$0xff] %v3665_v32  ;;  %v3667_v14 = vpop.permute.xlu2 %996  ;;  %v3669_v22 = vpop.permute.xlu0 %934 }
 0x209   : > { %5656 = vst [vmem:[#allocation134_spill] sm:$0xff] %v3667_v14 }
 0x20a   : > { %5657 = vst [vmem:[#allocation135_spill] sm:$0xff] %v3669_v22 }
 0x20d   : > { %1203 = vrot.lane.b32.xlu1 %v3672_v51, %s2813_s25 }
 0x20e   : > { %1245 = vrot.lane.b32.xlu2 %v3524_v18, %s2814_s26  ;;  %1201 = vrot.lane.b32.xlu0 %v3590_v42, %s2813_s25 }
 0x20f   : > { %v3680_v29 = vpop.permute.xlu1 %942 }
 0x210   : > { %5659 = vst [vmem:[#allocation137_spill] sm:$0xff] %v3680_v29  ;;  %v3682_v31 = vpop.permute.xlu2 %1002  ;;  %v3684_v16 = vpop.permute.xlu0 %940 }
 0x211   : > { %5660 = vst [vmem:[#allocation138_spill] sm:$0xff] %v3682_v31 }
 0x212   : > { %5661 = vst [vmem:[#allocation139_spill] sm:$0xff] %v3684_v16 }
 0x215   : > { %1249 = vrot.lane.b32.xlu1 %v3548_v23, %s2814_s26 }
 0x216   : > { %1251 = vrot.lane.b32.xlu2 %v3603_v61, %s2814_s26  ;;  %1247 = vrot.lane.b32.xlu0 %v3585_v3, %s2814_s26 }
 0x217   : > { %v3692_v53 = vpop.permute.xlu1 %988 }
 0x218   : > { %5662 = vst [vmem:[#allocation140_spill] sm:$0xff] %v3692_v53  ;;  %v3694_v45 = vpop.permute.xlu2 %1008  ;;  %v3696_v22 = vpop.permute.xlu0 %946 }
 0x219   : > { %5663 = vst [vmem:[#allocation141_spill] sm:$0xff] %v3694_v45 }
 0x21a   : > { %5664 = vst [vmem:[#allocation142_spill] sm:$0xff] %v3696_v22  ;;  %v1575_v22 = vld [vmem:[#allocation2 + $0x68] sm:$0xf0] }
 0x21d   : > { %1255 = vrot.lane.b32.xlu1 %v3622_v7, %s2814_s26 }
 0x21e   : > { %1257 = vrot.lane.b32.xlu2 %v3543_v52, %s2814_s26  ;;  %1253 = vrot.lane.b32.xlu0 %v3540_v4, %s2814_s26 }
 0x21f   : > { %v3704_v31 = vpop.permute.xlu1 %994 }
 0x220   : > { %5665 = vst [vmem:[#allocation143_spill] sm:$0xff] %v3704_v31  ;;  %v3706_v16 = vpop.permute.xlu2 %1014  ;;  %v3708_v29 = vpop.permute.xlu0 %992 }
 0x221   : > { %5666 = vst [vmem:[#allocation144_spill] sm:$0xff] %v3706_v16 }
 0x222   : > { %5667 = vst [vmem:[#allocation145_spill] sm:$0xff] %v3708_v29 }
 0x225   : > { %1261 = vrot.lane.b32.xlu1 %v3571_v56, %s2814_s26 }
 0x226   : > { %1263 = vrot.lane.b32.xlu2 %v3638_v17, %s2814_s26  ;;  %1259 = vrot.lane.b32.xlu0 %v3619_v21, %s2814_s26 }
 0x227   : > { %v3716_v45 = vpop.permute.xlu1 %1000 }
 0x228   : > { %5668 = vst [vmem:[#allocation146_spill] sm:$0xff] %v3716_v45  ;;  %v3718_v53 = vpop.permute.xlu2 %1097  ;;  %v3720_v32 = vpop.permute.xlu0 %998 }
 0x229   : > { %5669 = vst [vmem:[#allocation147_spill] sm:$0xff] %v3718_v53 }
 0x22a   : > { %5670 = vst [vmem:[#allocation148_spill] sm:$0xff] %v3720_v32 }
 0x22d   : > { %1267 = vrot.lane.b32.xlu1 %v3657_v11, %s2814_s26 }
 0x22e   : > { %1269 = vrot.lane.b32.xlu2 %v3566_v19, %s2814_s26  ;;  %1265 = vrot.lane.b32.xlu0 %v3563_v44, %s2814_s26 }
 0x22f   : > { %v3728_v16 = vpop.permute.xlu1 %1006 }
 0x230   : > { %5671 = vst [vmem:[#allocation149_spill] sm:$0xff] %v3728_v16  ;;  %v3730_v29 = vpop.permute.xlu2 %1103  ;;  %v3732_v31 = vpop.permute.xlu0 %1004 }
 0x231   : > { %5672 = vst [vmem:[#allocation150_spill] sm:$0xff] %v3730_v29 }
 0x232   : > { %5673 = vst [vmem:[#allocation151_spill] sm:$0xff] %v3732_v31 }
 0x235   : > { %1273 = vrot.lane.b32.xlu1 %v3590_v42, %s2814_s26 }
 0x236   : > { %1275 = vrot.lane.b32.xlu2 %v3672_v51, %s2814_s26  ;;  %1271 = vrot.lane.b32.xlu0 %v3654_v43, %s2814_s26 }
 0x237   : > { %v3740_v53 = vpop.permute.xlu1 %1012 }
 0x238   : > { %5674 = vst [vmem:[#allocation152_spill] sm:$0xff] %v3740_v53  ;;  %v3742_v45 = vpop.permute.xlu2 %1109  ;;  %v3744_v24 = vpop.permute.xlu0 %1010 }
 0x239   : > { %5675 = vst [vmem:[#allocation153_spill] sm:$0xff] %v3742_v45 }
 0x23a   : > { %5676 = vst [vmem:[#allocation154_spill] sm:$0xff] %v3744_v24 }
 0x23d   : > { %1351 = vrot.lane.b32.xlu1 %v3585_v3, %s2815_s27 }
 0x23e   : > { %1353 = vrot.lane.b32.xlu2 %v3548_v23, %s2815_s27  ;;  %1349 = vrot.lane.b32.xlu0 %v3524_v18, %s2815_s27 }
 0x23f   : > { %v3752_v29 = vpop.permute.xlu1 %1018 }
 0x240   : > { %5677 = vst [vmem:[#allocation155_spill] sm:$0xff] %v3752_v29  ;;  %v3754_v31 = vpop.permute.xlu2 %1175  ;;  %v3756_v16 = vpop.permute.xlu0 %1016  ;;  %v1577_v29 = vld [vmem:[#allocation2 + $0x88] sm:$0xf] }
 0x241   : > { %5678 = vst [vmem:[#allocation156_spill] sm:$0xff] %v3754_v31 }
 0x242   : > { %5679 = vst [vmem:[#allocation157_spill] sm:$0xff] %v3756_v16 }
 0x245   : > { %1357 = vrot.lane.b32.xlu1 %v3540_v4, %s2815_s27 }
 0x246   : > { %1359 = vrot.lane.b32.xlu2 %v3622_v7, %s2815_s27  ;;  %1355 = vrot.lane.b32.xlu0 %v3603_v61, %s2815_s27 }
 0x247   : > { %v3764_v45 = vpop.permute.xlu1 %1101 }
 0x248   : > { %5680 = vst [vmem:[#allocation158_spill] sm:$0xff] %v3764_v45  ;;  %v3766_v24 = vpop.permute.xlu2 %1181  ;;  %v3768_v53 = vpop.permute.xlu0 %1099 }
 0x249   : > { %5681 = vst [vmem:[#allocation159_spill] sm:$0xff] %v3766_v24 }
 0x24a   : > { %5682 = vst [vmem:[#allocation160_spill] sm:$0xff] %v3768_v53 }
 0x24d   : > { %1363 = vrot.lane.b32.xlu1 %v3619_v21, %s2815_s27 }
 0x24e   : > { %1365 = vrot.lane.b32.xlu2 %v3571_v56, %s2815_s27  ;;  %1361 = vrot.lane.b32.xlu0 %v3543_v52, %s2815_s27 }
 0x24f   : > { %v3776_v31 = vpop.permute.xlu1 %1107 }
 0x250   : > { %5683 = vst [vmem:[#allocation161_spill] sm:$0xff] %v3776_v31  ;;  %v3778_v34 = vpop.permute.xlu2 %1187  ;;  %v3780_v14 = vpop.permute.xlu0 %1105 }
 0x251   : > { %5684 = vst [vmem:[#allocation162_spill] sm:$0xff] %v3778_v34 }
 0x252   : > { %5685 = vst [vmem:[#allocation163_spill] sm:$0xff] %v3780_v14 }
 0x255   : > { %1369 = vrot.lane.b32.xlu1 %v3563_v44, %s2815_s27 }
 0x256   : > { %1371 = vrot.lane.b32.xlu2 %v3657_v11, %s2815_s27  ;;  %1367 = vrot.lane.b32.xlu0 %v3638_v17, %s2815_s27 }
 0x257   : > { %v3788_v53 = vpop.permute.xlu1 %1173 }
 0x258   : > { %5686 = vst [vmem:[#allocation164_spill] sm:$0xff] %v3788_v53  ;;  %v3790_v24 = vpop.permute.xlu2 %1193  ;;  %v3792_v45 = vpop.permute.xlu0 %1111 }
 0x259   : > { %5687 = vst [vmem:[#allocation165_spill] sm:$0xff] %v3790_v24 }
 0x25a   : > { %5688 = vst [vmem:[#allocation166_spill] sm:$0xff] %v3792_v45 }
 0x25d   : > { %1375 = vrot.lane.b32.xlu1 %v3654_v43, %s2815_s27 }
 0x25e   : > { %1377 = vrot.lane.b32.xlu2 %v3590_v42, %s2815_s27  ;;  %1373 = vrot.lane.b32.xlu0 %v3566_v19, %s2815_s27 }
 0x25f   : > { %v3800_v14 = vpop.permute.xlu1 %1179 }
 0x260   : > { %5689 = vst [vmem:[#allocation167_spill] sm:$0xff] %v3800_v14  ;;  %v3802_v34 = vpop.permute.xlu2 %1199  ;;  %v3804_v31 = vpop.permute.xlu0 %1177 }
 0x261   : > { %5690 = vst [vmem:[#allocation168_spill] sm:$0xff] %v3802_v34 }
 0x262   : > { %5691 = vst [vmem:[#allocation169_spill] sm:$0xff] %v3804_v31 }
 0x265   : > { %1421 = vrot.lane.b32.xlu1 %v3524_v18, %s2816_s28 }
 0x266   : > { %1423 = vrot.lane.b32.xlu2 %v3585_v3, %s2816_s28  ;;  %1379 = vrot.lane.b32.xlu0 %v3672_v51, %s2815_s27 }
 0x267   : > { %v3812_v24 = vpop.permute.xlu1 %1185 }
 0x268   : > { %5692 = vst [vmem:[#allocation170_spill] sm:$0xff] %v3812_v24  ;;  %v3814_v53 = vpop.permute.xlu2 %1245  ;;  %v3816_v32 = vpop.permute.xlu0 %1183 }
 0x269   : > { %5693 = vst [vmem:[#allocation171_spill] sm:$0xff] %v3814_v53 }
 0x26a   : > { %5694 = vst [vmem:[#allocation172_spill] sm:$0xff] %v3816_v32 }
 0x26d   : > { %1427 = vrot.lane.b32.xlu1 %v3603_v61, %s2816_s28 }
 0x26e   : > { %1429 = vrot.lane.b32.xlu2 %v3540_v4, %s2816_s28  ;;  %1425 = vrot.lane.b32.xlu0 %v3548_v23, %s2816_s28 }
 0x26f   : > { %v3824_v31 = vpop.permute.xlu1 %1191 }
 0x270   : > { %5695 = vst [vmem:[#allocation173_spill] sm:$0xff] %v3824_v31  ;;  %v3826_v14 = vpop.permute.xlu2 %1251  ;;  %v3828_v34 = vpop.permute.xlu0 %1189 }
 0x271   : > { %5696 = vst [vmem:[#allocation174_spill] sm:$0xff] %v3826_v14 }
 0x272   : > { %5697 = vst [vmem:[#allocation175_spill] sm:$0xff] %v3828_v34 }
 0x275   : > { %1433 = vrot.lane.b32.xlu1 %v3543_v52, %s2816_s28 }
 0x276   : > { %1435 = vrot.lane.b32.xlu2 %v3619_v21, %s2816_s28  ;;  %1431 = vrot.lane.b32.xlu0 %v3622_v7, %s2816_s28 }
 0x277   : > { %v3836_v32 = vpop.permute.xlu1 %1197 }
 0x278   : > { %5698 = vst [vmem:[#allocation176_spill] sm:$0xff] %v3836_v32  ;;  %v3838_v24 = vpop.permute.xlu2 %1257  ;;  %v3840_v53 = vpop.permute.xlu0 %1195 }
 0x279   : > { %5699 = vst [vmem:[#allocation177_spill] sm:$0xff] %v3838_v24 }
 0x27a   : > { %5700 = vst [vmem:[#allocation178_spill] sm:$0xff] %v3840_v53 }
 0x27d   : > { %1439 = vrot.lane.b32.xlu1 %v3638_v17, %s2816_s28 }
 0x27e   : > { %1441 = vrot.lane.b32.xlu2 %v3563_v44, %s2816_s28  ;;  %1437 = vrot.lane.b32.xlu0 %v3571_v56, %s2816_s28 }
 0x27f   : > { %v3848_v34 = vpop.permute.xlu1 %1203 }
 0x280   : > { %5701 = vst [vmem:[#allocation179_spill] sm:$0xff] %v3848_v34  ;;  %v3850_v31 = vpop.permute.xlu2 %1263  ;;  %v3852_v14 = vpop.permute.xlu0 %1201 }
 0x281   : > { %5702 = vst [vmem:[#allocation180_spill] sm:$0xff] %v3850_v31 }
 0x282   : > { %5703 = vst [vmem:[#allocation181_spill] sm:$0xff] %v3852_v14 }
 0x285   : > { %1445 = vrot.lane.b32.xlu1 %v3566_v19, %s2816_s28 }
 0x286   : > { %1447 = vrot.lane.b32.xlu2 %v3654_v43, %s2816_s28  ;;  %1443 = vrot.lane.b32.xlu0 %v3657_v11, %s2816_s28 }
 0x287   : > { %v3860_v53 = vpop.permute.xlu1 %1249 }
 0x288   : > { %5704 = vst [vmem:[#allocation182_spill] sm:$0xff] %v3860_v53  ;;  %v3862_v24 = vpop.permute.xlu2 %1269  ;;  %v3864_v32 = vpop.permute.xlu0 %1247 }
 0x289   : > { %5705 = vst [vmem:[#allocation183_spill] sm:$0xff] %v3862_v24 }
 0x28a   : > { %5706 = vst [vmem:[#allocation184_spill] sm:$0xff] %v3864_v32 }
 0x28d   : > { %1451 = vrot.lane.b32.xlu1 %v3672_v51, %s2816_s28 }
 0x28e   : > { %1493 = vrot.lane.b32.xlu2 %v3524_v18, %s2817_s29  ;;  %1449 = vrot.lane.b32.xlu0 %v3590_v42, %s2816_s28 }
 0x28f   : > { %v3872_v31 = vpop.permute.xlu1 %1255 }
 0x290   : > { %5707 = vst [vmem:[#allocation185_spill] sm:$0xff] %v3872_v31  ;;  %v3874_v34 = vpop.permute.xlu2 %1275  ;;  %v3876_v14 = vpop.permute.xlu0 %1253 }
 0x291   : > { %5708 = vst [vmem:[#allocation186_spill] sm:$0xff] %v3874_v34 }
 0x292   : > { %5709 = vst [vmem:[#allocation187_spill] sm:$0xff] %v3876_v14 }
 0x295   : > { %1497 = vrot.lane.b32.xlu1 %v3548_v23, %s2817_s29 }
 0x296   : > { %1499 = vrot.lane.b32.xlu2 %v3603_v61, %s2817_s29  ;;  %1495 = vrot.lane.b32.xlu0 %v3585_v3, %s2817_s29  ;;  %v3941_v3 = vld [vmem:[#allocation2 + $0x10] sm:$0xff] }
 0x297   : > { %v3884_v53 = vpop.permute.xlu1 %1261 }
 0x298   : > { %5710 = vst [vmem:[#allocation188_spill] sm:$0xff] %v3884_v53  ;;  %v3886_v18 = vpop.permute.xlu2 %1353  ;;  %v3888_v32 = vpop.permute.xlu0 %1259 }
 0x299   : > { %5711 = vst [vmem:[#allocation189_spill] sm:$0xff] %v3886_v18 }
 0x29a   : > { %5712 = vst [vmem:[#allocation190_spill] sm:$0xff] %v3888_v32 }
 0x29d   : > { %1503 = vrot.lane.b32.xlu1 %v3622_v7, %s2817_s29 }
 0x29e   : > { %1505 = vrot.lane.b32.xlu2 %v3543_v52, %s2817_s29  ;;  %1501 = vrot.lane.b32.xlu0 %v3540_v4, %s2817_s29 }
 0x29f   : > { %v3896_v31 = vpop.permute.xlu1 %1267 }
 0x2a0   : > { %5713 = vst [vmem:[#allocation191_spill] sm:$0xff] %v3896_v31  ;;  %v3898_v61 = vpop.permute.xlu2 %1359  ;;  %v3900_v23 = vpop.permute.xlu0 %1265 }
 0x2a1   : > { %5714 = vst [vmem:[#allocation192_spill] sm:$0xff] %v3898_v61 }
 0x2a2   : > { %5715 = vst [vmem:[#allocation193_spill] sm:$0xff] %v3900_v23 }
 0x2a5   : > { %1509 = vrot.lane.b32.xlu1 %v3571_v56, %s2817_s29 }
 0x2a6   : > { %1511 = vrot.lane.b32.xlu2 %v3638_v17, %s2817_s29  ;;  %1507 = vrot.lane.b32.xlu0 %v3619_v21, %s2817_s29  ;;  %v1567_v21 = vld [vmem:[#allocation2 + $0x8] sm:$0xf0] }
 0x2a7   : > { %v3908_v7 = vpop.permute.xlu1 %1273 }
 0x2a8   : > { %5716 = vst [vmem:[#allocation194_spill] sm:$0xff] %v3908_v7  ;;  %v3910_v53 = vpop.permute.xlu2 %1365  ;;  %v3912_v52 = vpop.permute.xlu0 %1271 }
 0x2a9   : > { %5717 = vst [vmem:[#allocation195_spill] sm:$0xff] %v3910_v53  ;;  %v3932_v53 = vld [vmem:[#allocation2 + $0x18] sm:$0xff] }
 0x2aa   : > { %5718 = vst [vmem:[#allocation196_spill] sm:$0xff] %v3912_v52  ;;  %v1603_v32 = vrot.slane %v3932_v53, 4  ;;  %v1570_v52 = vld [vmem:[#allocation2 + $0x30] sm:$0xf0] }
 0x2ad   : > { %1515 = vrot.lane.b32.xlu1 %v3657_v11, %s2817_s29  ;;  %v1602_v11 = vrot.slane %v1567_v21, 4 }
 0x2ae   : > { %1517 = vrot.lane.b32.xlu2 %v3566_v19, %s2817_s29  ;;  %1513 = vrot.lane.b32.xlu0 %v3563_v44, %s2817_s29  ;;  %v1569_v19 = vld [vmem:[#allocation2 + $0x28] sm:$0xf] }
 0x2af   : > { %v3920_v31 = vpop.permute.xlu1 %1351  ;;  %v3945_v34 = vsel %vm1598_vm9, %v1602_v11, %v1603_v32  ;;  %v1607_v4 = vrot.slane %v1569_v19, 4 }
 0x2b0   : > { %5719 = vst [vmem:[#allocation197_spill] sm:$0xff] %v3920_v31  ;;  %v3922_v17 = vpop.permute.xlu2 %1371  ;;  %v3924_v56 = vpop.permute.xlu0 %1349  ;;  %v1566_v31 = vld [vmem:[#allocation2] sm:$0xf0] }
 0x2b1   : > { %5720 = vst [vmem:[#allocation198_spill] sm:$0xff] %v3922_v17  ;;  %v1599_v23 = vrot.slane %v1566_v31, 4  ;;  %v3961_v31 = vld [vmem:[#allocation2 + $0x48] sm:$0xff] }
 0x2b2   : > { %5721 = vst [vmem:[#allocation199_spill] sm:$0xff] %v3924_v56  ;;  %v1568_v56 = vld [vmem:[#allocation2 + $0x20] sm:$0xf] }
 0x2b3   : > { %5725 = vst [vmem:[#allocation203_spill] sm:$0xff] %v3945_v34  ;;  %v1605_v21 = vrot.slane %v1568_v56, 4 }
 0x2b5   : > { %1521 = vrot.lane.b32.xlu1 %v3590_v42, %s2817_s29 }
 0x2b6   : > { %1523 = vrot.lane.b32.xlu2 %v3672_v51, %s2817_s29  ;;  %1519 = vrot.lane.b32.xlu0 %v3654_v43, %s2817_s29  ;;  %v1600_v51 = vrot.slane %v3941_v3, 4  ;;  %v1571_v43 = vld [vmem:[#allocation2 + $0x38] sm:$0xf0] }
 0x2b7   : > { %v3935_v18 = vpop.permute.xlu1 %1357  ;;  %v1612_v11 = vrot.slane %v1571_v43, 4  ;;  %v1573_v43 = vld [vmem:[#allocation2 + $0x58] sm:$0xf] }
 0x2b8   : > { %5722 = vst [vmem:[#allocation200_spill] sm:$0xff] %v3935_v18  ;;  %v3937_v44 = vpop.permute.xlu2 %1377  ;;  %v3939_v17 = vpop.permute.xlu0 %1355  ;;  %v3948_v24 = vsel %vm1598_vm9, %v1600_v51, %v1605_v21  ;;  %v1613_v21 = vrot.slane %v3961_v31, 4  ;;  %v1617_v19 = vrot.slane %v1573_v43, 4 }
 0x2b9   : > { %5723 = vst [vmem:[#allocation201_spill] sm:$0xff] %v3937_v44 }
 0x2ba   : > { %5724 = vst [vmem:[#allocation202_spill] sm:$0xff] %v3939_v17  ;;  %v3953_v17 = vsel %vm1598_vm9, %v1599_v23, %v1600_v51  ;;  %v1609_v23 = vrot.slane %v1570_v52, 4  ;;  %v3968_v51 = vld [vmem:[#allocation2 + $0x40] sm:$0xff]  ;;  %v3972_v42 = vsel %vm1598_vm9, %v1612_v11, %v1613_v21  ;;  %v1572_v11 = vld [vmem:[#allocation2 + $0x50] sm:$0xf]  ;;  %v3996_v16 = vsel %vm1598_vm9, %v1613_v21, %v1617_v19  ;;  %v4012_v19 = vld [vmem:[#allocation2 + $0x78] sm:$0xff] }
 0x2bb   : > { %5726 = vst [vmem:[#allocation204_spill] sm:$0xff] %v3948_v24  ;;  %v1610_v14 = vrot.slane %v3968_v51, 4  ;;  %v1574_v52 = vld [vmem:[#allocation2 + $0x60] sm:$0xf0]  ;;  %v1615_v45 = vrot.slane %v1572_v11, 4  ;;  %v1623_v11 = vrot.slane %v4012_v19, 4 }
 0x2bc   : > { %5727 = vst [vmem:[#allocation205_spill] sm:$0xff] %v3953_v17 }
 0x2bd   : > { %1641 = vrot.lane.b32.xlu1 %v3945_v34, %s2813_s25  ;;  %v3978_v44 = vsel %vm1598_vm9, %v1609_v23, %v1610_v14  ;;  %v1619_v23 = vrot.slane %v1574_v52, 4  ;;  %5735 = vst [vmem:[#allocation213_spill] sm:$0xff] %v3996_v16  ;;  %v1576_v52 = vld [vmem:[#allocation2 + $0x80] sm:$0xf] }
 0x2be   : > { %1643 = vrot.lane.b32.xlu2 %v3948_v24, %s2813_s25  ;;  %1639 = vrot.lane.b32.xlu0 %v3953_v17, %s2813_s25  ;;  %5731 = vst [vmem:[#allocation209_spill] sm:$0xff] %v3978_v44 }
 0x2bf   : > { %v3959_v56 = vpop.permute.xlu1 %1363 }
 0x2c0   : > { %5728 = vst [vmem:[#allocation206_spill] sm:$0xff] %v3959_v56  ;;  %v3964_v18 = vpop.permute.xlu2 %1423  ;;  %v3966_v61 = vpop.permute.xlu0 %1361  ;;  %v3975_v56 = vsel %vm1598_vm9, %v1603_v32, %v1607_v4 }
 0x2c1   : > { %5729 = vst [vmem:[#allocation207_spill] sm:$0xff] %v3964_v18  ;;  %v3992_v18 = vld [vmem:[#allocation2 + $0x70] sm:$0xff] }
 0x2c2   : > { %5730 = vst [vmem:[#allocation208_spill] sm:$0xff] %v3966_v61  ;;  %v1620_v7 = vrot.slane %v3992_v18, 4 }
 0x2c4   : > { %v3999_v43 = vsel %vm1598_vm9, %v1619_v23, %v1620_v7  ;;  %v1627_v23 = vrot.slane %v1577_v29, 4  ;;  %v1632_v29 = vrot.slane %v1579_v37, 4  ;;  %v1581_v37 = vld [vmem:[#allocation2 + $0xb8] sm:$0xf] }
 0x2c5   : > { %1647 = vrot.lane.b32.xlu1 %v3978_v44, %s2813_s25  ;;  %5736 = vst [vmem:[#allocation214_spill] sm:$0xff] %v3999_v43 }
 0x2c6   : > { %1649 = vrot.lane.b32.xlu2 %v3972_v42, %s2813_s25  ;;  %1645 = vrot.lane.b32.xlu0 %v3975_v56, %s2813_s25 }
 0x2c7   : > { %v3986_v61 = vpop.permute.xlu1 %1369 }
 0x2c8   : > { %5732 = vst [vmem:[#allocation210_spill] sm:$0xff] %v3986_v61  ;;  %v3988_v4 = vpop.permute.xlu2 %1429  ;;  %v3990_v32 = vpop.permute.xlu0 %1367  ;;  %v4004_v61 = vsel %vm1598_vm9, %v1610_v14, %v1615_v45  ;;  %v1625_v14 = vrot.slane %v1576_v52, 4  ;;  %v4020_v45 = vsel %vm1598_vm9, %v1623_v11, %v1627_v23  ;;  %v4034_v52 = vld [vmem:[#allocation2 + $0xa8] sm:$0xff] }
 0x2c9   : > { %5733 = vst [vmem:[#allocation211_spill] sm:$0xff] %v3988_v4 }
 0x2ca   : > { %5734 = vst [vmem:[#allocation212_spill] sm:$0xff] %v3990_v32  ;;  %v1622_v32 = vrot.slane %v1575_v22, 4  ;;  %v1580_v22 = vld [vmem:[#allocation2 + $0xb0] sm:$0xf] }
 0x2cb   : > { %5737 = vst [vmem:[#allocation215_spill] sm:$0xff] %v4004_v61  ;;  %v1635_v12 = vrot.slane %v1580_v22, 4 }
 0x2cc   : > { %5741 = vst [vmem:[#allocation219_spill] sm:$0xff] %v4020_v45  ;;  %v4023_v10 = vsel %vm1598_vm9, %v1622_v32, %v1623_v11  ;;  %v1633_v32 = vrot.slane %v4034_v52, 4  ;;  %v1578_v11 = vld [vmem:[#allocation2 + $0x90] sm:$0xf0] }
 0x2cd   : > { %1653 = vrot.lane.b32.xlu1 %v3996_v16, %s2813_s25  ;;  %5742 = vst [vmem:[#allocation220_spill] sm:$0xff] %v4023_v10  ;;  %v1629_v35 = vrot.slane %v1578_v11, 4 }
 0x2ce   : > { %1655 = vrot.lane.b32.xlu2 %v3999_v43, %s2813_s25  ;;  %1651 = vrot.lane.b32.xlu0 %v4004_v61, %s2813_s25  ;;  %v4047_v5 = vsel %vm1598_vm9, %v1632_v29, %v1633_v32  ;;  %v1637_v29 = vrot.slane %v1581_v37, 4 }
 0x2cf   : > { %v4010_v21 = vpop.permute.xlu1 %1375  ;;  %5747 = vst [vmem:[#allocation225_spill] sm:$0xff] %v4047_v5 }
 0x2d0   : > { %5738 = vst [vmem:[#allocation216_spill] sm:$0xff] %v4010_v21  ;;  %v4015_v4 = vpop.permute.xlu2 %1435  ;;  %v4017_v6 = vpop.permute.xlu0 %1373  ;;  %v4026_v21 = vsel %vm1598_vm9, %v1620_v7, %v1625_v14 }
 0x2d1   : > { %5739 = vst [vmem:[#allocation217_spill] sm:$0xff] %v4015_v4  ;;  %v4043_v4 = vld [vmem:[#allocation2 + $0xa0] sm:$0xff] }
 0x2d2   : > { %5740 = vst [vmem:[#allocation218_spill] sm:$0xff] %v4017_v6  ;;  %v1630_v6 = vrot.slane %v4043_v4, 4 }
 0x2d3   : > { %5743 = vst [vmem:[#allocation221_spill] sm:$0xff] %v4026_v21 }
 0x2d4   : > { %v4050_v1 = vsel %vm1598_vm9, %v1630_v6, %v1635_v12  ;;  %v4068_v12 = vsel %vm1598_vm9, %v1633_v32, %v1637_v29 }
 0x2d5   : > { %1659 = vrot.lane.b32.xlu1 %v4026_v21, %s2813_s25  ;;  %5752 = vst [vmem:[#allocation230_spill] sm:$0xff] %v4068_v12 }
 0x2d6   : > { %1661 = vrot.lane.b32.xlu2 %v4020_v45, %s2813_s25  ;;  %1657 = vrot.lane.b32.xlu0 %v4023_v10, %s2813_s25 }
 0x2d7   : > { %v4037_v23 = vpop.permute.xlu1 %1421 }
 0x2d8   : > { %5744 = vst [vmem:[#allocation222_spill] sm:$0xff] %v4037_v23  ;;  %v4039_v7 = vpop.permute.xlu2 %1441  ;;  %v4041_v14 = vpop.permute.xlu0 %1379 }
 0x2d9   : > { %5745 = vst [vmem:[#allocation223_spill] sm:$0xff] %v4039_v7  ;;  %v4055_v7 = vsel %vm1598_vm9, %v1629_v35, %v1630_v6 }
 0x2da   : > { %5746 = vst [vmem:[#allocation224_spill] sm:$0xff] %v4041_v14  ;;  %v402_v14 = vadd.f32 %v3941_v3, %v3188_v63  ;;  %v383_v3 = vsel %vm375_vm10, %v3213_v13, %v3156_v55 }
 0x2db   : > { %5748 = vst [vmem:[#allocation226_spill] sm:$0xff] %v4055_v7 }
 0x2dd   : > { %1665 = vrot.lane.b32.xlu1 %v4047_v5, %s2813_s25 }
 0x2de   : > { %1667 = vrot.lane.b32.xlu2 %v4050_v1, %s2813_s25  ;;  %1663 = vrot.lane.b32.xlu0 %v4055_v7, %s2813_s25 }
 0x2df   : > { %v4061_v22 = vpop.permute.xlu1 %1427 }
 0x2e0   : > { %5749 = vst [vmem:[#allocation227_spill] sm:$0xff] %v4061_v22  ;;  %v4063_v11 = vpop.permute.xlu2 %1447  ;;  %v4065_v23 = vpop.permute.xlu0 %1425 }
 0x2e1   : > { %5750 = vst [vmem:[#allocation228_spill] sm:$0xff] %v4063_v11 }
 0x2e2   : > { %5751 = vst [vmem:[#allocation229_spill] sm:$0xff] %v4065_v23 }
 0x2e5   : > { %1711 = vrot.lane.b32.xlu1 %v3953_v17, %s2814_s26 }
 0x2e6   : > { %1713 = vrot.lane.b32.xlu2 %v3945_v34, %s2814_s26  ;;  %1669 = vrot.lane.b32.xlu0 %v4068_v12, %s2813_s25 }
 0x2e7   : > { %v4076_v35 = vpop.permute.xlu1 %1433 }
 0x2e8   : > { %5753 = vst [vmem:[#allocation231_spill] sm:$0xff] %v4076_v35  ;;  %v4078_v6 = vpop.permute.xlu2 %1493  ;;  %v4080_v37 = vpop.permute.xlu0 %1431 }
 0x2e9   : > { %5754 = vst [vmem:[#allocation232_spill] sm:$0xff] %v4078_v6 }
 0x2ea   : > { %5755 = vst [vmem:[#allocation233_spill] sm:$0xff] %v4080_v37  ;;  %v255_v37 = vld [vmem:[#allocation2 + $0x68] sm:$0xff] }
 0x2ed   : > { %1717 = vrot.lane.b32.xlu1 %v3975_v56, %s2814_s26 }
 0x2ee   : > { %1719 = vrot.lane.b32.xlu2 %v3978_v44, %s2814_s26  ;;  %1715 = vrot.lane.b32.xlu0 %v3948_v24, %s2814_s26 }
 0x2ef   : > { %v4088_v32 = vpop.permute.xlu1 %1439 }
 0x2f0   : > { %5756 = vst [vmem:[#allocation234_spill] sm:$0xff] %v4088_v32  ;;  %v4090_v29 = vpop.permute.xlu2 %1499  ;;  %v4092_v23 = vpop.permute.xlu0 %1437  ;;  %v251_v32 = vld [vmem:[#allocation2 + $0x38] sm:$0xff] }
 0x2f1   : > { %5757 = vst [vmem:[#allocation235_spill] sm:$0xff] %v4090_v29 }
 0x2f2   : > { %5758 = vst [vmem:[#allocation236_spill] sm:$0xff] %v4092_v23  ;;  %v378_v23 = vsel %vm375_vm10, %v3228_v27, %v3100_v39 }
 0x2f3   : > { %v405_v29 = vadd.f32 %v378_v23, %v251_v32  ;;  %v380_v23 = vsel %vm375_vm10, %v3200_v2, %v3138_v50  ;;  %v451_v32 = vsel %vm448_vm11, %v3230_v28, %v3168_v58  ;;  %v247_v50 = vld [vmem:[#allocation2 + $0x8] sm:$0xff]  ;;  %v376_v58 = vsel %vm375_vm10, %v3232_v30, %v3124_v46 }
 0x2f4   : > { %v379_v46 = vsel %vm375_vm10, %v3255_v59, %v3136_v49  ;;  %v401_v55 = vadd.f32 %v376_v58, %v247_v50  ;;  %v5771_v58 = vld [vmem:[#allocation10_spill] sm:$0xff] }
 0x2f5   : > { %1723 = vrot.lane.b32.xlu1 %v4004_v61, %s2814_s26 }
 0x2f6   : > { %1725 = vrot.lane.b32.xlu2 %v3996_v16, %s2814_s26  ;;  %1721 = vrot.lane.b32.xlu0 %v3972_v42, %s2814_s26 }
 0x2f7   : > { %v4100_v35 = vpop.permute.xlu1 %1445 }
 0x2f8   : > { %5759 = vst [vmem:[#allocation237_spill] sm:$0xff] %v4100_v35  ;;  %v4102_v22 = vpop.permute.xlu2 %1505  ;;  %v4104_v6 = vpop.permute.xlu0 %1443  ;;  %v250_v35 = vld [vmem:[#allocation2 + $0x30] sm:$0xff] }
 0x2f9   : > { %5760 = vst [vmem:[#allocation238_spill] sm:$0xff] %v4102_v22 }
 0x2fa   : > { %5761 = vst [vmem:[#allocation239_spill] sm:$0xff] %v4104_v6  ;;  %v377_v6 = vsel %vm375_vm10, %v3188_v63, %v3126_v47  ;;  %v254_v47 = vld [vmem:[#allocation2 + $0x60] sm:$0xff]  ;;  %v409_v63 = vadd.f32 %v380_v23, %v255_v37  ;;  %v5768_v23 = vld [vmem:[#allocation27_spill] sm:$0xff] }
 0x2fb   : > { %v408_v16 = vadd.f32 %v3200_v2, %v254_v47 }
 0x2fd   : > { %1729 = vrot.lane.b32.xlu1 %v4023_v10, %s2814_s26  ;;  %v246_v10 = vld [vmem:[#allocation2] sm:$0xff] }
 0x2fe   : > { %1731 = vrot.lane.b32.xlu2 %v4026_v21, %s2814_s26  ;;  %1727 = vrot.lane.b32.xlu0 %v3999_v43, %s2814_s26  ;;  %v478_v21 = vadd.f32 %v451_v32, %v405_v29  ;;  %v400_v2 = vadd.f32 %v3232_v30, %v246_v10  ;;  %v452_v30 = vsel %vm448_vm11, %v3295_v25, %v3134_v48 }
 0x2ff   : > { %v4115_v22 = vpop.permute.xlu1 %1451  ;;  %v415_v48 = vadd.f32 %v4034_v52, %v383_v3  ;;  %v475_v3 = vadd.f32 %v3300_v26, %v402_v14  ;;  %v5779_v14 = vld [vmem:[#allocation37_spill] sm:$0xff] }
 0x300   : > { %5762 = vst [vmem:[#allocation240_spill] sm:$0xff] %v4115_v22  ;;  %v4120_v11 = vpop.permute.xlu2 %1511  ;;  %v4122_v39 = vpop.permute.xlu0 %1449  ;;  %v404_v22 = vadd.f32 %v3228_v27, %v250_v35  ;;  %v410_v27 = vadd.f32 %v3992_v18, %v3250_v8  ;;  %v449_v18 = vsel %vm448_vm11, %v3273_v20, %v3122_v41  ;;  %v406_v41 = vadd.f32 %v3968_v51, %v3255_v59 }
 0x301   : > { %5763 = vst [vmem:[#allocation241_spill] sm:$0xff] %v4120_v11  ;;  %v381_v11 = vsel %vm375_vm10, %v3250_v8, %v3108_v40  ;;  %v4148_v40 = vadd.f32 %v4043_v4, %v3213_v13  ;;  %v454_v13 = vsel %vm448_vm11, %v3253_v36, %v3180_v62  ;;  %v450_v62 = vsel %vm448_vm11, %v3300_v26, %v3166_v57  ;;  %v5778_v26 = vld [vmem:[#allocation26_spill] sm:$0xff] }
 0x302   : > { %5764 = vst [vmem:[#allocation242_spill] sm:$0xff] %v4122_v39  ;;  %v403_v39 = vadd.f32 %v3932_v53, %v377_v6  ;;  %v477_v53 = vadd.f32 %v3230_v28, %v404_v22  ;;  %v411_v35 = vadd.f32 %v4012_v19, %v381_v11  ;;  %v510_v28 = vadd.f32 %v478_v21, %v2973_v33  ;;  %v258_v22 = vld [vmem:[#allocation2 + $0x90] sm:$0xff] }
 0x303   : > { %v483_v49 = vadd.f32 %v3253_v36, %v410_v27  ;;  %v407_v8 = vadd.f32 %v3961_v31, %v379_v46  ;;  %v473_v10 = vadd.f32 %v3273_v20, %v400_v2  ;;  %v474_v4 = vadd.f32 %v449_v18, %v401_v55  ;;  %v259_v31 = vld [vmem:[#allocation2 + $0x98] sm:$0xff]  ;;  %v5773_v2 = vld [vmem:[#allocation45_spill] sm:$0xff] }
 0x304   : > { %v453_v36 = vsel %vm448_vm11, %v3322_v15, %v3178_v60  ;;  %v484_v21 = vadd.f32 %v454_v13, %v411_v35  ;;  %v479_v57 = vadd.f32 %v3295_v25, %v406_v41  ;;  %v509_v19 = vadd.f32 %v477_v53, %v3051_v9  ;;  %v5767_v60 = vld [vmem:[#allocation51_spill] sm:$0xff]  ;;  %v5769_v25 = vld [vmem:[#allocation18_spill] sm:$0xff]  ;;  %v5770_v9 = vld [vmem:[#allocation17_spill] sm:$0xff] }
 0x305   : > { %1735 = vrot.lane.b32.xlu1 %v4055_v7, %s2814_s26  ;;  %v382_v20 = vsel %vm375_vm10, %v3277_v38, %v3150_v54  ;;  %v480_v11 = vadd.f32 %v452_v30, %v407_v8  ;;  %v476_v6 = vadd.f32 %v450_v62, %v403_v39  ;;  %v456_v37 = vsel %vm448_vm11, %v5767_v60, %v3190_v0  ;;  %v5772_v54 = vld [vmem:[#allocation23_spill] sm:$0xff]  ;;  %v5774_v35 = vld [vmem:[#allocation20_spill] sm:$0xff]  ;;  %v5777_v13 = vld [vmem:[#allocation9_spill] sm:$0xff] }
 0x306   : > { %1737 = vrot.lane.b32.xlu2 %v4047_v5, %s2814_s26  ;;  %1733 = vrot.lane.b32.xlu0 %v4020_v45, %s2814_s26  ;;  %v412_v29 = vadd.f32 %v3277_v38, %v258_v22  ;;  %v482_v52 = vadd.f32 %v453_v36, %v409_v63  ;;  %v583_v32 = vadd.f32 %v5768_v23, %v510_v28  ;;  %v5775_v38 = vld [vmem:[#allocation13_spill] sm:$0xff]  ;;  %v5776_v18 = vld [vmem:[#allocation12_spill] sm:$0xff]  ;;  %v5780_v8 = vld [vmem:[#allocation11_spill] sm:$0xff] }
 0x307   : > { %v4178_v33 = vpop.permute.xlu1 %1497  ;;  %v515_v47 = vadd.f32 %v483_v49, %v5769_v25  ;;  %v505_v50 = vadd.f32 %v473_v10, %v5770_v9  ;;  %v506_v27 = vadd.f32 %v474_v4, %v5771_v58  ;;  %v455_v39 = vsel %vm448_vm11, %v5773_v2, %v5772_v54  ;;  %v5781_v36 = vld [vmem:[#allocation28_spill] sm:$0xff]  ;;  %v5788_v58 = vld [vmem:[#allocation22_spill] sm:$0xff] }
 0x308   : > { %5765 = vst [vmem:[#allocation243_spill] sm:$0xff] %v4178_v33  ;;  %v4185_v59 = vpop.permute.xlu2 %1517  ;;  %v4187_v51 = vpop.permute.xlu0 %1495  ;;  %v413_v53 = vadd.f32 %v382_v20, %v259_v31  ;;  %v511_v0 = vadd.f32 %v479_v57, %v5774_v35  ;;  %v488_v46 = vadd.f32 %v456_v37, %v415_v48  ;;  %v516_v63 = vadd.f32 %v484_v21, %v5775_v38  ;;  %v5782_v48 = vld [vmem:[#allocation41_spill] sm:$0xff]  ;;  %v5783_v57 = vld [vmem:[#allocation16_spill] sm:$0xff]  ;;  %v5792_v38 = vld [vmem:[#allocation54_spill] sm:$0xff] }
 0x309   : > { %5766 = vst [vmem:[#allocation244_spill] sm:$0xff] %v4187_v51  ;;  %v512_v55 = vadd.f32 %v480_v11, %v5776_v18  ;;  %v508_v28 = vadd.f32 %v476_v6, %v5777_v13  ;;  %v485_v49 = vadd.f32 %v5773_v2, %v412_v29  ;;  %v554_v41 = vsel %vm553_vm12, %v5779_v14, %v5778_v26  ;;  %v5785_v37 = vld [vmem:[#allocation24_spill] sm:$0xff]  ;;  %v5786_v29 = vld [vmem:[#allocation49_spill] sm:$0xff]  ;;  %v5794_v13 = vld [vmem:[#allocation55_spill] sm:$0xff] }
 0x30a   : > { %v486_v30 = vadd.f32 %v455_v39, %v413_v53  ;;  %v481_v62 = vadd.f32 %v3322_v15, %v408_v16  ;;  %v514_v10 = vadd.f32 %v482_v52, %v5780_v8  ;;  %v557_v21 = vsel %vm553_vm12, %v5782_v48, %v5781_v36  ;;  %v5787_v52 = vld [vmem:[#allocation14_spill] sm:$0xff]  ;;  %v5790_v2 = vld [vmem:[#allocation52_spill] sm:$0xff]  ;;  %v5791_v53 = vld [vmem:[#allocation19_spill] sm:$0xff] }
 0x30b   : > { %v507_v22 = vadd.f32 %v475_v3, %v5783_v57  ;;  %v579_v31 = vadd.f32 %v5778_v26, %v506_v27  ;;  %v578_v20 = vadd.f32 %v554_v41, %v505_v50  ;;  %v555_v15 = vsel %vm553_vm12, %v5786_v29, %v5785_v37  ;;  %v5789_v3 = vld [vmem:[#allocation25_spill] sm:$0xff]  ;;  %v5796_v14 = vld [vmem:[#allocation50_spill] sm:$0xff]  ;;  %v5861_v51 = vld [vmem:[#allocation112_spill] sm:$0xff] }
 0x30c   : > { %v487_v16 = vadd.f32 %v5767_v60, %v4148_v40  ;;  %v520_v25 = vadd.f32 %v488_v46, %v5787_v52  ;;  %v584_v9 = vadd.f32 %v557_v21, %v511_v0  ;;  %v517_v54 = vadd.f32 %v485_v49, %v5788_v58  ;;  %v5793_v40 = vld [vmem:[#allocation15_spill] sm:$0xff]  ;;  %v5795_v49 = vld [vmem:[#allocation57_spill] sm:$0xff]  ;;  %v5797_v41 = vld [vmem:[#allocation58_spill] sm:$0xff] }
 0x30d   : > { %1741 = vrot.lane.b32.xlu1 %v4068_v12, %s2814_s26  ;;  %v558_v50 = vsel %vm553_vm12, %v5790_v2, %v5789_v3  ;;  %v581_v27 = vadd.f32 %v5785_v37, %v508_v28  ;;  %v585_v39 = vadd.f32 %v5781_v36, %v512_v55  ;;  %v513_v35 = vadd.f32 %v481_v62, %v5791_v53  ;;  %v5798_v62 = vld [vmem:[#allocation21_spill] sm:$0xff]  ;;  %v5799_v36 = vld [vmem:[#allocation60_spill] sm:$0xff]  ;;  %v5800_v48 = vld [vmem:[#allocation46_spill] sm:$0xff] }
 0x30e   : > { %1815 = vrot.lane.b32.xlu2 %v3953_v17, %s2815_s27  ;;  %1739 = vrot.lane.b32.xlu0 %v4050_v1, %s2814_s26  ;;  %v556_v18 = vsel %vm553_vm12, %v5792_v38, %v5768_v23  ;;  %v518_v60 = vadd.f32 %v486_v30, %v5793_v40  ;;  %v587_v0 = vadd.f32 %v5789_v3, %v514_v10  ;;  %v5801_v21 = vld [vmem:[#allocation56_spill] sm:$0xff]  ;;  %v5806_v3 = vld [vmem:[#allocation66_spill] sm:$0xff]  ;;  %v5807_v2 = vld [vmem:[#allocation53_spill] sm:$0xff] }
 0x30f   : > { %v4223_v4 = vpop.permute.xlu1 %1503  ;;  %v580_v46 = vadd.f32 %v555_v15, %v507_v22  ;;  %v559_v26 = vsel %vm553_vm12, %v5795_v49, %v5794_v13  ;;  %v561_v28 = vsel %vm553_vm12, %v5797_v41, %v5796_v14  ;;  %v586_v55 = vadd.f32 %v558_v50, %v513_v35  ;;  %v5802_v15 = vld [vmem:[#allocation61_spill] sm:$0xff]  ;;  %v5808_v53 = vld [vmem:[#allocation78_spill] sm:$0xff] }
 0x310   : > { %v4230_v11 = vpop.permute.xlu2 %1523  ;;  %v4232_v6 = vpop.permute.xlu0 %1501  ;;  %v519_v8 = vadd.f32 %v487_v16, %v5798_v62  ;;  %v560_v23 = vsel %vm553_vm12, %v5800_v48, %v5799_v36  ;;  %v593_v30 = vadd.f32 %v5796_v14, %v520_v25  ;;  %v582_v10 = vadd.f32 %v556_v18, %v509_v19  ;;  %v5803_v16 = vld [vmem:[#allocation63_spill] sm:$0xff]  ;;  %v5804_v25 = vld [vmem:[#allocation64_spill] sm:$0xff]  ;;  %v5811_v40 = vld [vmem:[#allocation62_spill] sm:$0xff] }
 0x311   : > { %5784 = vst [vmem:[#allocation51_spill] sm:$0xff] %v4230_v11  ;;  %v656_v57 = vadd.f32 %v5801_v21, %v583_v32  ;;  %v589_v22 = vadd.f32 %v5794_v13, %v516_v63  ;;  %v588_v37 = vadd.f32 %v559_v26, %v515_v47  ;;  %v627_v52 = vsel %vm626_vm13, %v5803_v16, %v5802_v15  ;;  %v5809_v47 = vld [vmem:[#allocation65_spill] sm:$0xff]  ;;  %v5812_v26 = vld [vmem:[#allocation67_spill] sm:$0xff]  ;;  %v5814_v14 = vld [vmem:[#allocation70_spill] sm:$0xff] }
 0x312   : > { %v592_v29 = vadd.f32 %v561_v28, %v519_v8  ;;  %v629_v19 = vsel %vm626_vm13, %v5804_v25, %v5801_v21  ;;  %v590_v32 = vadd.f32 %v560_v23, %v517_v54  ;;  %v591_v63 = vadd.f32 %v5799_v36, %v518_v60  ;;  %v5813_v54 = vld [vmem:[#allocation69_spill] sm:$0xff]  ;;  %v5815_v36 = vld [vmem:[#allocation72_spill] sm:$0xff]  ;;  %v5816_v48 = vld [vmem:[#allocation59_spill] sm:$0xff] }
 0x313   : > { %v628_v50 = vsel %vm626_vm13, %v5807_v2, %v5806_v3  ;;  %v634_v35 = vsel %vm626_vm13, %v5809_v47, %v5808_v53  ;;  %v662_v13 = vadd.f32 %v5811_v40, %v589_v22  ;;  %v652_v49 = vadd.f32 %v5802_v15, %v579_v31  ;;  %v5817_v31 = vld [vmem:[#allocation73_spill] sm:$0xff]  ;;  %v5818_v15 = vld [vmem:[#allocation75_spill] sm:$0xff] }
 0x314   : > { %v630_v60 = vsel %vm626_vm13, %v5813_v54, %v5812_v26  ;;  %v632_v41 = vsel %vm626_vm13, %v5814_v14, %v5811_v40  ;;  %v651_v28 = vadd.f32 %v627_v52, %v578_v20  ;;  %v655_v62 = vadd.f32 %v629_v19, %v582_v10  ;;  %v5819_v47 = vld [vmem:[#allocation71_spill] sm:$0xff]  ;;  %v5821_v52 = vld [vmem:[#allocation76_spill] sm:$0xff] }
 0x315   : > { %1819 = vrot.lane.b32.xlu1 %v3948_v24, %s2815_s27  ;;  %v654_v8 = vadd.f32 %v5806_v3, %v581_v27  ;;  %v631_v23 = vsel %vm626_vm13, %v5816_v48, %v5815_v36  ;;  %v653_v21 = vadd.f32 %v628_v50, %v580_v46  ;;  %v658_v22 = vadd.f32 %v5812_v26, %v585_v39  ;;  %v5820_v27 = vld [vmem:[#allocation68_spill] sm:$0xff]  ;;  %v5822_v3 = vld [vmem:[#allocation93_spill] sm:$0xff]  ;;  %v5823_v50 = vld [vmem:[#allocation79_spill] sm:$0xff] }
 0x316   : > { %1821 = vrot.lane.b32.xlu2 %v3975_v56, %s2815_s27  ;;  %1817 = vrot.lane.b32.xlu0 %v3945_v34, %s2815_s27  ;;  %v633_v16 = vsel %vm626_vm13, %v5818_v15, %v5817_v31  ;;  %v665_v25 = vadd.f32 %v634_v35, %v592_v29  ;;  %v657_v2 = vadd.f32 %v630_v60, %v584_v9  ;;  %v5824_v35 = vld [vmem:[#allocation81_spill] sm:$0xff]  ;;  %v5826_v26 = vld [vmem:[#allocation74_spill] sm:$0xff] }
 0x317   : > { %v4277_v58 = vpop.permute.xlu1 %1509  ;;  %v800_v54 = vadd.f32 %v5819_v47, %v655_v62  ;;  %v661_v40 = vadd.f32 %v632_v41, %v588_v37  ;;  %v660_v20 = vadd.f32 %v5815_v36, %v587_v0  ;;  %v659_v10 = vadd.f32 %v631_v23, %v586_v55  ;;  %v5825_v0 = vld [vmem:[#allocation83_spill] sm:$0xff]  ;;  %v5827_v60 = vld [vmem:[#allocation82_spill] sm:$0xff]  ;;  %v5830_v62 = vld [vmem:[#allocation77_spill] sm:$0xff] }
 0x318   : > { %5805 = vst [vmem:[#allocation27_spill] sm:$0xff] %v4277_v58  ;;  %v4286_v38 = vpop.permute.xlu2 %1643  ;;  %v4288_v18 = vpop.permute.xlu0 %1507  ;;  %v772_v19 = vsel %vm375_vm10, %v5821_v52, %v5820_v27  ;;  %v796_v46 = vadd.f32 %v5821_v52, %v651_v28  ;;  %v810_v39 = vadd.f32 %v5822_v3, %v665_v25  ;;  %v664_v29 = vadd.f32 %v5817_v31, %v591_v63  ;;  %v5828_v63 = vld [vmem:[#allocation115_spill] sm:$0xff]  ;;  %v5831_v31 = vld [vmem:[#allocation84_spill] sm:$0xff] }
 0x319   : > { %5810 = vst [vmem:[#allocation18_spill] sm:$0xff] %v4288_v18  ;;  %v663_v9 = vadd.f32 %v633_v16, %v590_v32  ;;  %v773_v37 = vsel %vm375_vm10, %v5824_v35, %v5823_v50  ;;  %v775_v14 = vsel %vm375_vm10, %v5827_v60, %v5826_v26  ;;  %v802_v41 = vadd.f32 %v5827_v60, %v657_v2  ;;  %v5833_v2 = vld [vmem:[#allocation85_spill] sm:$0xff]  ;;  %v5834_v52 = vld [vmem:[#allocation87_spill] sm:$0xff]  ;;  %v5838_v26 = vld [vmem:[#allocation90_spill] sm:$0xff] }
 0x31a   : > { %v868_v55 = vadd.f32 %v5825_v0, %v796_v46  ;;  %v882_v32 = vadd.f32 %v5828_v63, %v810_v39  ;;  %v806_v36 = vadd.f32 %v5830_v62, %v661_v40  ;;  %v797_v48 = vadd.f32 %v772_v19, %v652_v49  ;;  %v5835_v39 = vld [vmem:[#allocation89_spill] sm:$0xff]  ;;  %v5836_v40 = vld [vmem:[#allocation80_spill] sm:$0xff]  ;;  %v5839_v60 = vld [vmem:[#allocation142_spill] sm:$0xff] }
 0x31b   : > { %v666_v23 = vadd.f32 %v5808_v53, %v593_v30  ;;  %v774_v15 = vsel %vm375_vm10, %v5819_v47, %v5831_v31  ;;  %v798_v27 = vadd.f32 %v5824_v35, %v653_v21  ;;  %v776_v46 = vsel %vm375_vm10, %v5834_v52, %v5833_v2  ;;  %v5837_v49 = vld [vmem:[#allocation88_spill] sm:$0xff]  ;;  %v5840_v31 = vld [vmem:[#allocation125_spill] sm:$0xff] }
 0x31c   : > { %v874_v50 = vadd.f32 %v5835_v39, %v802_v41  ;;  %v778_v30 = vsel %vm375_vm10, %v5837_v49, %v5836_v40  ;;  %v799_v53 = vadd.f32 %v773_v37, %v654_v8  ;;  %v803_v19 = vadd.f32 %v775_v14, %v658_v22  ;;  %v5841_v2 = vld [vmem:[#allocation48_spill] sm:$0xff]  ;;  %v5842_v41 = vld [vmem:[#allocation30_spill] sm:$0xff]  ;;  %v5843_v37 = vld [vmem:[#allocation155_spill] sm:$0xff] }
 0x31d   : > { %1825 = vrot.lane.b32.xlu1 %v3972_v42, %s2815_s27  ;;  %v777_v47 = vsel %vm375_vm10, %v5830_v62, %v5838_v26  ;;  %v955_v21 = vsel %vm553_vm12, %v5840_v31, %v5839_v60  ;;  %v801_v35 = vadd.f32 %v774_v15, %v656_v57  ;;  %v804_v58 = vadd.f32 %v5834_v52, %v659_v10  ;;  %v5844_v14 = vld [vmem:[#allocation157_spill] sm:$0xff]  ;;  %v5845_v26 = vld [vmem:[#allocation86_spill] sm:$0xff]  ;;  %v5847_v15 = vld [vmem:[#allocation36_spill] sm:$0xff] }
 0x31e   : > { %1827 = vrot.lane.b32.xlu2 %v4004_v61, %s2815_s27  ;;  %1823 = vrot.lane.b32.xlu0 %v3978_v44, %s2815_s27  ;;  %v914_v18 = vadd.f32 %v882_v32, %v5841_v2  ;;  %v4357_v33 = vadd.f32 %v868_v55, %v5842_v41  ;;  %v808_v8 = vadd.f32 %v5837_v49, %v663_v9  ;;  %v5848_v9 = vld [vmem:[#allocation96_spill] sm:$0xff]  ;;  %v5849_v55 = vld [vmem:[#allocation98_spill] sm:$0xff]  ;;  %v5856_v31 = vld [vmem:[#allocation95_spill] sm:$0xff] }
 0x31f   : > { %v4329_v28 = vpop.permute.xlu1 %1515  ;;  %v809_v22 = vadd.f32 %v778_v30, %v664_v29  ;;  %v1027_v62 = vsel %vm626_vm13, %v5844_v14, %v5843_v37  ;;  %v807_v40 = vadd.f32 %v777_v47, %v662_v13  ;;  %v4367_v10 = vadd.f32 %v874_v50, %v5847_v15  ;;  %v5850_v52 = vld [vmem:[#allocation100_spill] sm:$0xff]  ;;  %v5852_v50 = vld [vmem:[#allocation213_spill] sm:$0xff]  ;;  %v5857_v41 = vld [vmem:[#allocation106_spill] sm:$0xff] }
 0x320   : > { %5829 = vst [vmem:[#allocation17_spill] sm:$0xff] %v4329_v28  ;;  %v4336_v16 = vpop.permute.xlu2 %1649  ;;  %v4338_v25 = vpop.permute.xlu0 %1513  ;;  %v5846_v28 = vld [vmem:[#allocation94_spill] sm:$0xff]  ;;  %v986_v32 = vadd.f32 %v955_v21, %v914_v18  ;;  %v844_v29 = vsel %vm448_vm11, %v5825_v0, %v5848_v9  ;;  %v846_v13 = vsel %vm448_vm11, %v5850_v52, %v5849_v55  ;;  %v5853_v18 = vld [vmem:[#allocation91_spill] sm:$0xff]  ;;  %v5854_v30 = vld [vmem:[#allocation92_spill] sm:$0xff]  ;;  %v880_v21 = vadd.f32 %v5856_v31, %v808_v8 }
 0x321   : > { %5832 = vst [vmem:[#allocation10_spill] sm:$0xff] %v4338_v25  ;;  %v805_v25 = vadd.f32 %v776_v46, %v660_v20  ;;  %v845_v57 = vsel %vm448_vm11, %v5846_v28, %v5845_v26  ;;  %v870_v20 = vadd.f32 %v5846_v28, %v798_v27  ;;  %v5851_v46 = vld [vmem:[#allocation220_spill] sm:$0xff]  ;;  %v779_v49 = vsel %vm375_vm10, %v5822_v3, %v5853_v18  ;;  %v5858_v55 = vld [vmem:[#allocation166_spill] sm:$0xff] }
 0x322   : > { %v5855_v28 = vld [vmem:[#allocation104_spill] sm:$0xff]  ;;  %v1058_v47 = vadd.f32 %v1027_v62, %v986_v32  ;;  %v871_v2 = vadd.f32 %v845_v57, %v799_v53  ;;  %v847_v14 = vsel %vm448_vm11, %v5835_v39, %v5857_v41  ;;  %v869_v9 = vadd.f32 %v844_v29, %v797_v48  ;;  %v5859_v53 = vld [vmem:[#allocation33_spill] sm:$0xff] }
 0x323   : > { %v848_v27 = vsel %vm448_vm11, %v5855_v28, %v5854_v30  ;;  %v872_v62 = vadd.f32 %v5850_v52, %v800_v54  ;;  %v873_v32 = vadd.f32 %v846_v13, %v801_v35  ;;  %v811_v8 = vadd.f32 %v779_v49, %v666_v23  ;;  %v5863_v29 = vld [vmem:[#allocation181_spill] sm:$0xff] }
 0x324   : > { %v1135_v18 = vadd.f32 %v5858_v55, %v1058_v47  ;;  %v902_v57 = vadd.f32 %v870_v20, %v5859_v53  ;;  %v876_v30 = vadd.f32 %v5855_v28, %v804_v58  ;;  %v877_v39 = vadd.f32 %v848_v27, %v805_v25  ;;  %v5864_v52 = vld [vmem:[#allocation117_spill] sm:$0xff]  ;;  %v5865_v20 = vld [vmem:[#allocation31_spill] sm:$0xff]  ;;  %v5866_v25 = vld [vmem:[#allocation44_spill] sm:$0xff] }
 0x325   : > { %1831 = vrot.lane.b32.xlu1 %v3999_v43, %s2815_s27  ;;  %v875_v41 = vadd.f32 %v847_v14, %v803_v19  ;;  %v878_v35 = vadd.f32 %v5861_v51, %v806_v36  ;;  %v850_v23 = vsel %vm448_vm11, %v5856_v31, %v5864_v52  ;;  %v903_v58 = vadd.f32 %v871_v2, %v5865_v20  ;;  %v5867_v13 = vld [vmem:[#allocation29_spill] sm:$0xff]  ;;  %v5869_v27 = vld [vmem:[#allocation32_spill] sm:$0xff]  ;;  %v5871_v14 = vld [vmem:[#allocation111_spill] sm:$0xff] }
 0x326   : > { %1833 = vrot.lane.b32.xlu2 %v5851_v46, %s2815_s27  ;;  %1829 = vrot.lane.b32.xlu0 %v5852_v50, %s2815_s27  ;;  %v5860_v46 = vld [vmem:[#allocation110_spill] sm:$0xff]  ;;  %v1243_v54 = vadd.f32 %v5863_v29, %v1135_v18  ;;  %v4417_v19 = vadd.f32 %v880_v21, %v5866_v25  ;;  %v901_v49 = vadd.f32 %v869_v9, %v5867_v13  ;;  %v5872_v31 = vld [vmem:[#allocation124_spill] sm:$0xff]  ;;  %v5873_v21 = vld [vmem:[#allocation221_spill] sm:$0xff] }
 0x327   : > { %v1522_v0 = vpop.permute.xlu1 %1521  ;;  %v904_v47 = vadd.f32 %v872_v62, %v5869_v27  ;;  %v950_v2 = vsel %vm553_vm12, %v5872_v31, %v5871_v14  ;;  %v5874_v9 = vld [vmem:[#allocation40_spill] sm:$0xff]  ;;  %v5875_v62 = vld [vmem:[#allocation34_spill] sm:$0xff]  ;;  %v881_v53 = vadd.f32 %v850_v23, %v809_v22  ;;  %v5881_v27 = vld [vmem:[#allocation201_spill] sm:$0xff] }
 0x328   : > { %v4392_v26 = vpop.permute.xlu2 %1655  ;;  %v4396_v15 = vsel %vm1525_vm14, %v1522_v0, %v4230_v11  ;;  %v4398_v3 = vpop.permute.xlu0 %1519  ;;  %v849_v0 = vsel %vm448_vm11, %v5861_v51, %v5860_v46  ;;  %v5862_v11 = vld [vmem:[#allocation99_spill] sm:$0xff]  ;;  %v907_v18 = vadd.f32 %v875_v41, %v5875_v62  ;;  %v5879_v25 = vld [vmem:[#allocation134_spill] sm:$0xff] }
 0x329   : > { %v851_v48 = vsel %vm448_vm11, %v5828_v63, %v5862_v11  ;;  %v5868_v46 = vld [vmem:[#allocation35_spill] sm:$0xff]  ;;  %v5870_v11 = vld [vmem:[#allocation194_spill] sm:$0xff]  ;;  %v879_v51 = vadd.f32 %v849_v0, %v807_v40 }
 0x32a   : > { %v905_v28 = vadd.f32 %v873_v32, %v5868_v46  ;;  %v1315_v63 = vadd.f32 %v5870_v11, %v1243_v54  ;;  %v883_v36 = vadd.f32 %v851_v48, %v811_v8  ;;  %v908_v32 = vadd.f32 %v876_v30, %v5874_v9  ;;  %v5876_v54 = vld [vmem:[#allocation38_spill] sm:$0xff]  ;;  %v5877_v8 = vld [vmem:[#allocation39_spill] sm:$0xff]  ;;  %v5878_v48 = vld [vmem:[#allocation148_spill] sm:$0xff] }
 0x32b   : > { %v909_v52 = vadd.f32 %v877_v39, %v5876_v54  ;;  %v910_v0 = vadd.f32 %v878_v35, %v5877_v8  ;;  %v1022_v13 = vsel %vm626_vm13, %v5879_v25, %v5878_v48  ;;  %v5880_v46 = vld [vmem:[#allocation224_spill] sm:$0xff]  ;;  %v5883_v22 = vld [vmem:[#allocation119_spill] sm:$0xff]  ;;  %v5884_v39 = vld [vmem:[#allocation121_spill] sm:$0xff] }
 0x32c   : > { %v4436_v40 = vadd.f32 %v5871_v14, %v905_v28  ;;  %v1388_v31 = vsel %vm553_vm12, %v5881_v27, %v5880_v46  ;;  %v948_v23 = vsel %vm553_vm12, %v5884_v39, %v5883_v22  ;;  %v976_v28 = vadd.f32 %v950_v2, %v904_v47  ;;  %v5885_v14 = vld [vmem:[#allocation114_spill] sm:$0xff]  ;;  %v5887_v62 = vld [vmem:[#allocation43_spill] sm:$0xff]  ;;  %v5890_v25 = vld [vmem:[#allocation105_spill] sm:$0xff] }
 0x32d   : > { %1837 = vrot.lane.b32.xlu1 %v4020_v45, %s2815_s27  ;;  %v1347_v9 = vadd.f32 %v1315_v63, %v5885_v14  ;;  %v4458_v54 = vadd.f32 %v879_v51, %v5887_v62  ;;  %v5889_v8 = vld [vmem:[#allocation126_spill] sm:$0xff]  ;;  %v5895_v63 = vld [vmem:[#allocation128_spill] sm:$0xff]  ;;  %v973_v51 = vadd.f32 %v5883_v22, %v901_v49  ;;  %v972_v62 = vadd.f32 %v948_v23, %v4357_v33  ;;  %v5902_v49 = vld [vmem:[#allocation129_spill] sm:$0xff] }
 0x32e   : > { %1839 = vrot.lane.b32.xlu2 %v4055_v7, %s2815_s27  ;;  %1835 = vrot.lane.b32.xlu0 %v5873_v21, %s2815_s27  ;;  %v949_v27 = vsel %vm553_vm12, %v5890_v25, %v5889_v8  ;;  %v5891_v7 = vld [vmem:[#allocation47_spill] sm:$0xff]  ;;  %v5892_v21 = vld [vmem:[#allocation240_spill] sm:$0xff]  ;;  %v5893_v46 = vld [vmem:[#allocation242_spill] sm:$0xff]  ;;  %v975_v25 = vadd.f32 %v5889_v8, %v903_v58  ;;  %v979_v33 = vadd.f32 %v5895_v63, %v907_v18 }
 0x32f   : > { %v1642_v20 = vpop.permute.xlu1 %1641  ;;  %5888 = vst [vmem:[#allocation20_spill] sm:$0xff] %v4458_v54  ;;  %v915_v45 = vadd.f32 %v883_v36, %v5891_v7  ;;  %v1460_v39 = vsel %vm626_vm13, %v5893_v46, %v5892_v21  ;;  %v5894_v47 = vld [vmem:[#allocation42_spill] sm:$0xff]  ;;  %v5897_v54 = vld [vmem:[#allocation120_spill] sm:$0xff]  ;;  %v5898_v7 = vld [vmem:[#allocation133_spill] sm:$0xff]  ;;  %v974_v61 = vadd.f32 %v949_v27, %v902_v57 }
 0x330   : > { %v4445_v30 = vpop.permute.xlu2 %1661  ;;  %v4447_v41 = vpop.permute.xlu0 %1639  ;;  %v913_v2 = vadd.f32 %v881_v53, %v5894_v47  ;;  %v5896_v14 = vld [vmem:[#allocation130_spill] sm:$0xff]  ;;  %v953_v36 = vsel %vm553_vm12, %v5898_v7, %v5897_v54  ;;  %v5899_v46 = vld [vmem:[#allocation135_spill] sm:$0xff]  ;;  %v5900_v21 = vld [vmem:[#allocation116_spill] sm:$0xff] }
 0x331   : > { %5882 = vst [vmem:[#allocation23_spill] sm:$0xff] %v4447_v41  ;;  %v4455_v35 = vsel %vm375_vm10, %v4447_v41, %v1642_v20  ;;  %v951_v20 = vsel %vm553_vm12, %v5896_v14, %v5895_v63  ;;  %v1419_v41 = vadd.f32 %v1388_v31, %v1347_v9  ;;  %v952_v53 = vsel %vm553_vm12, %v5900_v21, %v5899_v46  ;;  %v5901_v47 = vld [vmem:[#allocation158_spill] sm:$0xff]  ;;  %v5903_v31 = vld [vmem:[#allocation137_spill] sm:$0xff]  ;;  %v5910_v63 = vld [vmem:[#allocation152_spill] sm:$0xff] }
 0x332   : > { %5886 = vst [vmem:[#allocation45_spill] sm:$0xff] %v4455_v35  ;;  %v1048_v35 = vadd.f32 %v1022_v13, %v976_v28  ;;  %v1045_v13 = vadd.f32 %v5902_v49, %v973_v51  ;;  %v978_v58 = vadd.f32 %v951_v20, %v4367_v10  ;;  %v982_v57 = vadd.f32 %v953_v36, %v910_v0  ;;  %v5905_v10 = vld [vmem:[#allocation140_spill] sm:$0xff]  ;;  %v5907_v8 = vld [vmem:[#allocation145_spill] sm:$0xff]  ;;  %v5911_v20 = vld [vmem:[#allocation159_spill] sm:$0xff] }
 0x333   : > { %v1491_v14 = vadd.f32 %v1460_v39, %v1419_v41  ;;  %v981_v21 = vadd.f32 %v5899_v46, %v909_v52  ;;  %v5904_v41 = vld [vmem:[#allocation139_spill] sm:$0xff]  ;;  %v980_v18 = vadd.f32 %v952_v53, %v908_v32  ;;  %v1020_v9 = vsel %vm626_vm13, %v5905_v10, %v5902_v49  ;;  %v5913_v46 = vld [vmem:[#allocation138_spill] sm:$0xff] }
 0x334   : > { %v1125_v43 = vadd.f32 %v5901_v47, %v1048_v35  ;;  %v954_v22 = vsel %vm553_vm12, %v5904_v41, %v5903_v31  ;;  %v5906_v35 = vld [vmem:[#allocation143_spill] sm:$0xff]  ;;  %v1051_v53 = vadd.f32 %v5913_v46, %v979_v33  ;;  %v5914_v49 = vld [vmem:[#allocation146_spill] sm:$0xff]  ;;  %v1044_v10 = vadd.f32 %v1020_v9, %v972_v62  ;;  %v5920_v9 = vld [vmem:[#allocation141_spill] sm:$0xff] }
 0x335   : > { %1843 = vrot.lane.b32.xlu1 %v4050_v1, %s2815_s27  ;;  %v1564_v23 = vadd.f32 %v4396_v15, %v1491_v14  ;;  %v1021_v27 = vsel %vm626_vm13, %v5907_v8, %v5906_v35  ;;  %v5909_v15 = vld [vmem:[#allocation144_spill] sm:$0xff]  ;;  %v985_v14 = vadd.f32 %v5903_v31, %v913_v2  ;;  %v1023_v41 = vsel %vm626_vm13, %v5914_v49, %v5913_v46  ;;  %v5915_v8 = vld [vmem:[#allocation187_spill] sm:$0xff]  ;;  %v5919_v62 = vld [vmem:[#allocation154_spill] sm:$0xff] }
 0x336   : > { %1845 = vrot.lane.b32.xlu2 %v4068_v12, %s2815_s27  ;;  %1841 = vrot.lane.b32.xlu0 %v4047_v5, %s2815_s27  ;;  %v1026_v32 = vsel %vm626_vm13, %v5910_v63, %v5909_v15  ;;  %v1233_v51 = vadd.f32 %v5911_v20, %v1125_v43  ;;  %v987_v43 = vadd.f32 %v5839_v60, %v915_v45  ;;  %v5917_v33 = vld [vmem:[#allocation151_spill] sm:$0xff]  ;;  %v5926_v49 = vld [vmem:[#allocation233_spill] sm:$0xff] }
 0x337   : > { %v4495_v28 = vpop.permute.xlu1 %1647  ;;  %v1050_v46 = vadd.f32 %v1023_v41, %v978_v58  ;;  %v1025_v45 = vsel %vm626_vm13, %v5920_v9, %v5919_v62  ;;  %v5927_v41 = vld [vmem:[#allocation211_spill] sm:$0xff] }
 0x338   : > { %v4503_v0 = vpop.permute.xlu2 %1667  ;;  %v4508_v52 = vsel %vm375_vm10, %v4495_v28, %v4336_v16  ;;  %v1646_v39 = vpop.permute.xlu0 %1645  ;;  %v984_v16 = vadd.f32 %v954_v22, %v4417_v19  ;;  %v1305_v63 = vadd.f32 %v5915_v8, %v1233_v51  ;;  %v5918_v19 = vld [vmem:[#allocation147_spill] sm:$0xff] }
 0x339   : > { %5908 = vst [vmem:[#allocation13_spill] sm:$0xff] %v4508_v52  ;;  %v4515_v7 = vadd.f32 %v4503_v0, %v1564_v23  ;;  %v4519_v36 = vsel %vm375_vm10, %v4286_v38, %v1646_v39  ;;  %v1047_v23 = vadd.f32 %v5906_v35, %v975_v25  ;;  %v1057_v39 = vadd.f32 %v5909_v15, %v985_v14  ;;  %v5916_v52 = vld [vmem:[#allocation149_spill] sm:$0xff]  ;;  %v5921_v25 = vld [vmem:[#allocation192_spill] sm:$0xff] }
 0x33a   : > { %v1024_v2 = vsel %vm626_vm13, %v5917_v33, %v5916_v52  ;;  %v1056_v31 = vadd.f32 %v1026_v32, %v984_v16  ;;  %v1121_v22 = vadd.f32 %v5918_v19, %v1044_v10  ;;  %v1122_v12 = vadd.f32 %v5918_v19, %v1045_v13  ;;  %v5922_v35 = vld [vmem:[#allocation200_spill] sm:$0xff]  ;;  %v5923_v13 = vld [vmem:[#allocation150_spill] sm:$0xff] }
 0x33b   : > { %5912 = vst [vmem:[#allocation12_spill] sm:$0xff] %v4515_v7  ;;  %v1046_v7 = vadd.f32 %v1021_v27, %v974_v61  ;;  %v1049_v61 = vadd.f32 %v5878_v48, %v4436_v40  ;;  %v4544_v60 = vadd.f32 %v5916_v52, %v981_v21  ;;  %v1383_v27 = vsel %vm553_vm12, %v5922_v35, %v5921_v25  ;;  %v5924_v40 = vld [vmem:[#allocation101_spill] sm:$0xff]  ;;  %v5932_v35 = vld [vmem:[#allocation164_spill] sm:$0xff] }
 0x33c   : > { %v1127_v58 = vadd.f32 %v5923_v13, %v1050_v46  ;;  %v4555_v15 = vadd.f32 %v5923_v13, %v1051_v53  ;;  %v4557_v32 = vadd.f32 %v1024_v2, %v980_v18  ;;  %v1337_v48 = vadd.f32 %v1305_v63, %v5924_v40  ;;  %v5925_v52 = vld [vmem:[#allocation153_spill] sm:$0xff]  ;;  %v5928_v18 = vld [vmem:[#allocation168_spill] sm:$0xff] }
 0x33d   : > { %1889 = vrot.lane.b32.xlu1 %v3945_v34, %s2816_s28  ;;  %v1134_v51 = vadd.f32 %v5925_v52, %v1057_v39  ;;  %v1133_v14 = vadd.f32 %v5925_v52, %v1056_v31  ;;  %v1054_v16 = vadd.f32 %v1025_v45, %v982_v57  ;;  %v1455_v10 = vsel %vm626_vm13, %v5927_v41, %v5926_v49  ;;  %v5929_v2 = vld [vmem:[#allocation176_spill] sm:$0xff]  ;;  %v5936_v41 = vld [vmem:[#allocation167_spill] sm:$0xff]  ;;  %v5938_v34 = vld [vmem:[#allocation165_spill] sm:$0xff] }
 0x33e   : > { %1891 = vrot.lane.b32.xlu2 %v3948_v24, %s2816_s28  ;;  %1887 = vrot.lane.b32.xlu0 %v3953_v17, %s2816_s28  ;;  %v1059_v53 = vadd.f32 %v5843_v37, %v987_v43  ;;  %v1211_v63 = vsel %vm375_vm10, %v5929_v2, %v5928_v18  ;;  %v1409_v46 = vadd.f32 %v1383_v27, %v1337_v48  ;;  %v5930_v31 = vld [vmem:[#allocation160_spill] sm:$0xff]  ;;  %v5933_v43 = vld [vmem:[#allocation161_spill] sm:$0xff] }
 0x33f   : > { %v1654_v21 = vpop.permute.xlu1 %1653  ;;  %v4578_v57 = vadd.f32 %v5901_v47, %v1049_v61  ;;  %v1123_v9 = vadd.f32 %v5930_v31, %v1046_v7  ;;  %v5931_v45 = vld [vmem:[#allocation156_spill] sm:$0xff]  ;;  %v1528_v37 = vsel %vm1525_vm14, %v4232_v6, %v4223_v4  ;;  %v1131_v40 = vadd.f32 %v5933_v43, %v1054_v16  ;;  %v5937_v18 = vld [vmem:[#allocation169_spill] sm:$0xff] }
 0x340   : > { %v4565_v33 = vpop.permute.xlu2 %1713  ;;  %v4567_v19 = vpop.permute.xlu0 %1651  ;;  %v1205_v13 = vsel %vm375_vm10, %v5932_v35, %v5931_v45  ;;  %v1241_v27 = vadd.f32 %v5929_v2, %v1133_v14  ;;  %v5934_v48 = vld [vmem:[#allocation196_spill] sm:$0xff]  ;;  %v1481_v47 = vadd.f32 %v1455_v10, %v1409_v46  ;;  %v1124_v61 = vadd.f32 %v5930_v31, %v1047_v23  ;;  %v5940_v23 = vld [vmem:[#allocation171_spill] sm:$0xff] }
 0x341   : > { %v4575_v39 = vsel %vm375_vm10, %v4567_v19, %v1654_v21  ;;  %v5935_v21 = vld [vmem:[#allocation183_spill] sm:$0xff]  ;;  %v1229_v7 = vadd.f32 %v5932_v35, %v1121_v22  ;;  %v1206_v45 = vsel %vm375_vm10, %v5937_v18, %v5936_v41  ;;  %v1242_v17 = vadd.f32 %v1211_v63, %v1134_v51  ;;  %v5939_v2 = vld [vmem:[#allocation184_spill] sm:$0xff] }
 0x342   : > { %v1283_v52 = vsel %vm448_vm11, %v5935_v21, %v5934_v48  ;;  %v1239_v6 = vadd.f32 %v5938_v34, %v1131_v40  ;;  %v1230_v24 = vadd.f32 %v1205_v13, %v1122_v12  ;;  %v1313_v16 = vadd.f32 %v5935_v21, %v1241_v27  ;;  %v5944_v40 = vld [vmem:[#allocation216_spill] sm:$0xff]  ;;  %v5945_v27 = vld [vmem:[#allocation218_spill] sm:$0xff] }
 0x343   : > { %v1554_v14 = vadd.f32 %v1528_v37, %v1481_v47  ;;  %v1136_v10 = vadd.f32 %v5858_v55, %v1059_v53  ;;  %v1277_v22 = vsel %vm448_vm11, %v5940_v23, %v5939_v2  ;;  %v1314_v46 = vadd.f32 %v1283_v52, %v1242_v17  ;;  %v5941_v55 = vld [vmem:[#allocation162_spill] sm:$0xff]  ;;  %v5943_v17 = vld [vmem:[#allocation179_spill] sm:$0xff]  ;;  %v5946_v47 = vld [vmem:[#allocation108_spill] sm:$0xff] }
 0x344   : > { %v1231_v12 = vadd.f32 %v5937_v18, %v1123_v9  ;;  %v1232_v51 = vadd.f32 %v1206_v45, %v1124_v61  ;;  %v1301_v63 = vadd.f32 %v5940_v23, %v1229_v7  ;;  %v5942_v53 = vld [vmem:[#allocation170_spill] sm:$0xff]  ;;  %v1212_v37 = vsel %vm375_vm10, %v5863_v29, %v5943_v17  ;;  %v5948_v18 = vld [vmem:[#allocation172_spill] sm:$0xff]  ;;  %v5951_v23 = vld [vmem:[#allocation237_spill] sm:$0xff] }
 0x345   : > { %1895 = vrot.lane.b32.xlu1 %v3978_v44, %s2816_s28  ;;  %v1699_v31 = vadd.f32 %v4495_v28, %v1554_v14  ;;  %v1208_v13 = vsel %vm375_vm10, %v5942_v53, %v5941_v55  ;;  %v1387_v48 = vsel %vm553_vm12, %v5945_v27, %v5944_v40  ;;  %v1302_v52 = vadd.f32 %v1277_v22, %v1230_v24  ;;  %v5949_v14 = vld [vmem:[#allocation131_spill] sm:$0xff]  ;;  %v5950_v2 = vld [vmem:[#allocation228_spill] sm:$0xff]  ;;  %v5954_v17 = vld [vmem:[#allocation97_spill] sm:$0xff] }
 0x346   : > { %1897 = vrot.lane.b32.xlu2 %v3972_v42, %s2816_s28  ;;  %1893 = vrot.lane.b32.xlu0 %v3975_v56, %s2816_s28  ;;  %v1345_v61 = vadd.f32 %v1313_v16, %v5946_v47  ;;  %v1235_v41 = vadd.f32 %v5942_v53, %v1127_v58  ;;  %v1207_v45 = vsel %vm375_vm10, %v5911_v20, %v5948_v18  ;;  %v5952_v16 = vld [vmem:[#allocation193_spill] sm:$0xff]  ;;  %v5955_v53 = vld [vmem:[#allocation174_spill] sm:$0xff]  ;;  %v5978_v44 = vld [vmem:[#allocation103_spill] sm:$0xff] }
 0x347   : > { %v4612_v35 = vpop.permute.xlu1 %1659  ;;  %v1459_v24 = vsel %vm626_vm13, %v5951_v23, %v5950_v2  ;;  %v1311_v22 = vadd.f32 %v5952_v16, %v1239_v6  ;;  %v1333_v27 = vadd.f32 %v1301_v63, %v5954_v17  ;;  %v1244_v58 = vadd.f32 %v1212_v37, %v1136_v10  ;;  %v5956_v47 = vld [vmem:[#allocation182_spill] sm:$0xff] }
 0x348   : > { %v4623_v9 = vpop.permute.xlu2 %1719  ;;  %v4628_v28 = vsel %vm375_vm10, %v4612_v35, %v4445_v30  ;;  %v1658_v21 = vpop.permute.xlu0 %1657  ;;  %v1346_v30 = vadd.f32 %v1314_v46, %v5949_v14  ;;  %v1278_v20 = vsel %vm448_vm11, %v5956_v47, %v5955_v53  ;;  %v1532_v18 = vsel %vm1525_vm14, %v4185_v59, %v4398_v3  ;;  %v5957_v14 = vld [vmem:[#allocation113_spill] sm:$0xff]  ;;  %v5960_v37 = vld [vmem:[#allocation198_spill] sm:$0xff] }
 0x349   : > { %v4632_v7 = vadd.f32 %v4623_v9, %v1699_v31  ;;  %v4636_v29 = vsel %vm375_vm10, %v4392_v26, %v1658_v21  ;;  %v5953_v31 = vld [vmem:[#allocation186_spill] sm:$0xff]  ;;  %v1417_v21 = vadd.f32 %v1387_v48, %v1345_v61  ;;  %v1303_v6 = vadd.f32 %v5956_v47, %v1231_v12  ;;  %v5963_v12 = vld [vmem:[#allocation215_spill] sm:$0xff] }
 0x34a   : > { %v1284_v55 = vsel %vm448_vm11, %v5870_v11, %v5953_v31  ;;  %v1418_v46 = vadd.f32 %v5944_v40, %v1346_v30  ;;  %v1334_v23 = vadd.f32 %v1302_v52, %v5957_v14  ;;  %v5959_v11 = vld [vmem:[#allocation199_spill] sm:$0xff]  ;;  %v5961_v61 = vld [vmem:[#allocation210_spill] sm:$0xff]  ;;  %v1304_v52 = vadd.f32 %v1278_v20, %v1232_v51 }
 0x34b   : > { %5947 = vst [vmem:[#allocation9_spill] sm:$0xff] %v4632_v7  ;;  %v5958_v7 = vld [vmem:[#allocation197_spill] sm:$0xff]  ;;  %v1489_v48 = vadd.f32 %v1459_v24, %v1417_v21  ;;  %v1316_v10 = vadd.f32 %v1284_v55, %v1244_v58  ;;  %v1386_v40 = vsel %vm553_vm12, %v5961_v61, %v5960_v37  ;;  %v5962_v59 = vld [vmem:[#allocation214_spill] sm:$0xff]  ;;  %v5964_v31 = vld [vmem:[#allocation107_spill] sm:$0xff] }
 0x34c   : > { %v1381_v63 = vsel %vm553_vm12, %v5959_v11, %v5958_v7  ;;  %v1490_v30 = vadd.f32 %v5950_v2, %v1418_v46  ;;  %v1343_v17 = vadd.f32 %v1311_v22, %v5964_v31  ;;  %v5965_v24 = vld [vmem:[#allocation207_spill] sm:$0xff]  ;;  %v5966_v21 = vld [vmem:[#allocation222_spill] sm:$0xff]  ;;  %v1406_v47 = vadd.f32 %v5958_v7, %v1334_v23  ;;  %v5969_v22 = vld [vmem:[#allocation244_spill] sm:$0xff] }
 0x34d   : > { %1901 = vrot.lane.b32.xlu1 %v5852_v50, %s2816_s28  ;;  %v1453_v53 = vsel %vm626_vm13, %v5966_v21, %v5965_v24  ;;  %v1562_v55 = vadd.f32 %v1532_v18, %v1489_v48  ;;  %v1405_v14 = vadd.f32 %v1381_v63, %v1333_v27  ;;  %v5967_v11 = vld [vmem:[#allocation239_spill] sm:$0xff]  ;;  %v5970_v31 = vld [vmem:[#allocation232_spill] sm:$0xff]  ;;  %v5972_v63 = vld [vmem:[#allocation17_spill] sm:$0xff] }
 0x34e   : > { %1903 = vrot.lane.b32.xlu2 %v5962_v59, %s2816_s28  ;;  %1899 = vrot.lane.b32.xlu0 %v5963_v12, %s2816_s28  ;;  %v5968_v2 = vld [vmem:[#allocation223_spill] sm:$0xff]  ;;  %v1563_v61 = vadd.f32 %v4398_v3, %v1490_v30  ;;  %v1415_v20 = vadd.f32 %v1386_v40, %v1343_v17  ;;  %v1526_v12 = vsel %vm1525_vm14, %v5970_v31, %v5969_v22  ;;  %v5971_v27 = vld [vmem:[#allocation136_spill] sm:$0xff]  ;;  %v5973_v21 = vld [vmem:[#allocation10_spill] sm:$0xff] }
 0x34f   : > { %v1666_v58 = vpop.permute.xlu1 %1665  ;;  %v1458_v46 = vsel %vm626_vm13, %v5968_v2, %v5967_v11  ;;  %v1477_v7 = vadd.f32 %v1453_v53, %v1405_v14  ;;  %v1348_v23 = vadd.f32 %v1316_v10, %v5971_v27  ;;  %v1531_v2 = vsel %vm1525_vm14, %v5973_v21, %v5972_v63  ;;  %v5974_v59 = vld [vmem:[#allocation173_spill] sm:$0xff]  ;;  %v5977_v10 = vld [vmem:[#allocation224_spill] sm:$0xff] }
 0x350   : > { %v4682_v50 = vpop.permute.xlu2 %1725  ;;  %v1664_v51 = vpop.permute.xlu0 %1663  ;;  %v1236_v30 = vadd.f32 %v1208_v13, %v4555_v15  ;;  %v1234_v40 = vadd.f32 %v1207_v45, %v4578_v57  ;;  %v1478_v17 = vadd.f32 %v5965_v24, %v1406_v47  ;;  %v1487_v31 = vadd.f32 %v1458_v46, %v1415_v20  ;;  %v5976_v53 = vld [vmem:[#allocation177_spill] sm:$0xff]  ;;  %v5981_v45 = vld [vmem:[#allocation202_spill] sm:$0xff] }
 0x351   : > { %v1677_v18 = vsel %vm375_vm10, %v1664_v51, %v1666_v58  ;;  %v4688_v48 = vadd.f32 %v1664_v51, %v1562_v55  ;;  %v5975_v58 = vld [vmem:[#allocation175_spill] sm:$0xff]  ;;  %v1307_v14 = vadd.f32 %v5976_v53, %v1235_v41  ;;  %v1420_v51 = vadd.f32 %v5977_v10, %v1348_v23  ;;  %v5980_v57 = vld [vmem:[#allocation221_spill] sm:$0xff] }
 0x352   : > { %v4694_v3 = vadd.f32 %v1677_v18, %v1563_v61  ;;  %v1209_v55 = vsel %vm375_vm10, %v5975_v58, %v5974_v59  ;;  %v1550_v27 = vadd.f32 %v1526_v12, %v1477_v7  ;;  %v1335_v21 = vadd.f32 %v1303_v6, %v5978_v44  ;;  %v5979_v61 = vld [vmem:[#allocation118_spill] sm:$0xff]  ;;  %v5982_v24 = vld [vmem:[#allocation189_spill] sm:$0xff]  ;;  %v5983_v59 = vld [vmem:[#allocation240_spill] sm:$0xff] }
 0x353   : > { %v1336_v18 = vadd.f32 %v1304_v52, %v5979_v61  ;;  %v1551_v15 = vadd.f32 %v5969_v22, %v1478_v17  ;;  %v1560_v13 = vadd.f32 %v1531_v2, %v1487_v31  ;;  %v1382_v47 = vsel %vm553_vm12, %v5982_v24, %v5981_v45  ;;  %v5984_v41 = vld [vmem:[#allocation23_spill] sm:$0xff]  ;;  %v5986_v44 = vld [vmem:[#allocation220_spill] sm:$0xff]  ;;  %v5987_v6 = vld [vmem:[#allocation185_spill] sm:$0xff] }
 0x354   : > { %v1492_v46 = vadd.f32 %v5983_v59, %v1420_v51  ;;  %v1695_v20 = vadd.f32 %v5984_v41, %v1550_v27  ;;  %v5985_v12 = vld [vmem:[#allocation219_spill] sm:$0xff]  ;;  %v1279_v52 = vsel %vm448_vm11, %v5915_v8, %v5987_v6  ;;  %v5988_v22 = vld [vmem:[#allocation190_spill] sm:$0xff]  ;;  %v5989_v23 = vld [vmem:[#allocation45_spill] sm:$0xff] }
 0x355   : > { %1907 = vrot.lane.b32.xlu1 %v5980_v57, %s2816_s28  ;;  %v1280_v7 = vsel %vm448_vm11, %v5976_v53, %v5988_v22  ;;  %v1696_v2 = vadd.f32 %v5989_v23, %v1551_v15  ;;  %v1705_v17 = vadd.f32 %v4612_v35, %v1560_v13  ;;  %v5990_v10 = vld [vmem:[#allocation227_spill] sm:$0xff]  ;;  %v5991_v51 = vld [vmem:[#allocation229_spill] sm:$0xff]  ;;  %v1407_v53 = vadd.f32 %v1382_v47, %v1335_v21 }
 0x356   : > { %1909 = vrot.lane.b32.xlu2 %v5985_v12, %s2816_s28  ;;  %1905 = vrot.lane.b32.xlu0 %v5986_v44, %s2816_s28  ;;  %v1454_v27 = vsel %vm626_vm13, %v5991_v51, %v5990_v10  ;;  %v5992_v61 = vld [vmem:[#allocation51_spill] sm:$0xff]  ;;  %v1959_v22 = vld [vmem:[#allocation2] sm:$0xe0]  ;;  %v1308_v23 = vadd.f32 %v1280_v7, %v1236_v30 }
 0x357   : > { %v1712_v31 = vpop.permute.xlu1 %1711  ;;  %v1565_v24 = vadd.f32 %v5992_v61, %v1492_v46  ;;  %v1408_v46 = vadd.f32 %v5981_v45, %v1336_v18  ;;  %v5993_v51 = vld [vmem:[#allocation235_spill] sm:$0xff]  ;;  %v1960_v18 = vld [vmem:[#allocation2 + $0x8] sm:$0xe0]  ;;  %v1991_v45 = vrot.slane %v1959_v22, 5 }
 0x358   : > { %v4730_v59 = vpop.permute.xlu2 %1731  ;;  %v1743_v8 = vsel %vm448_vm11, %v1712_v31, %v4565_v33  ;;  %v4734_v41 = vadd.f32 %v1712_v31, %v1695_v20  ;;  %v1670_v6 = vpop.permute.xlu0 %1669  ;;  %v5994_v61 = vld [vmem:[#allocation243_spill] sm:$0xff]  ;;  %v5996_v31 = vld [vmem:[#allocation20_spill] sm:$0xff] }
 0x359   : > { %v4737_v15 = vadd.f32 %v4730_v59, %v1705_v17  ;;  %v4739_v35 = vadd.f32 %v1743_v8, %v1696_v2  ;;  %v1678_v13 = vsel %vm375_vm10, %v4503_v0, %v1670_v6  ;;  %v1527_v33 = vsel %vm1525_vm14, %v5994_v61, %v5993_v51  ;;  %v5995_v21 = vld [vmem:[#allocation163_spill] sm:$0xff] }
 0x35a   : > { %v4747_v20 = vadd.f32 %v1678_v13, %v1565_v24  ;;  %v1129_v47 = vadd.f32 %v5995_v21, %v4557_v32  ;;  %v1130_v2 = vadd.f32 %v5995_v21, %v4544_v60  ;;  %v1479_v17 = vadd.f32 %v1454_v27, %v1407_v53  ;;  %v5997_v24 = vld [vmem:[#allocation206_spill] sm:$0xff]  ;;  %v5998_v13 = vld [vmem:[#allocation208_spill] sm:$0xff]  ;;  %v6003_v22 = vld [vmem:[#allocation231_spill] sm:$0xff] }
 0x35b   : > { %v983_v0 = vadd.f32 %v5897_v54, %v5996_v31  ;;  %v1306_v8 = vadd.f32 %v1279_v52, %v1234_v40  ;;  %v1480_v30 = vadd.f32 %v5990_v10, %v1408_v46  ;;  %v1384_v61 = vsel %vm553_vm12, %v5998_v13, %v5997_v24  ;;  %v5999_v60 = vld [vmem:[#allocation122_spill] sm:$0xff]  ;;  %v6002_v10 = vld [vmem:[#allocation217_spill] sm:$0xff]  ;;  %v4776_v21 = vld [vmem:[#allocation2 + $0x18] sm:$0xff] }
 0x35c   : > { %v1237_v7 = vadd.f32 %v5975_v58, %v1129_v47  ;;  %v1238_v6 = vadd.f32 %v1209_v55, %v1130_v2  ;;  %v1552_v32 = vadd.f32 %v1527_v33, %v1479_v17  ;;  %v1340_v27 = vadd.f32 %v1308_v23, %v5999_v60  ;;  %v6000_v53 = vld [vmem:[#allocation102_spill] sm:$0xff]  ;;  %v4769_v55 = vld [vmem:[#allocation2 + $0x10] sm:$0xff]  ;;  %6004 = vst [vmem:[#allocation26_spill] sm:$0xff] %v4776_v21  ;;  %v6005_v47 = vld [vmem:[#allocation180_spill] sm:$0xff] }
 0x35d   : > { %1913 = vrot.lane.b32.xlu1 %v4047_v5, %s2816_s28  ;;  %v1339_v54 = vadd.f32 %v1307_v14, %v6000_v53  ;;  %v1553_v40 = vadd.f32 %v5993_v51, %v1480_v30  ;;  %v6001_v58 = vld [vmem:[#allocation226_spill] sm:$0xff]  ;;  %v1456_v46 = vsel %vm626_vm13, %v6003_v22, %v6002_v10  ;;  %v1994_v14 = vrot.slane %v1960_v18, 5  ;;  %v6006_v2 = vld [vmem:[#allocation188_spill] sm:$0xff]  ;;  %v6007_v31 = vld [vmem:[#allocation123_spill] sm:$0xff] }
 0x35e   : > { %1915 = vrot.lane.b32.xlu2 %v4050_v1, %s2816_s28  ;;  %1911 = vrot.lane.b32.xlu0 %v6001_v58, %s2816_s28  ;;  %v1697_v23 = vadd.f32 %v4286_v38, %v1552_v32  ;;  %v1995_v51 = vrot.slane %v4776_v21, 5  ;;  %v1281_v17 = vsel %vm448_vm11, %v6006_v2, %v6005_v47  ;;  %v1338_v30 = vadd.f32 %v1306_v8, %v6007_v31  ;;  %v6008_v32 = vld [vmem:[#allocation18_spill] sm:$0xff] }
 0x35f   : > { %v1718_v33 = vpop.permute.xlu1 %1717  ;;  %v1411_v13 = vadd.f32 %v1384_v61, %v1339_v54  ;;  %v1698_v60 = vadd.f32 %v4519_v36, %v1553_v40  ;;  %v1412_v38 = vadd.f32 %v5997_v24, %v1340_v27  ;;  %v6009_v18 = vld [vmem:[#allocation238_spill] sm:$0xff]  ;;  %v1309_v47 = vadd.f32 %v6006_v2, %v1237_v7  ;;  %v1963_v36 = vld [vmem:[#allocation2 + $0x30] sm:$0xe0] }
 0x360   : > { %v4784_v53 = vpop.permute.xlu2 %1737  ;;  %v1716_v22 = vpop.permute.xlu0 %1715  ;;  %v1529_v52 = vsel %vm1525_vm14, %v6009_v18, %v6008_v32  ;;  %v1410_v8 = vadd.f32 %v5921_v25, %v1338_v30  ;;  %v1055_v40 = vadd.f32 %v5919_v62, %v983_v0  ;;  %v1310_v31 = vadd.f32 %v1281_v17, %v1238_v6  ;;  %v1962_v18 = vld [vmem:[#allocation2 + $0x28] sm:$0x1f]  ;;  %v6012_v0 = vld [vmem:[#allocation212_spill] sm:$0xff]  ;;  %v6013_v6 = vld [vmem:[#allocation195_spill] sm:$0xff] }
 0x361   : > { %v1744_v21 = vsel %vm448_vm11, %v1716_v22, %v1718_v33  ;;  %v4791_v58 = vadd.f32 %v1716_v22, %v1697_v23  ;;  %v1483_v61 = vadd.f32 %v1456_v46, %v1411_v13  ;;  %v1484_v24 = vadd.f32 %v6002_v10, %v1412_v38  ;;  %v6010_v5 = vld [vmem:[#allocation178_spill] sm:$0xff]  ;;  %v6016_v17 = vld [vmem:[#allocation127_spill] sm:$0xff] }
 0x362   : > { %v1770_v54 = vadd.f32 %v1744_v21, %v1698_v60  ;;  %v4798_v27 = vsel %vm182_vm1, %v1994_v14, %v1995_v51  ;;  %v1210_v23 = vsel %vm375_vm10, %v5938_v34, %v6010_v5  ;;  %v1482_v7 = vadd.f32 %v5926_v49, %v1410_v8  ;;  %v6014_v34 = vld [vmem:[#allocation109_spill] sm:$0xff]  ;;  %v6017_v13 = vld [vmem:[#allocation234_spill] sm:$0xff]  ;;  %v6018_v60 = vld [vmem:[#allocation236_spill] sm:$0xff] }
 0x363   : > { %v1556_v33 = vadd.f32 %v1529_v52, %v1483_v61  ;;  %v6011_v25 = vrot.slane %v4769_v55, 5  ;;  %v1132_v62 = vadd.f32 %v5933_v43, %v1055_v40  ;;  %v1385_v10 = vsel %vm553_vm12, %v6013_v6, %v6012_v0  ;;  %v6015_v43 = vld [vmem:[#allocation230_spill] sm:$0xff] }
 0x364   : > { %v1557_v14 = vadd.f32 %v6008_v32, %v1484_v24  ;;  %v2001_v5 = vrot.slane %v1963_v36, 5  ;;  %v1341_v49 = vadd.f32 %v1309_v47, %v6014_v34  ;;  %v1555_v52 = vadd.f32 %v4223_v4, %v1482_v7  ;;  %v6019_v47 = vld [vmem:[#allocation13_spill] sm:$0xff]  ;;  %v6022_v7 = vld [vmem:[#allocation27_spill] sm:$0xff] }
 0x365   : > { %v4807_v46 = vsel %vm182_vm1, %v1991_v45, %v6011_v25  ;;  %v1701_v21 = vadd.f32 %v4567_v19, %v1556_v33  ;;  %v1999_v45 = vrot.slane %v1962_v18, 5  ;;  %v1240_v2 = vadd.f32 %v1210_v23, %v1132_v62  ;;  %v1961_v24 = vld [vmem:[#allocation2 + $0x20] sm:$0x1f] }
 0x366   : > { %2031 = vrot.lane.b32.xlu1 %v4807_v46, %s2813_s25  ;;  %2033 = vrot.lane.b32.xlu2 %v4798_v27, %s2813_s25  ;;  %v1342_v30 = vadd.f32 %v1310_v31, %v6016_v17  ;;  %v1457_v22 = vsel %vm626_vm13, %v6018_v60, %v6017_v13  ;;  %v1702_v38 = vadd.f32 %v4575_v39, %v1557_v14  ;;  %v6020_v31 = vld [vmem:[#allocation191_spill] sm:$0xff]  ;;  %v6021_v23 = vld [vmem:[#allocation241_spill] sm:$0xff]  ;;  %v1997_v34 = vrot.slane %v1961_v24, 5  ;;  %v1966_v17 = vld [vmem:[#allocation2 + $0x58] sm:$0x1f] }
 0x367   : > { %1917 = vrot.lane.b32.xlu0 %v6015_v43, %s2816_s28  ;;  %v1724_v32 = vpop.permute.xlu1 %1723  ;;  %v1413_v4 = vadd.f32 %v1385_v10, %v1341_v49  ;;  %v1700_v19 = vadd.f32 %v6019_v47, %v1555_v52  ;;  %v1282_v18 = vsel %vm448_vm11, %v5952_v16, %v6020_v31  ;;  %v1530_v39 = vsel %vm1525_vm14, %v6022_v7, %v6021_v23  ;;  %v4851_v14 = vld [vmem:[#allocation2 + $0x40] sm:$0xff]  ;;  %v1964_v60 = vld [vmem:[#allocation2 + $0x38] sm:$0xe0] }
 0x368   : > { %v4829_v8 = vpop.permute.xlu2 %1815  ;;  %v1746_v61 = vsel %vm448_vm11, %v1724_v32, %v4682_v50  ;;  %v4833_v36 = vadd.f32 %v1724_v32, %v1701_v21  ;;  %v1722_v40 = vpop.permute.xlu0 %1721  ;;  %v1414_v62 = vadd.f32 %v6012_v0, %v1342_v30  ;;  %v4849_v10 = vsel %vm182_vm1, %v1995_v51, %v1999_v45  ;;  %v1965_v45 = vld [vmem:[#allocation2 + $0x50] sm:$0x1f]  ;;  %v6024_v47 = vld [vmem:[#allocation132_spill] sm:$0xff] }
 0x369   : > { %v4841_v33 = vadd.f32 %v1746_v61, %v1702_v38  ;;  %v1745_v25 = vsel %vm448_vm11, %v4623_v9, %v1722_v40  ;;  %v1485_v50 = vadd.f32 %v1457_v22, %v1413_v4  ;;  %v2002_v16 = vrot.slane %v4851_v14, 5  ;;  %v4872_v22 = vld [vmem:[#allocation2 + $0x48] sm:$0xff] }
 0x36a   : > { %v4846_v6 = vadd.f32 %v1745_v25, %v1700_v19  ;;  %v1312_v49 = vadd.f32 %v1282_v18, %v1240_v2  ;;  %v1486_v52 = vadd.f32 %v6017_v13, %v1414_v62  ;;  %v6023_v51 = vrot.slane %v4769_v55, 5 }
 0x36b   : > { %v1558_v21 = vadd.f32 %v1530_v39, %v1485_v50  ;;  %v4856_v9 = vsel %vm182_vm1, %v2001_v5, %v2002_v16  ;;  %v1802_v5 = vadd.f32 %v1770_v54, %v3975_v56  ;;  %v2005_v38 = vrot.slane %v4872_v22, 5  ;;  %v1969_v50 = vld [vmem:[#allocation2 + $0x80] sm:$0x1f] }
 0x36c   : > { %v4863_v0 = vsel %vm182_vm1, %v6023_v51, %v1997_v34  ;;  %v1559_v30 = vadd.f32 %v6021_v23, %v1486_v52  ;;  %v2009_v32 = vrot.slane %v1966_v17, 5  ;;  %v2004_v4 = vrot.slane %v1964_v60, 5  ;;  %v1967_v52 = vld [vmem:[#allocation2 + $0x60] sm:$0xe0] }
 0x36d   : > { %v1703_v2 = vadd.f32 %v4392_v26, %v1558_v21  ;;  %v1344_v19 = vadd.f32 %v1312_v49, %v6024_v47  ;;  %v2007_v24 = vrot.slane %v1965_v45, 5  ;;  %v4903_v49 = vld [vmem:[#allocation2 + $0x78] sm:$0xff]  ;;  %v2017_v45 = vrot.slane %v1969_v50, 5  ;;  %v4943_v50 = vld [vmem:[#allocation2 + $0xa0] sm:$0xff] }
 0x36e   : > { %2037 = vrot.lane.b32.xlu1 %v4849_v10, %s2813_s25  ;;  %2039 = vrot.lane.b32.xlu2 %v4856_v9, %s2813_s25  ;;  %v1704_v61 = vadd.f32 %v4636_v29, %v1559_v30  ;;  %v4887_v7 = vsel %vm182_vm1, %v2005_v38, %v2009_v32  ;;  %v4890_v39 = vsel %vm182_vm1, %v2004_v4, %v2005_v38  ;;  %v1968_v29 = vld [vmem:[#allocation2 + $0x68] sm:$0xe0]  ;;  %v1970_v32 = vld [vmem:[#allocation2 + $0x88] sm:$0x1f] }
 0x36f   : > { %2035 = vrot.lane.b32.xlu0 %v4863_v0, %s2813_s25  ;;  %v1730_v13 = vpop.permute.xlu1 %1729  ;;  %v1416_v18 = vadd.f32 %v5960_v37, %v1344_v19  ;;  %v4894_v62 = vsel %vm182_vm1, %v2002_v16, %v2007_v24  ;;  %v2014_v37 = vrot.slane %v1968_v29, 5 }
 0x370   : > { %v4877_v26 = vpop.permute.xlu2 %1821  ;;  %v1728_v40 = vpop.permute.xlu0 %1727 }
 0x371   : > { %v4880_v31 = vadd.f32 %v4877_v26, %v1802_v5  ;;  %v1747_v56 = vsel %vm448_vm11, %v1728_v40, %v1730_v13  ;;  %v4883_v54 = vadd.f32 %v1728_v40, %v1703_v2  ;;  %v1488_v25 = vadd.f32 %v5967_v11, %v1416_v18  ;;  %v4919_v5 = vld [vmem:[#allocation2 + $0x70] sm:$0xff]  ;;  %v4940_v40 = vld [vmem:[#allocation2 + $0xa8] sm:$0xff] }
 0x372   : > { %v1776_v23 = vadd.f32 %v1747_v56, %v1704_v61  ;;  %v2015_v11 = vrot.slane %v4903_v49, 5  ;;  %v2011_v13 = vrot.slane %v1967_v52, 5  ;;  %v2025_v24 = vrot.slane %v4940_v40, 5 }
 0x373   : > { %v1561_v34 = vadd.f32 %v5972_v63, %v1488_v25  ;;  %v2019_v56 = vrot.slane %v1970_v32, 5 }
 0x374   : > { %v1808_v47 = vadd.f32 %v1776_v23, %v5986_v44 }
 0x375   : > { %v1706_v21 = vadd.f32 %v4628_v28, %v1561_v34  ;;  %v2012_v28 = vrot.slane %v4919_v5, 5  ;;  %v2022_v34 = vrot.slane %v4943_v50, 5 }
 0x376   : > { %2043 = vrot.lane.b32.xlu1 %v4894_v62, %s2813_s25  ;;  %2045 = vrot.lane.b32.xlu2 %v4887_v7, %s2813_s25 }
 0x377   : > { %2041 = vrot.lane.b32.xlu0 %v4890_v39, %s2813_s25  ;;  %v1736_v16 = vpop.permute.xlu1 %1735  ;;  %v4928_v4 = vsel %vm182_vm1, %v2012_v28, %v2017_v45 }
 0x378   : > { %v4907_v17 = vpop.permute.xlu2 %1827  ;;  %v1749_v63 = vsel %vm448_vm11, %v1736_v16, %v4784_v53  ;;  %v4912_v60 = vadd.f32 %v1736_v16, %v4688_v48  ;;  %v1734_v51 = vpop.permute.xlu0 %1733  ;;  %v4925_v53 = vsel %vm182_vm1, %v2014_v37, %v2015_v11  ;;  %v1972_v48 = vld [vmem:[#allocation2 + $0x98] sm:$0xe0] }
 0x379   : > { %v4915_v30 = vadd.f32 %v1749_v63, %v4694_v3  ;;  %v1748_v2 = vsel %vm448_vm11, %v4730_v59, %v1734_v51  ;;  %v4933_v3 = vsel %vm182_vm1, %v2011_v13, %v2012_v28  ;;  %v1971_v59 = vld [vmem:[#allocation2 + $0x90] sm:$0xe0]  ;;  %v2024_v61 = vrot.slane %v1972_v48, 5  ;;  %v6025_v16 = vld [vmem:[#allocation12_spill] sm:$0xff] }
 0x37a   : > { %v4922_v38 = vadd.f32 %v1748_v2, %v1706_v21  ;;  %v2021_v25 = vrot.slane %v1971_v59, 5  ;;  %v4957_v63 = vsel %vm182_vm1, %v2015_v11, %v2019_v56  ;;  %v1974_v51 = vld [vmem:[#allocation2 + $0xb8] sm:$0x1f]  ;;  %v1973_v2 = vld [vmem:[#allocation2 + $0xb0] sm:$0x1f]  ;;  %v6028_v59 = vld [vmem:[#allocation205_spill] sm:$0xff] }
 0x37b   : > { %v4954_v21 = vsel %vm182_vm1, %v2024_v61, %v2025_v24  ;;  %v6026_v28 = vld [vmem:[#allocation204_spill] sm:$0xff]  ;;  %v6027_v48 = vld [vmem:[#allocation203_spill] sm:$0xff] }
 0x37c   : > { %v4960_v45 = vsel %vm182_vm1, %v2021_v25, %v2022_v34  ;;  %v1801_v13 = vadd.f32 %v4791_v58, %v6026_v28  ;;  %v1800_v32 = vadd.f32 %v4739_v35, %v6027_v48  ;;  %v2027_v58 = vrot.slane %v1973_v2, 5 }
 0x37e   : > { %2049 = vrot.lane.b32.xlu1 %v4925_v53, %s2813_s25  ;;  %2051 = vrot.lane.b32.xlu2 %v4928_v4, %s2813_s25 }
 0x37f   : > { %2047 = vrot.lane.b32.xlu0 %v4933_v3, %s2813_s25  ;;  %v1742_v19 = vpop.permute.xlu1 %1741 }
 0x380   : > { %v1834_v18 = vpop.permute.xlu2 %1833  ;;  %v1740_v29 = vpop.permute.xlu0 %1739 }
 0x381   : > { %v4946_v37 = vadd.f32 %v1834_v18, %v1808_v47  ;;  %v1750_v52 = vsel %vm448_vm11, %v1740_v29, %v1742_v19  ;;  %v4950_v44 = vadd.f32 %v1740_v29, %v6025_v16  ;;  %v1799_v47 = vadd.f32 %v4734_v41, %v6028_v59 }
 0x382   : > { %v1782_v23 = vadd.f32 %v1750_v52, %v4747_v20  ;;  %v2029_v20 = vrot.slane %v1974_v51, 5  ;;  %v4990_v41 = vsel %vm182_vm1, %v2022_v34, %v2027_v58 }
 0x384   : > { %v4985_v35 = vsel %vm182_vm1, %v2025_v24, %v2029_v20  ;;  %v6029_v24 = vld [vmem:[#allocation209_spill] sm:$0xff] }
 0x385   : > { %v6030_v20 = vld [vmem:[#allocation9_spill] sm:$0xff] }
 0x386   : > { %2055 = vrot.lane.b32.xlu1 %v4960_v45, %s2813_s25  ;;  %2057 = vrot.lane.b32.xlu2 %v4954_v21, %s2813_s25  ;;  %v1803_v2 = vadd.f32 %v6030_v20, %v6029_v24 }
 0x387   : > { %2053 = vrot.lane.b32.xlu0 %v4957_v63, %s2813_s25  ;;  %v1820_v11 = vpop.permute.xlu1 %1819 }
 0x388   : > { %v1840_v19 = vpop.permute.xlu2 %1839  ;;  %v1848_v61 = vsel %vm553_vm12, %v1820_v11, %v4877_v26  ;;  %v1818_v56 = vpop.permute.xlu0 %1817  ;;  %v1814_v26 = vadd.f32 %v1782_v23, %v6015_v43  ;;  %v6032_v23 = vld [vmem:[#allocation213_spill] sm:$0xff] }
 0x389   : > { %v4976_v29 = vadd.f32 %v1848_v61, %v1801_v13  ;;  %v1847_v25 = vsel %vm553_vm12, %v4829_v8, %v1818_v56  ;;  %v4980_v52 = vadd.f32 %v1818_v56, %v1800_v32  ;;  %v1804_v8 = vadd.f32 %v4846_v6, %v3972_v42  ;;  %v6031_v42 = vld [vmem:[#allocation214_spill] sm:$0xff] }
 0x38a   : > { %v4982_v16 = vadd.f32 %v1847_v25, %v1799_v47  ;;  %v1807_v43 = vadd.f32 %v4883_v54, %v6031_v42  ;;  %v1806_v59 = vadd.f32 %v4841_v33, %v6032_v23  ;;  %v6033_v47 = vld [vmem:[#allocation215_spill] sm:$0xff]  ;;  %v1809_v54 = vadd.f32 %v4737_v15, %v5980_v57  ;;  %v6034_v15 = vld [vmem:[#allocation225_spill] sm:$0xff] }
 0x38b   : > { %v1805_v61 = vadd.f32 %v4833_v36, %v6033_v47  ;;  %v1810_v36 = vadd.f32 %v4922_v38, %v5985_v12  ;;  %v1813_v57 = vadd.f32 %v4950_v44, %v4050_v1  ;;  %v1812_v38 = vadd.f32 %v4915_v30, %v6034_v15 }
 0x38e   : > { %2061 = vrot.lane.b32.xlu1 %v4985_v35, %s2813_s25  ;;  %2103 = vrot.lane.b32.xlu2 %v4807_v46, %s2814_s26 }
 0x38f   : > { %2059 = vrot.lane.b32.xlu0 %v4990_v41, %s2813_s25  ;;  %v1826_v51 = vpop.permute.xlu1 %1825 }
 0x390   : > { %v1846_v28 = vpop.permute.xlu2 %1845  ;;  %v1876_v13 = vadd.f32 %v1826_v51, %v1804_v8  ;;  %v1824_v11 = vpop.permute.xlu0 %1823 }
 0x391   : > { %v5001_v34 = vadd.f32 %v1846_v28, %v1814_v26  ;;  %v1849_v48 = vsel %vm553_vm12, %v1824_v11, %v1826_v51 }
 0x392   : > { %v1875_v32 = vadd.f32 %v1849_v48, %v1803_v2 }
 0x396   : > { %2107 = vrot.lane.b32.xlu1 %v4863_v0, %s2814_s26  ;;  %2109 = vrot.lane.b32.xlu2 %v4849_v10, %s2814_s26 }
 0x397   : > { %2105 = vrot.lane.b32.xlu0 %v4798_v27, %s2814_s26  ;;  %v1832_v6 = vpop.permute.xlu1 %1831 }
 0x398   : > { %v1892_v56 = vpop.permute.xlu2 %1891  ;;  %v1851_v25 = vsel %vm553_vm12, %v1832_v6, %v1834_v18  ;;  %v1830_v58 = vpop.permute.xlu0 %1829 }
 0x399   : > { %v5017_v8 = vadd.f32 %v1851_v25, %v1807_v43  ;;  %v1850_v26 = vsel %vm553_vm12, %v4907_v17, %v1830_v58  ;;  %v1878_v51 = vadd.f32 %v1830_v58, %v1806_v59 }
 0x39a   : > { %v1877_v24 = vadd.f32 %v1850_v26, %v1805_v61 }
 0x39e   : > { %2113 = vrot.lane.b32.xlu1 %v4890_v39, %s2814_s26  ;;  %2115 = vrot.lane.b32.xlu2 %v4894_v62, %s2814_s26 }
 0x39f   : > { %2111 = vrot.lane.b32.xlu0 %v4856_v9, %s2814_s26  ;;  %v1838_v33 = vpop.permute.xlu1 %1837 }
 0x3a0   : > { %v1898_v18 = vpop.permute.xlu2 %1897  ;;  %v1882_v17 = vadd.f32 %v1838_v33, %v1810_v36  ;;  %v1836_v20 = vpop.permute.xlu0 %1835 }
 0x3a1   : > { %v5031_v2 = vadd.f32 %v1898_v18, %v1876_v13  ;;  %v1852_v11 = vsel %vm553_vm12, %v1836_v20, %v1838_v33  ;;  %v6035_v13 = vld [vmem:[#allocation226_spill] sm:$0xff] }
 0x3a2   : > { %v1881_v48 = vadd.f32 %v1852_v11, %v1809_v54  ;;  %v1811_v42 = vadd.f32 %v4912_v60, %v6035_v13 }
 0x3a6   : > { %2119 = vrot.lane.b32.xlu1 %v4933_v3, %s2814_s26  ;;  %2121 = vrot.lane.b32.xlu2 %v4925_v53, %s2814_s26 }
 0x3a7   : > { %2117 = vrot.lane.b32.xlu0 %v4887_v7, %s2814_s26  ;;  %v1844_v12 = vpop.permute.xlu1 %1843 }
 0x3a8   : > { %v1904_v43 = vpop.permute.xlu2 %1903  ;;  %v1854_v6 = vsel %vm553_vm12, %v1844_v12, %v1846_v28  ;;  %v1842_v23 = vpop.permute.xlu0 %1841 }
 0x3a9   : > { %v5047_v59 = vadd.f32 %v1854_v6, %v1813_v57  ;;  %v1853_v47 = vsel %vm553_vm12, %v1840_v19, %v1842_v23  ;;  %v1884_v61 = vadd.f32 %v1842_v23, %v1812_v38 }
 0x3aa   : > { %v1883_v25 = vadd.f32 %v1853_v47, %v1811_v42 }
 0x3ae   : > { %2125 = vrot.lane.b32.xlu1 %v4957_v63, %s2814_s26  ;;  %2127 = vrot.lane.b32.xlu2 %v4960_v45, %s2814_s26 }
 0x3af   : > { %2123 = vrot.lane.b32.xlu0 %v4928_v4, %s2814_s26  ;;  %v1890_v1 = vpop.permute.xlu1 %1889 }
 0x3b0   : > { %v1910_v60 = vpop.permute.xlu2 %1909  ;;  %v1944_v30 = vadd.f32 %v1890_v1, %v4980_v52  ;;  %v1888_v44 = vpop.permute.xlu0 %1887 }
 0x3b1   : > { %v5057_v28 = vadd.f32 %v1910_v60, %v1882_v17  ;;  %v1919_v19 = vsel %vm626_vm13, %v1888_v44, %v1890_v1 }
 0x3b2   : > { %v1943_v58 = vadd.f32 %v1919_v19, %v4982_v16 }
 0x3b6   : > { %2131 = vrot.lane.b32.xlu1 %v4990_v41, %s2814_s26  ;;  %2133 = vrot.lane.b32.xlu2 %v4985_v35, %s2814_s26 }
 0x3b7   : > { %2129 = vrot.lane.b32.xlu0 %v4954_v21, %s2814_s26  ;;  %v1896_v26 = vpop.permute.xlu1 %1895 }
 0x3b8   : > { %v1916_v36 = vpop.permute.xlu2 %1915  ;;  %v1921_v52 = vsel %vm626_vm13, %v1896_v26, %v1898_v18  ;;  %v1894_v33 = vpop.permute.xlu0 %1893 }
 0x3b9   : > { %v1947_v54 = vadd.f32 %v1921_v52, %v1875_v32  ;;  %v1920_v17 = vsel %vm626_vm13, %v1892_v56, %v1894_v33  ;;  %v1946_v20 = vadd.f32 %v1894_v33, %v4880_v31 }
 0x3ba   : > { %v1945_v16 = vadd.f32 %v1920_v17, %v4976_v29 }
 0x3be   : > { %2209 = vrot.lane.b32.xlu1 %v4798_v27, %s2815_s27  ;;  %2211 = vrot.lane.b32.xlu2 %v4863_v0, %s2815_s27 }
 0x3bf   : > { %2207 = vrot.lane.b32.xlu0 %v4807_v46, %s2815_s27  ;;  %v1902_v11 = vpop.permute.xlu1 %1901 }
 0x3c0   : > { %v2034_v57 = vpop.permute.xlu2 %2033  ;;  %v1950_v18 = vadd.f32 %v1902_v11, %v1878_v51  ;;  %v1900_v12 = vpop.permute.xlu0 %1899 }
 0x3c1   : > { %v1922_v32 = vsel %vm626_vm13, %v1900_v12, %v1902_v11 }
 0x3c2   : > { %v1949_v56 = vadd.f32 %v1922_v32, %v1877_v24 }
 0x3c6   : > { %2215 = vrot.lane.b32.xlu1 %v4856_v9, %s2815_s27  ;;  %2217 = vrot.lane.b32.xlu2 %v4890_v39, %s2815_s27 }
 0x3c7   : > { %2213 = vrot.lane.b32.xlu0 %v4849_v10, %s2815_s27  ;;  %v1908_v31 = vpop.permute.xlu1 %1907 }
 0x3c8   : > { %v2040_v29 = vpop.permute.xlu2 %2039  ;;  %v1924_v15 = vsel %vm626_vm13, %v1908_v31, %v1910_v60  ;;  %v1906_v38 = vpop.permute.xlu0 %1905 }
 0x3c9   : > { %v5085_v13 = vadd.f32 %v2040_v29, %v1947_v54  ;;  %v1953_v51 = vadd.f32 %v1924_v15, %v1881_v48  ;;  %v1923_v42 = vsel %vm626_vm13, %v1904_v43, %v1906_v38  ;;  %v1952_v24 = vadd.f32 %v1906_v38, %v4946_v37 }
 0x3ca   : > { %v1951_v6 = vadd.f32 %v1923_v42, %v5017_v8 }
 0x3ce   : > { %2221 = vrot.lane.b32.xlu1 %v4887_v7, %s2815_s27  ;;  %2223 = vrot.lane.b32.xlu2 %v4933_v3, %s2815_s27 }
 0x3cf   : > { %2219 = vrot.lane.b32.xlu0 %v4894_v62, %s2815_s27  ;;  %v1914_v23 = vpop.permute.xlu1 %1913 }
 0x3d0   : > { %v2046_v47 = vpop.permute.xlu2 %2045  ;;  %v1956_v1 = vadd.f32 %v1914_v23, %v1884_v61  ;;  %v1912_v60 = vpop.permute.xlu0 %1911 }
 0x3d1   : > { %v1925_v48 = vsel %vm626_vm13, %v1912_v60, %v1914_v23 }
 0x3d2   : > { %v1955_v43 = vadd.f32 %v1925_v48, %v1883_v25 }
 0x3d6   : > { %2227 = vrot.lane.b32.xlu1 %v4928_v4, %s2815_s27  ;;  %2229 = vrot.lane.b32.xlu2 %v4957_v63, %s2815_s27 }
 0x3d7   : > { %2225 = vrot.lane.b32.xlu0 %v4925_v53, %s2815_s27 }
 0x3d8   : > { %v2032_v37 = vpop.permute.xlu1 %2031  ;;  %v2052_v8 = vpop.permute.xlu2 %2051 }
 0x3d9   : > { %v2063_v44 = vsel %vm375_vm10, %v2032_v37, %v2034_v57  ;;  %v2087_v19 = vadd.f32 %v2032_v37, %v1943_v58  ;;  %v1918_v26 = vpop.permute.xlu0 %1917  ;;  %v5104_v61 = vadd.f32 %v2052_v8, %v1953_v51 }
 0x3da   : > { %v5106_v52 = vadd.f32 %v2063_v44, %v1944_v30  ;;  %v1926_v25 = vsel %vm626_vm13, %v1916_v36, %v1918_v26  ;;  %v1958_v33 = vadd.f32 %v1918_v26, %v5001_v34 }
 0x3db   : > { %v1957_v54 = vadd.f32 %v1926_v25, %v5047_v59 }
 0x3de   : > { %2233 = vrot.lane.b32.xlu1 %v4954_v21, %s2815_s27  ;;  %2235 = vrot.lane.b32.xlu2 %v4990_v41, %s2815_s27 }
 0x3df   : > { %2231 = vrot.lane.b32.xlu0 %v4960_v45, %s2815_s27 }
 0x3e0   : > { %v2038_v58 = vpop.permute.xlu1 %2037  ;;  %v2058_v17 = vpop.permute.xlu2 %2057 }
 0x3e1   : > { %v2036_v11 = vpop.permute.xlu0 %2035 }
 0x3e2   : > { %v2064_v30 = vsel %vm375_vm10, %v2036_v11, %v2038_v58  ;;  %v2089_v57 = vadd.f32 %v2036_v11, %v1945_v16 }
 0x3e3   : > { %v2090_v36 = vadd.f32 %v2064_v30, %v1946_v20 }
 0x3e6   : > { %2279 = vrot.lane.b32.xlu1 %v4807_v46, %s2816_s28  ;;  %2281 = vrot.lane.b32.xlu2 %v4798_v27, %s2816_s28 }
 0x3e7   : > { %2237 = vrot.lane.b32.xlu0 %v4985_v35, %s2815_s27 }
 0x3e8   : > { %v2044_v34 = vpop.permute.xlu1 %2043  ;;  %v2104_v59 = vpop.permute.xlu2 %2103 }
 0x3e9   : > { %v2066_v12 = vsel %vm375_vm10, %v2044_v34, %v2046_v47  ;;  %v2093_v32 = vadd.f32 %v2044_v34, %v1949_v56  ;;  %v2042_v31 = vpop.permute.xlu0 %2041  ;;  %v5125_v15 = vadd.f32 %v2104_v59, %v2087_v19 }
 0x3ea   : > { %v2094_v38 = vadd.f32 %v2066_v12, %v1950_v18  ;;  %v2065_v20 = vsel %vm375_vm10, %v2040_v29, %v2042_v31 }
 0x3eb   : > { %v2092_v16 = vadd.f32 %v2065_v20, %v5031_v2 }
 0x3ee   : > { %2285 = vrot.lane.b32.xlu1 %v4849_v10, %s2816_s28  ;;  %2287 = vrot.lane.b32.xlu2 %v4856_v9, %s2816_s28 }
 0x3ef   : > { %2283 = vrot.lane.b32.xlu0 %v4863_v0, %s2816_s28 }
 0x3f0   : > { %v2050_v51 = vpop.permute.xlu1 %2049  ;;  %v2110_v42 = vpop.permute.xlu2 %2109 }
 0x3f1   : > { %v2048_v56 = vpop.permute.xlu0 %2047 }
 0x3f2   : > { %v2067_v23 = vsel %vm375_vm10, %v2048_v56, %v2050_v51  ;;  %v2095_v47 = vadd.f32 %v2048_v56, %v1951_v6 }
 0x3f3   : > { %v2096_v18 = vadd.f32 %v2067_v23, %v1952_v24 }
 0x3f6   : > { %2291 = vrot.lane.b32.xlu1 %v4894_v62, %s2816_s28  ;;  %2293 = vrot.lane.b32.xlu2 %v4887_v7, %s2816_s28 }
 0x3f7   : > { %2289 = vrot.lane.b32.xlu0 %v4890_v39, %s2816_s28 }
 0x3f8   : > { %v2056_v2 = vpop.permute.xlu1 %2055  ;;  %v2116_v29 = vpop.permute.xlu2 %2115 }
 0x3f9   : > { %v2069_v60 = vsel %vm375_vm10, %v2056_v2, %v2058_v17  ;;  %v2099_v48 = vadd.f32 %v2056_v2, %v1955_v43  ;;  %v2054_v37 = vpop.permute.xlu0 %2053  ;;  %v5143_v44 = vadd.f32 %v2116_v29, %v2093_v32 }
 0x3fa   : > { %v2100_v19 = vadd.f32 %v2069_v60, %v1956_v1  ;;  %v2068_v24 = vsel %vm375_vm10, %v2052_v8, %v2054_v37 }
 0x3fb   : > { %v2098_v6 = vadd.f32 %v2068_v24, %v5057_v28 }
 0x3fe   : > { %2297 = vrot.lane.b32.xlu1 %v4925_v53, %s2816_s28  ;;  %2299 = vrot.lane.b32.xlu2 %v4928_v4, %s2816_s28 }
 0x3ff   : > { %2295 = vrot.lane.b32.xlu0 %v4933_v3, %s2816_s28 }
 0x400   : > { %v2062_v26 = vpop.permute.xlu1 %2061  ;;  %v2122_v25 = vpop.permute.xlu2 %2121 }
 0x401   : > { %v2060_v43 = vpop.permute.xlu0 %2059 }
 0x402   : > { %v2070_v58 = vsel %vm375_vm10, %v2060_v43, %v2062_v26  ;;  %v2101_v17 = vadd.f32 %v2060_v43, %v1957_v54 }
 0x403   : > { %v2102_v1 = vadd.f32 %v2070_v58, %v1958_v33 }
 0x406   : > { %2303 = vrot.lane.b32.xlu1 %v4960_v45, %s2816_s28  ;;  %2305 = vrot.lane.b32.xlu2 %v4954_v21, %s2816_s28 }
 0x407   : > { %2301 = vrot.lane.b32.xlu0 %v4957_v63, %s2816_s28 }
 0x408   : > { %v2108_v28 = vpop.permute.xlu1 %2107  ;;  %v2128_v8 = vpop.permute.xlu2 %2127 }
 0x409   : > { %v2136_v11 = vsel %vm448_vm11, %v2108_v28, %v2110_v42  ;;  %v2161_v30 = vadd.f32 %v2108_v28, %v2089_v57  ;;  %v2106_v34 = vpop.permute.xlu0 %2105  ;;  %v5161_v12 = vadd.f32 %v2128_v8, %v2099_v48 }
 0x40a   : > { %v5163_v32 = vadd.f32 %v2136_v11, %v2090_v36  ;;  %v2135_v33 = vsel %vm448_vm11, %v2104_v59, %v2106_v34 }
 0x40b   : > { %v2160_v54 = vadd.f32 %v2135_v33, %v5106_v52 }
 0x40e   : > { %2309 = vrot.lane.b32.xlu1 %v4985_v35, %s2816_s28 }
 0x40f   : > { %2307 = vrot.lane.b32.xlu0 %v4990_v41, %s2816_s28 }
 0x410   : > { %v2114_v31 = vpop.permute.xlu1 %2113  ;;  %v2134_v20 = vpop.permute.xlu2 %2133 }
 0x411   : > { %v2112_v51 = vpop.permute.xlu0 %2111 }
 0x412   : > { %v2137_v57 = vsel %vm448_vm11, %v2112_v51, %v2114_v31  ;;  %v2163_v42 = vadd.f32 %v2112_v51, %v5085_v13 }
 0x413   : > { %v2164_v56 = vadd.f32 %v2137_v57, %v2092_v16 }
 0x415   : > { %v2196_v24 = vadd.f32 %v2164_v56, %v4890_v39 }
 0x418   : > { %v2120_v36 = vpop.permute.xlu1 %2119  ;;  %v2212_v23 = vpop.permute.xlu2 %2211 }
 0x419   : > { %v2139_v59 = vsel %vm448_vm11, %v2120_v36, %v2122_v25  ;;  %v2167_v2 = vadd.f32 %v2120_v36, %v2095_v47  ;;  %v2118_v52 = vpop.permute.xlu0 %2117 }
 0x41a   : > { %v5174_v60 = vadd.f32 %v2139_v59, %v2096_v18  ;;  %v2138_v48 = vsel %vm448_vm11, %v2116_v29, %v2118_v52 }
 0x41b   : > { %v5177_v37 = vadd.f32 %v2138_v48, %v2094_v38 }
 0x420   : > { %v2126_v26 = vpop.permute.xlu1 %2125  ;;  %v2218_v43 = vpop.permute.xlu2 %2217 }
 0x421   : > { %v2124_v58 = vpop.permute.xlu0 %2123  ;;  %v5180_v28 = vadd.f32 %v2218_v43, %v2196_v24  ;;  %v6036_v24 = vld [vmem:[#allocation26_spill] sm:$0xff] }
 0x422   : > { %v2140_v13 = vsel %vm448_vm11, %v2124_v58, %v2126_v26  ;;  %v2169_v16 = vadd.f32 %v2124_v58, %v5104_v61  ;;  %v2195_v61 = vadd.f32 %v2163_v42, %v4856_v9  ;;  %v2388_v26 = vrot.slane %v6036_v24, 6 }
 0x423   : > { %v2170_v25 = vadd.f32 %v2140_v13, %v2098_v6  ;;  %v2192_v58 = vadd.f32 %v2160_v54, %v4798_v27 }
 0x425   : > { %v2202_v31 = vadd.f32 %v2170_v25, %v4957_v63 }
 0x428   : > { %v2132_v47 = vpop.permute.xlu1 %2131  ;;  %v2224_v11 = vpop.permute.xlu2 %2223 }
 0x429   : > { %v2142_v18 = vsel %vm448_vm11, %v2132_v47, %v2134_v20  ;;  %v2173_v34 = vadd.f32 %v2132_v47, %v2101_v17  ;;  %v2130_v29 = vpop.permute.xlu0 %2129  ;;  %v2193_v20 = vadd.f32 %v2161_v30, %v4863_v0 }
 0x42a   : > { %v5185_v38 = vadd.f32 %v2142_v18, %v2102_v1  ;;  %v2141_v39 = vsel %vm448_vm11, %v2128_v8, %v2130_v29  ;;  %v2352_v8 = vld [vmem:[#allocation2 + $0x8] sm:$0xc0]  ;;  %v2199_v18 = vadd.f32 %v2167_v2, %v4933_v3  ;;  %v2191_v3 = vadd.f32 %v5125_v15, %v4807_v46  ;;  %v2351_v2 = vld [vmem:[#allocation2] sm:$0xc0] }
 0x42b   : > { %v5188_v33 = vadd.f32 %v2141_v39, %v2100_v19  ;;  %v2387_v48 = vrot.slane %v2352_v8, 6 }
 0x42d   : > { %v2389_v0 = vsel %vm2383_vm15, %v2387_v48, %v2388_v26  ;;  %v2354_v48 = vld [vmem:[#allocation2 + $0x28] sm:$0x3f] }
 0x430   : > { %v2210_v51 = vpop.permute.xlu1 %2209  ;;  %v2230_v57 = vpop.permute.xlu2 %2229 }
 0x431   : > { %v2208_v56 = vpop.permute.xlu0 %2207  ;;  %v5191_v36 = vadd.f32 %v2230_v57, %v2202_v31  ;;  %v2264_v13 = vadd.f32 %v2210_v51, %v2192_v58 }
 0x438   : > { %v2216_v6 = vpop.permute.xlu1 %2215  ;;  %v2236_v17 = vpop.permute.xlu2 %2235 }
 0x439   : > { %v2241_v1 = vsel %vm553_vm12, %v2216_v6, %v2218_v43  ;;  %v2214_v59 = vpop.permute.xlu0 %2213 }
 0x43a   : > { %v5196_v52 = vadd.f32 %v2241_v1, %v2195_v61  ;;  %v2240_v19 = vsel %vm553_vm12, %v2212_v23, %v2214_v59  ;;  %v2201_v23 = vadd.f32 %v2169_v16, %v4928_v4  ;;  %v2239_v4 = vsel %vm553_vm12, %v2208_v56, %v2210_v51 }
 0x43b   : > { %v2265_v63 = vadd.f32 %v2240_v19, %v2193_v20  ;;  %v2385_v16 = vrot.slane %v4769_v55, 6  ;;  %v2205_v1 = vadd.f32 %v2173_v34, %v4990_v41  ;;  %v2384_v19 = vrot.slane %v2351_v2, 6 }
 0x43c   : > { %v2392_v56 = vrot.slane %v2354_v48, 6  ;;  %v2194_v41 = vadd.f32 %v5163_v32, %v4849_v10  ;;  %v2355_v10 = vld [vmem:[#allocation2 + $0x30] sm:$0xc0] }
 0x43d   : > { %v2386_v46 = vsel %vm2383_vm15, %v2384_v19, %v2385_v16 }
 0x43e   : > { %v2266_v34 = vadd.f32 %v2214_v59, %v2194_v41 }
 0x440   : > { %v5201_v9 = vpop.permute.xlu1 %2221  ;;  %v2282_v30 = vpop.permute.xlu2 %2281 }
 0x441   : > { %v2220_v42 = vpop.permute.xlu0 %2219  ;;  %v2336_v43 = vadd.f32 %v2282_v30, %v2264_v13  ;;  %v2353_v13 = vld [vmem:[#allocation2 + $0x20] sm:$0x3f] }
 0x442   : > { %v2242_v32 = vsel %vm553_vm12, %v2220_v42, %v5201_v9 }
 0x443   : > { %v2441_v25 = vadd.f32 %v2389_v0, %v2336_v43  ;;  %v2393_v0 = vsel %vm2383_vm15, %v2388_v26, %v2392_v56  ;;  %v2197_v26 = vadd.f32 %v5143_v44, %v4894_v62 }
 0x445   : > { %2474 = vrot.lane.b32.xlu0 %v2441_v25, %s2817_s29 }
 0x448   : > { %v2228_v47 = vpop.permute.xlu1 %2227  ;;  %v2288_v24 = vpop.permute.xlu2 %2287 }
 0x449   : > { %v2244_v29 = vsel %vm553_vm12, %v2228_v47, %v2230_v57  ;;  %v5208_v27 = vpop.permute.xlu0 %2225  ;;  %v2263_v57 = vadd.f32 %v2239_v4, %v2191_v3  ;;  %v2356_v47 = vld [vmem:[#allocation2 + $0x38] sm:$0xc0]  ;;  %v2357_v3 = vld [vmem:[#allocation2 + $0x50] sm:$0x3f] }
 0x44a   : > { %v5210_v54 = vadd.f32 %v2244_v29, %v2201_v23  ;;  %v2243_v39 = vsel %vm553_vm12, %v2224_v11, %v5208_v27  ;;  %v2390_v23 = vrot.slane %v2353_v13, 6  ;;  %v2397_v2 = vrot.slane %v2356_v47, 6 }
 0x44b   : > { %v5214_v31 = vadd.f32 %v2243_v39, %v2199_v18  ;;  %v2408_v13 = vrot.slane %v4903_v49, 6 }
 0x44c   : > { %v2391_v4 = vsel %vm2383_vm15, %v2385_v16, %v2390_v23  ;;  %v2394_v16 = vrot.slane %v2355_v10, 6  ;;  %v2363_v10 = vld [vmem:[#allocation2 + $0x90] sm:$0xc0] }
 0x450   : > { %v5216_v61 = vpop.permute.xlu1 %2233  ;;  %v2294_v39 = vpop.permute.xlu2 %2293 }
 0x451   : > { %v5218_v6 = vpop.permute.xlu0 %2231 }
 0x458   : > { %v2280_v20 = vpop.permute.xlu1 %2279 }
 0x459   : > { %v2311_v11 = vsel %vm626_vm13, %v2280_v20, %v2282_v30  ;;  %v5226_v8 = vpop.permute.xlu0 %2237  ;;  %v2400_v20 = vrot.slane %v2357_v3, 6 }
 0x45a   : > { %v2335_v58 = vadd.f32 %v2311_v11, %v2263_v57  ;;  %v2246_v51 = vsel %vm553_vm12, %v2236_v17, %v5226_v8  ;;  %v2398_v57 = vrot.slane %v4872_v22, 6  ;;  %v2358_v22 = vld [vmem:[#allocation2 + $0x58] sm:$0x3f] }
 0x45b   : > { %v5231_v15 = vadd.f32 %v2246_v51, %v2205_v1  ;;  %v2269_v1 = vadd.f32 %v2242_v32, %v2197_v26  ;;  %v2203_v26 = vadd.f32 %v5161_v12, %v4960_v45 }
 0x45c   : > { %v2440_v55 = vadd.f32 %v2386_v46, %v2335_v58  ;;  %v2399_v42 = vsel %vm2383_vm15, %v2397_v2, %v2398_v57  ;;  %v2360_v58 = vld [vmem:[#allocation2 + $0x68] sm:$0xc0] }
 0x45e   : > { %2472 = vrot.lane.b32.xlu2 %v2440_v55, %s2817_s29 }
 0x460   : > { %v2286_v30 = vpop.permute.xlu1 %2285 }
 0x461   : > { %v2338_v43 = vadd.f32 %v2286_v30, %v2266_v34  ;;  %v2284_v25 = vpop.permute.xlu0 %2283  ;;  %v2407_v34 = vrot.slane %v2360_v58, 6  ;;  %v2364_v58 = vld [vmem:[#allocation2 + $0x98] sm:$0xc0] }
 0x462   : > { %v2312_v17 = vsel %vm626_vm13, %v2284_v25, %v2286_v30  ;;  %v2300_v25 = vpop.permute.xlu2 %2299 }
 0x463   : > { %v2443_v18 = vadd.f32 %v2393_v0, %v2338_v43  ;;  %v2337_v29 = vadd.f32 %v2312_v17, %v2265_v63  ;;  %v2395_v63 = vrot.slane %v4851_v14, 6  ;;  %v2198_v0 = vadd.f32 %v5177_v37, %v4887_v7 }
 0x464   : > { %v2402_v43 = vrot.slane %v2358_v22, 6  ;;  %v2409_v49 = vsel %vm2383_vm15, %v2407_v34, %v2408_v13  ;;  %v2417_v34 = vrot.slane %v2364_v58, 6 }
 0x465   : > { %v2442_v59 = vadd.f32 %v2391_v4, %v2337_v29  ;;  %v2401_v46 = vsel %vm2383_vm15, %v2395_v63, %v2400_v20  ;;  %v2396_v14 = vsel %vm2383_vm15, %v2394_v16, %v2395_v63  ;;  %v2270_v23 = vadd.f32 %v5201_v9, %v2198_v0  ;;  %v2362_v9 = vld [vmem:[#allocation2 + $0x88] sm:$0x3f] }
 0x466   : > { %2478 = vrot.lane.b32.xlu2 %v2443_v18, %s2817_s29  ;;  %v2403_v18 = vsel %vm2383_vm15, %v2398_v57, %v2402_v43  ;;  %v2412_v2 = vrot.slane %v2362_v9, 6  ;;  %v2415_v57 = vrot.slane %v4943_v50, 6 }
 0x467   : > { %2476 = vrot.lane.b32.xlu1 %v2442_v59, %s2817_s29  ;;  %v2245_v59 = vsel %vm553_vm12, %v5218_v6, %v5216_v61 }
 0x468   : > { %v2292_v19 = vpop.permute.xlu1 %2291  ;;  %v2275_v63 = vadd.f32 %v2245_v59, %v2203_v26 }
 0x469   : > { %v2314_v11 = vsel %vm626_vm13, %v2292_v19, %v2294_v39  ;;  %v2290_v48 = vpop.permute.xlu0 %2289  ;;  %v2413_v19 = vsel %vm2383_vm15, %v2408_v13, %v2412_v2 }
 0x46a   : > { %v2341_v51 = vadd.f32 %v2314_v11, %v2269_v1  ;;  %v2313_v62 = vsel %vm626_vm13, %v2288_v24, %v2290_v48  ;;  %v2340_v44 = vadd.f32 %v2290_v48, %v5180_v28  ;;  %v2200_v24 = vadd.f32 %v5174_v60, %v4925_v53  ;;  %v2359_v28 = vld [vmem:[#allocation2 + $0x60] sm:$0xc0]  ;;  %v2306_v20 = vpop.permute.xlu2 %2305 }
 0x46b   : > { %v2339_v55 = vadd.f32 %v2313_v62, %v5196_v52  ;;  %v2404_v37 = vrot.slane %v2359_v28, 6  ;;  %v2405_v53 = vrot.slane %v4919_v5, 6  ;;  %v2342_v60 = vadd.f32 %v2294_v39, %v2270_v23  ;;  %v2361_v39 = vld [vmem:[#allocation2 + $0x80] sm:$0x3f] }
 0x46c   : > { %v2446_v56 = vadd.f32 %v2401_v46, %v2341_v51  ;;  %v2445_v41 = vadd.f32 %v2399_v42, %v2340_v44  ;;  %v2272_v52 = vadd.f32 %v5208_v27, %v2200_v24  ;;  %v2410_v1 = vrot.slane %v2361_v39, 6  ;;  %v2366_v42 = vld [vmem:[#allocation2 + $0xb8] sm:$0x3f] }
 0x46d   : > { %v2444_v30 = vadd.f32 %v2396_v14, %v2339_v55  ;;  %v2406_v3 = vsel %vm2383_vm15, %v2404_v37, %v2405_v53  ;;  %v2447_v32 = vadd.f32 %v2403_v18, %v2342_v60  ;;  %v2422_v46 = vrot.slane %v2366_v42, 6 }
 0x46e   : > { %2484 = vrot.lane.b32.xlu2 %v2446_v56, %s2817_s29  ;;  %v2411_v44 = vsel %vm2383_vm15, %v2405_v53, %v2410_v1  ;;  %v2204_v14 = vadd.f32 %v5188_v33, %v4954_v21  ;;  %v2206_v55 = vadd.f32 %v5185_v38, %v4985_v35 }
 0x46f   : > { %2482 = vrot.lane.b32.xlu1 %v2445_v41, %s2817_s29  ;;  %2480 = vrot.lane.b32.xlu0 %v2444_v30, %s2817_s29  ;;  %v2365_v41 = vld [vmem:[#allocation2 + $0xb0] sm:$0x3f] }
 0x470   : > { %v2298_v7 = vpop.permute.xlu1 %2297  ;;  %v2278_v13 = vadd.f32 %v5226_v8, %v2206_v55  ;;  %v2420_v0 = vrot.slane %v2365_v41, 6 }
 0x471   : > { %v2344_v17 = vadd.f32 %v2298_v7, %v2272_v52  ;;  %v2296_v47 = vpop.permute.xlu0 %2295 }
 0x472   : > { %v2315_v29 = vsel %vm626_vm13, %v2296_v47, %v2298_v7  ;;  %v2421_v8 = vsel %vm2383_vm15, %v2415_v57, %v2420_v0 }
 0x473   : > { %v2449_v4 = vadd.f32 %v2409_v49, %v2344_v17  ;;  %v2343_v27 = vadd.f32 %v2315_v29, %v5214_v31  ;;  %v2414_v31 = vrot.slane %v2363_v10, 6 }
 0x475   : > { %v2448_v5 = vadd.f32 %v2406_v3, %v2343_v27  ;;  %v2416_v51 = vsel %vm2383_vm15, %v2414_v31, %v2415_v57 }
 0x476   : > { %2490 = vrot.lane.b32.xlu2 %v2449_v4, %s2817_s29 }
 0x477   : > { %2486 = vrot.lane.b32.xlu0 %v2447_v32, %s2817_s29  ;;  %2488 = vrot.lane.b32.xlu1 %v2448_v5, %s2817_s29 }
 0x478   : > { %v2304_v16 = vpop.permute.xlu1 %2303 }
 0x479   : > { %v2317_v6 = vsel %vm626_vm13, %v2304_v16, %v2306_v20  ;;  %v2302_v11 = vpop.permute.xlu0 %2301 }
 0x47a   : > { %v2347_v45 = vadd.f32 %v2317_v6, %v2275_v63  ;;  %v2316_v12 = vsel %vm626_vm13, %v2300_v25, %v2302_v11  ;;  %v2346_v48 = vadd.f32 %v2302_v11, %v5191_v36  ;;  %v2418_v36 = vrot.slane %v4940_v40, 6 }
 0x47b   : > { %v2345_v50 = vadd.f32 %v2316_v12, %v5210_v54  ;;  %v2276_v54 = vadd.f32 %v5216_v61, %v2204_v14 }
 0x47c   : > { %v2452_v62 = vadd.f32 %v2416_v51, %v2347_v45  ;;  %v2451_v22 = vadd.f32 %v2413_v19, %v2346_v48  ;;  %v2423_v21 = vsel %vm2383_vm15, %v2418_v36, %v2422_v46  ;;  %v2419_v40 = vsel %vm2383_vm15, %v2417_v34, %v2418_v36 }
 0x47d   : > { %v2450_v56 = vadd.f32 %v2411_v44, %v2345_v50  ;;  %v2348_v35 = vadd.f32 %v2306_v20, %v2276_v54 }
 0x47e   : > { %2496 = vrot.lane.b32.xlu2 %v2452_v62, %s2817_s29 }
 0x47f   : > { %2494 = vrot.lane.b32.xlu1 %v2451_v22, %s2817_s29  ;;  %2492 = vrot.lane.b32.xlu0 %v2450_v56, %s2817_s29  ;;  %v2453_v43 = vadd.f32 %v2419_v40, %v2348_v35 }
 0x480   : > { %v2310_v33 = vpop.permute.xlu1 %2309 }
 0x481   : > { %v2350_v38 = vadd.f32 %v2310_v33, %v2278_v13  ;;  %v2308_v24 = vpop.permute.xlu0 %2307 }
 0x482   : > { %v2318_v30 = vsel %vm626_vm13, %v2308_v24, %v2310_v33 }
 0x483   : > { %v2455_v28 = vadd.f32 %v2423_v21, %v2350_v38  ;;  %v2349_v61 = vadd.f32 %v2318_v30, %v5231_v15 }
 0x485   : > { %v2454_v25 = vadd.f32 %v2421_v8, %v2349_v61 }
 0x486   : > { %2502 = vrot.lane.b32.xlu2 %v2455_v28, %s2817_s29 }
 0x487   : > { %2498 = vrot.lane.b32.xlu0 %v2453_v43, %s2817_s29  ;;  %2500 = vrot.lane.b32.xlu1 %v2454_v25, %s2817_s29 }
 0x4b7   : > { %v2475_v23 = vpop.permute.xlu0 %2474 }
 0x4b8   : > { %v2473_v52 = vpop.permute.xlu2 %2472 }
 0x4b9   : > { %v2504_v49 = vsel %vm1525_vm14, %v2473_v52, %v2475_v23 }
 0x4ba   : > { %2520 = vst [vmem:[%s5307_s30] sm:$0xff] %v2504_v49 }
 0x4c0   : > { %v2479_v15 = vpop.permute.xlu2 %2478 }
 0x4c8   : > { %v2485_v37 = vpop.permute.xlu2 %2484 }
 0x4d0   : > { %v2491_v18 = vpop.permute.xlu2 %2490 }
 0x4d8   : > { %v2497_v3 = vpop.permute.xlu2 %2496 }
 0x4d9   : > { %v2477_v7 = vpop.permute.xlu1 %2476 }
 0x4da   : > { %v2505_v53 = vsel %vm1525_vm14, %v2477_v7, %v2479_v15 }
 0x4db   : > { %2521 = vst [vmem:[%s5307_s30 + $0x8] sm:$0xff] %v2505_v53 }
 0x4e0   : > { %v2503_v5 = vpop.permute.xlu2 %2502 }
 0x4e1   : > { %v2483_v60 = vpop.permute.xlu1 %2482  ;;  %v2481_v17 = vpop.permute.xlu0 %2480 }
 0x4e2   : > { %v2506_v47 = vsel %vm1525_vm14, %v2481_v17, %v2483_v60 }
 0x4e3   : > { %2522 = vst [vmem:[%s5307_s30 + $0x10] sm:$0xff] %v2506_v47 }
 0x4e9   : > { %v2489_v29 = vpop.permute.xlu1 %2488  ;;  %v2487_v9 = vpop.permute.xlu0 %2486 }
 0x4ea   : > { %v2508_v4 = vsel %vm1525_vm14, %v2489_v29, %v2491_v18  ;;  %v2507_v27 = vsel %vm1525_vm14, %v2485_v37, %v2487_v9 }
 0x4eb   : > { %2524 = vst [vmem:[%s5307_s30 + $0x20] sm:$0xff] %v2508_v4 }
 0x4ec   : > { %2523 = vst [vmem:[%s5307_s30 + $0x18] sm:$0xff] %v2507_v27 }
 0x4f1   : > { %v2495_v10 = vpop.permute.xlu1 %2494  ;;  %v2493_v32 = vpop.permute.xlu0 %2492 }
 0x4f2   : > { %v2509_v59 = vsel %vm1525_vm14, %v2493_v32, %v2495_v10 }
 0x4f3   : > { %2525 = vst [vmem:[%s5307_s30 + $0x28] sm:$0xff] %v2509_v59 }
 0x4f9   : > { %v2501_v39 = vpop.permute.xlu1 %2500  ;;  %v2499_v2 = vpop.permute.xlu0 %2498 }
 0x4fa   : > { %v2511_v26 = vsel %vm1525_vm14, %v2501_v39, %v2503_v5  ;;  %v2510_v31 = vsel %vm1525_vm14, %v2497_v3, %v2499_v2 }
 0x4fb   : > { %2527 = vst [vmem:[%s5307_s30 + $0x38] sm:$0xff] %v2511_v26 }
 0x4fc   : > { %2526 = vst [vmem:[%s5307_s30 + $0x30] sm:$0xff] %v2510_v31 }
 0x4fd   : > { %2768 = shalt.err (!%p2765_p4)
}
 0x4fe   : > { %s2818_s21 = smov 128   ;;  %s2819_s25 = smov 8  }
 0x4ff   : > { %2640 = dma.vmem_to_hbm [thread:$0]  (%p2880_p11), %s2543_s11, 1024, %s2545_s13, %s2529_s10, %s2818_s21, %s2818_s21, %s2819_s25  }
 0x500 PF: > { %s2559_s26 = sand.u32 1, %s2795_s6   ;;  %p6037_p7 = scmp.ge.s32.totalorder %s2807_s9, 2 }
 0x501   : > { %s2560_s27 = scalar_lea.sflag [#allocation5], %s2559_s26 }
 0x502   : > { %p2647_p5 = pnand %p6037_p7, %p2884_p12 }
 0x504   : > { %p2648_p8 = pneg %p2647_p5 }
 0x506   : > { %2790 = dma.done.wait (%p2648_p8), %s2560_s27, 1024  }
 0x507   : > { %2792 = vsyncadd (%p2648_p8), %s2560_s27, 4294966272  ;;  %p14_p10 = scmp.ge.s32.totalorder %s2855_s12, 4   ;;  %s6038_s6 = smov %s2799_s7 }
 0x508   : > { %s6039_s7 = smov %s2803_s8  ;;  %s6040_s8 = smov %s2867_s15 }
 0x509   : > { %s6041_s9 = smov %s2855_s12  ;;  %16 = sbr.rel (!%p14_p10) target bundleno = 5 (0x5), region = 69 }
 0x50e   :  { %2566 = vsyncpa [#allocation4], 1 }
 0x50f   :  { %2568 = vsyncpa [#allocation4 + $0x1], 1 }
 0x510   :  { %2569 = vsyncpa [#allocation5], 1 }
 0x511   :  { %2571 = vsyncpa [#allocation5 + $0x1], 1 }

</bundles_post_ra>
